<compile_context>
chip_gen: v7x
topology: tpu7x:2x2x1
jax: 0.10.0
libtpu: 0.0.40
codegen_flags: <defaults>
</compile_context>

<pallas_src>
import functools

import jax
import jax.numpy as jnp
from jax.experimental import pallas as pl
from jax.experimental.pallas import tpu as pltpu  # noqa: F401  (TPU backend)


# ----------------------------- kernel ------------------------------------- #

def _softplus(x):
    # Matches torch.nn.Softplus(beta=1, threshold=20).
    return jnp.where(x > 20.0, x, jnp.log1p(jnp.exp(jnp.minimum(x, 20.0))))


def _encoder_kernel(x_ref, eps_ref,
                    wi_r_ref, wi_z_ref, wi_n_ref,
                    wh_r_ref, wh_z_ref, wh_n_ref,
                    b_r_ref, b_z_ref, b_in_ref, b_hn_ref,
                    wphi_ref, bphi_ref,
                    wm_ref, bm_ref,
                    ws_ref, bs_ref,
                    wpnf_ref, bpnf_ref, upnf_ref,
                    z_ref, zmean_ref, zstd_ref,
                    *, T, h_dim, dense_dim, z_dim, pnf_k, use_pnf):
    B = x_ref.shape[0]
    f32 = jnp.float32

    def dot(a, b):
        return jnp.dot(a, b, preferred_element_type=f32)

    # ---- load everything once (tiny; all resident in VMEM) -----------------
    x_all = x_ref[...]        # (B, T, x_dim)
    eps_all = eps_ref[...]    # (B, T, z_dim)

    wi_r = wi_r_ref[...]; wi_z = wi_z_ref[...]; wi_n = wi_n_ref[...]
    wh_r = wh_r_ref[...]; wh_z = wh_z_ref[...]; wh_n = wh_n_ref[...]

    # Bias broadcasts hoisted out of the time loop.
    b_r = jnp.broadcast_to(b_r_ref[...], (B, h_dim))
    b_z = jnp.broadcast_to(b_z_ref[...], (B, h_dim))
    b_in = jnp.broadcast_to(b_in_ref[...], (B, h_dim))
    b_hn = jnp.broadcast_to(b_hn_ref[...], (B, h_dim))

    wphi = wphi_ref[...]                                     # (h_dim, dense)
    b_phi = jnp.broadcast_to(bphi_ref[...], (B, dense_dim))
    wm = wm_ref[...]
    b_m = jnp.broadcast_to(bm_ref[...], (B, z_dim))
    ws = ws_ref[...]
    b_s = jnp.broadcast_to(bs_ref[...], (B, z_dim))

    if use_pnf:
        wpnf_all = wpnf_ref[...]   # (T, K, z_dim)
        bpnf_all = bpnf_ref[...]   # (T, K, 1)
        upnf_all = upnf_ref[...]   # (T, K, z_dim)

    h = jnp.zeros((B, h_dim), f32)

    # ---- time recurrence, fully unrolled (T is small & static) -------------
    for t in range(T):
        x_t = x_all[:, t, :]                                 # (B, x_dim)

        # GRU cell (PyTorch semantics), one lane-aligned matmul per gate.
        r = jax.nn.sigmoid(dot(x_t, wi_r) + dot(h, wh_r) + b_r)
        u = jax.nn.sigmoid(dot(x_t, wi_z) + dot(h, wh_z) + b_z)
        n = jnp.tanh(dot(x_t, wi_n) + b_in + r * (dot(h, wh_n) + b_hn))
        h = (1.0 - u) * n + u * h

        # Encoder heads.  z_i is identically zero in the reference forward,
        # so phi = relu([h, 0] @ W_phi + b) == relu(h @ W_phi[:h_dim] + b).
        phi = jnp.maximum(dot(h, wphi) + b_phi, 0.0)
        z_mean = jax.nn.sigmoid(dot(phi, wm) + b_m)
        z_std = _softplus(dot(phi, ws) + b_s)

        # Reparameterized sample: eps * std + mean.
        z = eps_all[:, t, :] * z_std + z_mean

        # Planar normalizing flow (per-timestep parameters).
        if use_pnf:
            w_t = wpnf_all[t]    # (K, z_dim)
            b_t = bpnf_all[t]    # (K, 1)
            u_t = upnf_all[t]    # (K, z_dim)
            for k in range(pnf_k):
                proj = jnp.sum(z * w_t[k:k + 1, :], axis=1, keepdims=True)
                z = z + u_t[k:k + 1, :] * jnp.tanh(proj + b_t[k:k + 1, :])

        # Outputs written directly in (B, T, z_dim) layout.
        z_ref[:, t:t + 1, :] = z[:, None, :]
        zmean_ref[:, t:t + 1, :] = z_mean[:, None, :]
        zstd_ref[:, t:t + 1, :] = z_std[:, None, :]


# ----------------------------- wrapper ------------------------------------- #

def _full_block(shape):
    zero = (0,) * len(shape)
    return pl.BlockSpec(shape, lambda i, _z=zero: _z)


@functools.partial(jax.jit,
                   static_argnames=("h_dim", "dense_dim", "z_dim",
                                    "use_pnf", "pnf_k"))
def encoder_forward(x, eps, params, *, h_dim, dense_dim, z_dim,
                    use_pnf, pnf_k):
    """x: (B, T, x_dim) f32; eps: (B, T, z_dim) f32 (stand-in for normal_())."""
    B, T, x_dim = x.shape
    p = params
    h = h_dim

    # Split GRU weights per gate (PyTorch order r, z, n); fold the r/z biases.
    wi_r, wi_z, wi_n = (p["w_ih_T"][:, :h], p["w_ih_T"][:, h:2 * h],
                        p["w_ih_T"][:, 2 * h:])
    wh_r, wh_z, wh_n = (p["w_hh_T"][:, :h], p["w_hh_T"][:, h:2 * h],
                        p["w_hh_T"][:, 2 * h:])
    b_r = p["b_ih"][:, :h] + p["b_hh"][:, :h]
    b_z = p["b_ih"][:, h:2 * h] + p["b_hh"][:, h:2 * h]
    b_in = p["b_ih"][:, 2 * h:]
    b_hn = p["b_hh"][:, 2 * h:]

    # z_i is identically zero in the reference forward loop, so only the first
    # h_dim rows of W_phi^T contribute (the z_dim rows multiply zeros).
    w_phi_h = p["w_phi_T"][:h, :]

    args = (x, eps,
            wi_r, wi_z, wi_n, wh_r, wh_z, wh_n,
            b_r, b_z, b_in, b_hn,
            w_phi_h, p["b_phi"],
            p["w_mean_T"], p["b_mean"],
            p["w_std_T"], p["b_std"],
            p["w_pnf"], p["b_pnf"], p["u_pnf"])

    kernel = functools.partial(_encoder_kernel, T=T, h_dim=h_dim,
                               dense_dim=dense_dim, z_dim=z_dim,
                               pnf_k=pnf_k, use_pnf=use_pnf)

    out_shape = tuple(jax.ShapeDtypeStruct((B, T, z_dim), jnp.float32)
                      for _ in range(3))

    zs, zmeans, zstds = pl.pallas_call(
        kernel,
        out_shape=out_shape,
        grid=(1,),                                    # single invocation
        in_specs=[_full_block(a.shape) for a in args],
        out_specs=[_full_block((B, T, z_dim))] * 3,
    )(*args)
    return zs, zmeans, zstds


# --------------------- pure-JAX reference (for checking) ------------------- #

def encoder_reference(x, eps, p, *, h_dim, z_dim, use_pnf, pnf_k):
    B, T, _ = x.shape
    h = jnp.zeros((B, h_dim), jnp.float32)
    zs, zms, zss = [], [], []
    for t in range(T):
        gi = x[:, t] @ p["w_ih_T"] + p["b_ih"]
        gh = h @ p["w_hh_T"] + p["b_hh"]
        i_r, i_z, i_n = gi[:, :h_dim], gi[:, h_dim:2 * h_dim], gi[:, 2 * h_dim:]
        h_r, h_z, h_n = gh[:, :h_dim], gh[:, h_dim:2 * h_dim], gh[:, 2 * h_dim:]
        r = jax.nn.sigmoid(i_r + h_r)
        u = jax.nn.sigmoid(i_z + h_z)
        n = jnp.tanh(i_n + r * h_n)
        h = (1.0 - u) * n + u * h
        hz = jnp.concatenate([h, jnp.zeros((B, z_dim), jnp.float32)], axis=1)
        phi = jnp.maximum(hz @ p["w_phi_T"] + p["b_phi"], 0.0)
        zm = jax.nn.sigmoid(phi @ p["w_mean_T"] + p["b_mean"])
        zsd = _softplus(phi @ p["w_std_T"] + p["b_std"])
        z = eps[:, t] * zsd + zm
        if use_pnf:
            for k in range(pnf_k):
                proj = jnp.sum(z * p["w_pnf"][t, k][None, :], axis=1,
                               keepdims=True)
                z = z + p["u_pnf"][t, k][None, :] * jnp.tanh(
                    proj + p["b_pnf"][t, k, 0])
        zs.append(z); zms.append(zm); zss.append(zsd)
    stack = lambda xs: jnp.stack(xs, axis=1)   # (B, T, z_dim)
    return stack(zs), stack(zms), stack(zss)


# ------------------------------- main -------------------------------------- #

if __name__ == "__main__":
    B, T = 4, 8               # batch, rolling_size (sequence length)
    x_dim, h_dim = 16, 32
    dense_dim, z_dim = 32, 8
    use_pnf, pnf_k = True, 2  # use_PNF, PNF_layers

    key = jax.random.PRNGKey(0)
    ks = jax.random.split(key, 16)
    uni = lambda k, shp, s=0.3: jax.random.uniform(k, shp, jnp.float32, -s, s)

    params = {
        "w_ih_T": uni(ks[0], (x_dim, 3 * h_dim)),
        "w_hh_T": uni(ks[1], (h_dim, 3 * h_dim)),
        "b_ih":   uni(ks[2], (1, 3 * h_dim)),
        "b_hh":   uni(ks[3], (1, 3 * h_dim)),
        "w_phi_T":  uni(ks[4], (h_dim + z_dim, dense_dim)),
        "b_phi":    uni(ks[5], (1, dense_dim)),
        "w_mean_T": uni(ks[6], (dense_dim, z_dim)),
        "b_mean":   uni(ks[7], (1, z_dim)),
        "w_std_T":  uni(ks[8], (dense_dim, z_dim)),
        "b_std":    uni(ks[9], (1, z_dim)),
        # Planar normalizing flow params: one flow per timestep, K layers each
        # (torch.rand -> uniform [0, 1)).
        "w_pnf": jax.random.uniform(ks[10], (T, pnf_k, z_dim), jnp.float32),
        "b_pnf": jax.random.uniform(ks[11], (T, pnf_k, 1), jnp.float32),
        "u_pnf": jax.random.uniform(ks[12], (T, pnf_k, z_dim), jnp.float32),
    }

    x = jax.random.normal(ks[13], (B, T, x_dim), jnp.float32)
    # Deterministic stand-in for torch.FloatTensor(...).normal_().
    eps = jax.random.normal(ks[14], (B, T, z_dim), jnp.float32)

    zs, zmeans, zstds = encoder_forward(
        x, eps, params,
        h_dim=h_dim, dense_dim=dense_dim, z_dim=z_dim,
        use_pnf=use_pnf, pnf_k=pnf_k)
    jax.block_until_ready((zs, zmeans, zstds))

    zs_r, zmeans_r, zstds_r = encoder_reference(
        x, eps, params, h_dim=h_dim, z_dim=z_dim,
        use_pnf=use_pnf, pnf_k=pnf_k)

    assert zs.shape == (B, T, z_dim)
    assert jnp.allclose(zs, zs_r, atol=2e-4), "zs mismatch"
    assert jnp.allclose(zmeans, zmeans_r, atol=2e-4), "z_means mismatch"
    assert jnp.allclose(zstds, zstds_r, atol=2e-4), "z_stds mismatch"

    print("KERNEL_OK")
</pallas_src>

<mosaic_0001>
module attributes {stable_mosaic.version = 11 : i64} {
  func.func @_encoder_kernel(%arg0: i32, %arg1: memref<4x8x16xf32, #tpu.memory_space<vmem>>, %arg2: memref<4x8x8xf32, #tpu.memory_space<vmem>>, %arg3: memref<16x32xf32, #tpu.memory_space<vmem>>, %arg4: memref<16x32xf32, #tpu.memory_space<vmem>>, %arg5: memref<16x32xf32, #tpu.memory_space<vmem>>, %arg6: memref<32x32xf32, #tpu.memory_space<vmem>>, %arg7: memref<32x32xf32, #tpu.memory_space<vmem>>, %arg8: memref<32x32xf32, #tpu.memory_space<vmem>>, %arg9: memref<1x32xf32, #tpu.memory_space<vmem>>, %arg10: memref<1x32xf32, #tpu.memory_space<vmem>>, %arg11: memref<1x32xf32, #tpu.memory_space<vmem>>, %arg12: memref<1x32xf32, #tpu.memory_space<vmem>>, %arg13: memref<32x32xf32, #tpu.memory_space<vmem>>, %arg14: memref<1x32xf32, #tpu.memory_space<vmem>>, %arg15: memref<32x8xf32, #tpu.memory_space<vmem>>, %arg16: memref<1x8xf32, #tpu.memory_space<vmem>>, %arg17: memref<32x8xf32, #tpu.memory_space<vmem>>, %arg18: memref<1x8xf32, #tpu.memory_space<vmem>>, %arg19: memref<8x2x8xf32, #tpu.memory_space<vmem>>, %arg20: memref<8x2x1xf32, #tpu.memory_space<vmem>>, %arg21: memref<8x2x8xf32, #tpu.memory_space<vmem>>, %arg22: memref<4x8x8xf32, #tpu.memory_space<vmem>>, %arg23: memref<4x8x8xf32, #tpu.memory_space<vmem>>, %arg24: memref<4x8x8xf32, #tpu.memory_space<vmem>>) attributes {dimension_semantics = [#tpu.dimension_semantics<arbitrary>], iteration_bounds = array<i64: 1>, scalar_prefetch = 0 : i64, scratch_operands = 0 : i64, tpu.core_type = #tpu.core_type<tc>, window_params = [{pipeline_mode = #tpu.pipeline_mode<synchronous>, transform_indices = @transform_0, window_bounds = array<i64: 4, 8, 16>}, {pipeline_mode = #tpu.pipeline_mode<synchronous>, transform_indices = @transform_1, window_bounds = array<i64: 4, 8, 8>}, {pipeline_mode = #tpu.pipeline_mode<synchronous>, transform_indices = @transform_2, window_bounds = array<i64: 16, 32>}, {pipeline_mode = #tpu.pipeline_mode<synchronous>, transform_indices = @transform_3, window_bounds = array<i64: 16, 32>}, {pipeline_mode = #tpu.pipeline_mode<synchronous>, transform_indices = @transform_4, window_bounds = array<i64: 16, 32>}, {pipeline_mode = #tpu.pipeline_mode<synchronous>, transform_indices = @transform_5, window_bounds = array<i64: 32, 32>}, {pipeline_mode = #tpu.pipeline_mode<synchronous>, transform_indices = @transform_6, window_bounds = array<i64: 32, 32>}, {pipeline_mode = #tpu.pipeline_mode<synchronous>, transform_indices = @transform_7, window_bounds = array<i64: 32, 32>}, {pipeline_mode = #tpu.pipeline_mode<synchronous>, transform_indices = @transform_8, window_bounds = array<i64: 1, 32>}, {pipeline_mode = #tpu.pipeline_mode<synchronous>, transform_indices = @transform_9, window_bounds = array<i64: 1, 32>}, {pipeline_mode = #tpu.pipeline_mode<synchronous>, transform_indices = @transform_10, window_bounds = array<i64: 1, 32>}, {pipeline_mode = #tpu.pipeline_mode<synchronous>, transform_indices = @transform_11, window_bounds = array<i64: 1, 32>}, {pipeline_mode = #tpu.pipeline_mode<synchronous>, transform_indices = @transform_12, window_bounds = array<i64: 32, 32>}, {pipeline_mode = #tpu.pipeline_mode<synchronous>, transform_indices = @transform_13, window_bounds = array<i64: 1, 32>}, {pipeline_mode = #tpu.pipeline_mode<synchronous>, transform_indices = @transform_14, window_bounds = array<i64: 32, 8>}, {pipeline_mode = #tpu.pipeline_mode<synchronous>, transform_indices = @transform_15, window_bounds = array<i64: 1, 8>}, {pipeline_mode = #tpu.pipeline_mode<synchronous>, transform_indices = @transform_16, window_bounds = array<i64: 32, 8>}, {pipeline_mode = #tpu.pipeline_mode<synchronous>, transform_indices = @transform_17, window_bounds = array<i64: 1, 8>}, {pipeline_mode = #tpu.pipeline_mode<synchronous>, transform_indices = @transform_18, window_bounds = array<i64: 8, 2, 8>}, {pipeline_mode = #tpu.pipeline_mode<synchronous>, transform_indices = @transform_19, window_bounds = array<i64: 8, 2, 1>}, {pipeline_mode = #tpu.pipeline_mode<synchronous>, transform_indices = @transform_20, window_bounds = array<i64: 8, 2, 8>}, {pipeline_mode = #tpu.pipeline_mode<synchronous>, transform_indices = @transform_21, window_bounds = array<i64: 4, 8, 8>}, {pipeline_mode = #tpu.pipeline_mode<synchronous>, transform_indices = @transform_22, window_bounds = array<i64: 4, 8, 8>}, {pipeline_mode = #tpu.pipeline_mode<synchronous>, transform_indices = @transform_23, window_bounds = array<i64: 4, 8, 8>}]} {
    %c0 = arith.constant 0 : index
    %c0_0 = arith.constant 0 : index
    %c0_1 = arith.constant 0 : index
    %0 = vector.load %arg1[%c0, %c0_0, %c0_1] : memref<4x8x16xf32, #tpu.memory_space<vmem>>, vector<4x8x16xf32>
    %c0_2 = arith.constant 0 : index
    %c0_3 = arith.constant 0 : index
    %c0_4 = arith.constant 0 : index
    %1 = vector.load %arg2[%c0_2, %c0_3, %c0_4] : memref<4x8x8xf32, #tpu.memory_space<vmem>>, vector<4x8x8xf32>
    %c0_5 = arith.constant 0 : index
    %c0_6 = arith.constant 0 : index
    %2 = vector.load %arg3[%c0_5, %c0_6] : memref<16x32xf32, #tpu.memory_space<vmem>>, vector<16x32xf32>
    %c0_7 = arith.constant 0 : index
    %c0_8 = arith.constant 0 : index
    %3 = vector.load %arg4[%c0_7, %c0_8] : memref<16x32xf32, #tpu.memory_space<vmem>>, vector<16x32xf32>
    %c0_9 = arith.constant 0 : index
    %c0_10 = arith.constant 0 : index
    %4 = vector.load %arg5[%c0_9, %c0_10] : memref<16x32xf32, #tpu.memory_space<vmem>>, vector<16x32xf32>
    %c0_11 = arith.constant 0 : index
    %c0_12 = arith.constant 0 : index
    %5 = vector.load %arg6[%c0_11, %c0_12] : memref<32x32xf32, #tpu.memory_space<vmem>>, vector<32x32xf32>
    %c0_13 = arith.constant 0 : index
    %c0_14 = arith.constant 0 : index
    %6 = vector.load %arg7[%c0_13, %c0_14] : memref<32x32xf32, #tpu.memory_space<vmem>>, vector<32x32xf32>
    %c0_15 = arith.constant 0 : index
    %c0_16 = arith.constant 0 : index
    %7 = vector.load %arg8[%c0_15, %c0_16] : memref<32x32xf32, #tpu.memory_space<vmem>>, vector<32x32xf32>
    %c0_17 = arith.constant 0 : index
    %c0_18 = arith.constant 0 : index
    %8 = vector.load %arg9[%c0_17, %c0_18] : memref<1x32xf32, #tpu.memory_space<vmem>>, vector<1x32xf32>
    %9 = vector.shape_cast %8 : vector<1x32xf32> to vector<1x32xf32>
    %10 = vector.broadcast %9 : vector<1x32xf32> to vector<4x32xf32>
    %c0_19 = arith.constant 0 : index
    %c0_20 = arith.constant 0 : index
    %11 = vector.load %arg10[%c0_19, %c0_20] : memref<1x32xf32, #tpu.memory_space<vmem>>, vector<1x32xf32>
    %12 = vector.shape_cast %11 : vector<1x32xf32> to vector<1x32xf32>
    %13 = vector.broadcast %12 : vector<1x32xf32> to vector<4x32xf32>
    %c0_21 = arith.constant 0 : index
    %c0_22 = arith.constant 0 : index
    %14 = vector.load %arg11[%c0_21, %c0_22] : memref<1x32xf32, #tpu.memory_space<vmem>>, vector<1x32xf32>
    %15 = vector.shape_cast %14 : vector<1x32xf32> to vector<1x32xf32>
    %16 = vector.broadcast %15 : vector<1x32xf32> to vector<4x32xf32>
    %c0_23 = arith.constant 0 : index
    %c0_24 = arith.constant 0 : index
    %17 = vector.load %arg12[%c0_23, %c0_24] : memref<1x32xf32, #tpu.memory_space<vmem>>, vector<1x32xf32>
    %18 = vector.shape_cast %17 : vector<1x32xf32> to vector<1x32xf32>
    %19 = vector.broadcast %18 : vector<1x32xf32> to vector<4x32xf32>
    %c0_25 = arith.constant 0 : index
    %c0_26 = arith.constant 0 : index
    %20 = vector.load %arg13[%c0_25, %c0_26] : memref<32x32xf32, #tpu.memory_space<vmem>>, vector<32x32xf32>
    %c0_27 = arith.constant 0 : index
    %c0_28 = arith.constant 0 : index
    %21 = vector.load %arg14[%c0_27, %c0_28] : memref<1x32xf32, #tpu.memory_space<vmem>>, vector<1x32xf32>
    %22 = vector.shape_cast %21 : vector<1x32xf32> to vector<1x32xf32>
    %23 = vector.broadcast %22 : vector<1x32xf32> to vector<4x32xf32>
    %c0_29 = arith.constant 0 : index
    %c0_30 = arith.constant 0 : index
    %24 = vector.load %arg15[%c0_29, %c0_30] : memref<32x8xf32, #tpu.memory_space<vmem>>, vector<32x8xf32>
    %c0_31 = arith.constant 0 : index
    %c0_32 = arith.constant 0 : index
    %25 = vector.load %arg16[%c0_31, %c0_32] : memref<1x8xf32, #tpu.memory_space<vmem>>, vector<1x8xf32>
    %26 = vector.shape_cast %25 : vector<1x8xf32> to vector<1x8xf32>
    %27 = vector.broadcast %26 : vector<1x8xf32> to vector<4x8xf32>
    %c0_33 = arith.constant 0 : index
    %c0_34 = arith.constant 0 : index
    %28 = vector.load %arg17[%c0_33, %c0_34] : memref<32x8xf32, #tpu.memory_space<vmem>>, vector<32x8xf32>
    %c0_35 = arith.constant 0 : index
    %c0_36 = arith.constant 0 : index
    %29 = vector.load %arg18[%c0_35, %c0_36] : memref<1x8xf32, #tpu.memory_space<vmem>>, vector<1x8xf32>
    %30 = vector.shape_cast %29 : vector<1x8xf32> to vector<1x8xf32>
    %31 = vector.broadcast %30 : vector<1x8xf32> to vector<4x8xf32>
    %c0_37 = arith.constant 0 : index
    %c0_38 = arith.constant 0 : index
    %c0_39 = arith.constant 0 : index
    %32 = vector.load %arg19[%c0_37, %c0_38, %c0_39] : memref<8x2x8xf32, #tpu.memory_space<vmem>>, vector<8x2x8xf32>
    %c0_40 = arith.constant 0 : index
    %c0_41 = arith.constant 0 : index
    %c0_42 = arith.constant 0 : index
    %33 = vector.load %arg20[%c0_40, %c0_41, %c0_42] : memref<8x2x1xf32, #tpu.memory_space<vmem>>, vector<8x2x1xf32>
    %c0_43 = arith.constant 0 : index
    %c0_44 = arith.constant 0 : index
    %c0_45 = arith.constant 0 : index
    %34 = vector.load %arg21[%c0_43, %c0_44, %c0_45] : memref<8x2x8xf32, #tpu.memory_space<vmem>>, vector<8x2x8xf32>
    %cst = arith.constant 0.000000e+00 : f32
    %35 = vector.broadcast %cst : f32 to vector<4x32xf32>
    %36 = vector.extract_strided_slice %0 {offsets = [0, 0, 0], sizes = [4, 1, 16], strides = [1, 1, 1]} : vector<4x8x16xf32> to vector<4x1x16xf32>
    %37 = vector.shape_cast %36 : vector<4x1x16xf32> to vector<4x16xf32>
    %cst_46 = arith.constant dense<0.000000e+00> : vector<4x32xf32>
    %38 = tpu.matmul %37, %2, %cst_46 {dimension_numbers = #tpu.dot_dimension_numbers<[1], [0], [0], [1], [0, 0, 1, 1], [], []>} : vector<4x16xf32>, vector<16x32xf32>, vector<4x32xf32> -> vector<4x32xf32>
    %cst_47 = arith.constant dense<0.000000e+00> : vector<4x32xf32>
    %39 = tpu.matmul %35, %5, %cst_47 {dimension_numbers = #tpu.dot_dimension_numbers<[1], [0], [0], [1], [0, 0, 1, 1], [], []>} : vector<4x32xf32>, vector<32x32xf32>, vector<4x32xf32> -> vector<4x32xf32>
    %40 = arith.addf %38, %39 : vector<4x32xf32>
    %41 = arith.addf %40, %10 : vector<4x32xf32>
    %42 = arith.negf %41 : vector<4x32xf32>
    %43 = math.exp %42 : vector<4x32xf32>
    %cst_48 = arith.constant 1.000000e+00 : f32
    %44 = vector.broadcast %cst_48 : f32 to vector<4x32xf32>
    %45 = arith.addf %44, %43 : vector<4x32xf32>
    %46 = arith.divf %44, %45 : vector<4x32xf32>
    %cst_49 = arith.constant dense<0.000000e+00> : vector<4x32xf32>
    %47 = tpu.matmul %37, %3, %cst_49 {dimension_numbers = #tpu.dot_dimension_numbers<[1], [0], [0], [1], [0, 0, 1, 1], [], []>} : vector<4x16xf32>, vector<16x32xf32>, vector<4x32xf32> -> vector<4x32xf32>
    %cst_50 = arith.constant dense<0.000000e+00> : vector<4x32xf32>
    %48 = tpu.matmul %35, %6, %cst_50 {dimension_numbers = #tpu.dot_dimension_numbers<[1], [0], [0], [1], [0, 0, 1, 1], [], []>} : vector<4x32xf32>, vector<32x32xf32>, vector<4x32xf32> -> vector<4x32xf32>
    %49 = arith.addf %47, %48 : vector<4x32xf32>
    %50 = arith.addf %49, %13 : vector<4x32xf32>
    %51 = arith.negf %50 : vector<4x32xf32>
    %52 = math.exp %51 : vector<4x32xf32>
    %cst_51 = arith.constant 1.000000e+00 : f32
    %53 = vector.broadcast %cst_51 : f32 to vector<4x32xf32>
    %54 = arith.addf %53, %52 : vector<4x32xf32>
    %55 = arith.divf %53, %54 : vector<4x32xf32>
    %cst_52 = arith.constant dense<0.000000e+00> : vector<4x32xf32>
    %56 = tpu.matmul %37, %4, %cst_52 {dimension_numbers = #tpu.dot_dimension_numbers<[1], [0], [0], [1], [0, 0, 1, 1], [], []>} : vector<4x16xf32>, vector<16x32xf32>, vector<4x32xf32> -> vector<4x32xf32>
    %57 = arith.addf %56, %16 : vector<4x32xf32>
    %cst_53 = arith.constant dense<0.000000e+00> : vector<4x32xf32>
    %58 = tpu.matmul %35, %7, %cst_53 {dimension_numbers = #tpu.dot_dimension_numbers<[1], [0], [0], [1], [0, 0, 1, 1], [], []>} : vector<4x32xf32>, vector<32x32xf32>, vector<4x32xf32> -> vector<4x32xf32>
    %59 = arith.addf %58, %19 : vector<4x32xf32>
    %60 = arith.mulf %46, %59 : vector<4x32xf32>
    %61 = arith.addf %57, %60 : vector<4x32xf32>
    %62 = math.tanh %61 : vector<4x32xf32>
    %cst_54 = arith.constant 1.000000e+00 : f32
    %63 = vector.broadcast %cst_54 : f32 to vector<4x32xf32>
    %64 = arith.subf %63, %55 : vector<4x32xf32>
    %65 = arith.mulf %64, %62 : vector<4x32xf32>
    %66 = arith.mulf %55, %35 : vector<4x32xf32>
    %67 = arith.addf %65, %66 : vector<4x32xf32>
    %cst_55 = arith.constant dense<0.000000e+00> : vector<4x32xf32>
    %68 = tpu.matmul %67, %20, %cst_55 {dimension_numbers = #tpu.dot_dimension_numbers<[1], [0], [0], [1], [0, 0, 1, 1], [], []>} : vector<4x32xf32>, vector<32x32xf32>, vector<4x32xf32> -> vector<4x32xf32>
    %69 = arith.addf %68, %23 : vector<4x32xf32>
    %cst_56 = arith.constant 0.000000e+00 : f32
    %70 = vector.broadcast %cst_56 : f32 to vector<4x32xf32>
    %71 = arith.maximumf %69, %70 : vector<4x32xf32>
    %cst_57 = arith.constant dense<0.000000e+00> : vector<4x8xf32>
    %72 = tpu.matmul %71, %24, %cst_57 {dimension_numbers = #tpu.dot_dimension_numbers<[1], [0], [0], [1], [0, 0, 1, 1], [], []>} : vector<4x32xf32>, vector<32x8xf32>, vector<4x8xf32> -> vector<4x8xf32>
    %73 = arith.addf %72, %27 : vector<4x8xf32>
    %74 = arith.negf %73 : vector<4x8xf32>
    %75 = math.exp %74 : vector<4x8xf32>
    %cst_58 = arith.constant 1.000000e+00 : f32
    %76 = vector.broadcast %cst_58 : f32 to vector<4x8xf32>
    %77 = arith.addf %76, %75 : vector<4x8xf32>
    %78 = arith.divf %76, %77 : vector<4x8xf32>
    %cst_59 = arith.constant dense<0.000000e+00> : vector<4x8xf32>
    %79 = tpu.matmul %71, %28, %cst_59 {dimension_numbers = #tpu.dot_dimension_numbers<[1], [0], [0], [1], [0, 0, 1, 1], [], []>} : vector<4x32xf32>, vector<32x8xf32>, vector<4x8xf32> -> vector<4x8xf32>
    %80 = arith.addf %79, %31 : vector<4x8xf32>
    %cst_60 = arith.constant 2.000000e+01 : f32
    %81 = vector.broadcast %cst_60 : f32 to vector<4x8xf32>
    %82 = arith.cmpf ogt, %80, %81 : vector<4x8xf32>
    %cst_61 = arith.constant 2.000000e+01 : f32
    %83 = vector.broadcast %cst_61 : f32 to vector<4x8xf32>
    %84 = arith.minimumf %80, %83 : vector<4x8xf32>
    %85 = math.exp %84 : vector<4x8xf32>
    %86 = math.log1p %85 : vector<4x8xf32>
    %87 = arith.select %82, %80, %86 : vector<4x8xi1>, vector<4x8xf32>
    %88 = vector.extract_strided_slice %1 {offsets = [0, 0, 0], sizes = [4, 1, 8], strides = [1, 1, 1]} : vector<4x8x8xf32> to vector<4x1x8xf32>
    %89 = vector.shape_cast %88 : vector<4x1x8xf32> to vector<4x8xf32>
    %90 = arith.mulf %89, %87 : vector<4x8xf32>
    %91 = arith.addf %90, %78 : vector<4x8xf32>
    %92 = vector.extract_strided_slice %32 {offsets = [0, 0, 0], sizes = [1, 2, 8], strides = [1, 1, 1]} : vector<8x2x8xf32> to vector<1x2x8xf32>
    %93 = vector.shape_cast %92 : vector<1x2x8xf32> to vector<2x8xf32>
    %94 = vector.extract_strided_slice %33 {offsets = [0, 0, 0], sizes = [1, 2, 1], strides = [1, 1, 1]} : vector<8x2x1xf32> to vector<1x2x1xf32>
    %95 = vector.shape_cast %94 : vector<1x2x1xf32> to vector<2x1xf32>
    %96 = vector.extract_strided_slice %34 {offsets = [0, 0, 0], sizes = [1, 2, 8], strides = [1, 1, 1]} : vector<8x2x8xf32> to vector<1x2x8xf32>
    %97 = vector.shape_cast %96 : vector<1x2x8xf32> to vector<2x8xf32>
    %98 = vector.extract_strided_slice %93 {offsets = [0, 0], sizes = [1, 8], strides = [1, 1]} : vector<2x8xf32> to vector<1x8xf32>
    %99 = vector.broadcast %98 : vector<1x8xf32> to vector<4x8xf32>
    %100 = arith.mulf %91, %99 : vector<4x8xf32>
    %cst_62 = arith.constant dense<0.000000e+00> : vector<4xf32>
    %101 = vector.multi_reduction <add>, %100, %cst_62 [1] : vector<4x8xf32> to vector<4xf32>
    %102 = vector.shape_cast %101 : vector<4xf32> to vector<4x1xf32>
    %103 = vector.extract_strided_slice %97 {offsets = [0, 0], sizes = [1, 8], strides = [1, 1]} : vector<2x8xf32> to vector<1x8xf32>
    %104 = vector.extract_strided_slice %95 {offsets = [0, 0], sizes = [1, 1], strides = [1, 1]} : vector<2x1xf32> to vector<1x1xf32>
    %105 = vector.broadcast %104 : vector<1x1xf32> to vector<4x1xf32>
    %106 = arith.addf %102, %105 : vector<4x1xf32>
    %107 = math.tanh %106 : vector<4x1xf32>
    %108 = vector.broadcast %103 : vector<1x8xf32> to vector<4x8xf32>
    %109 = vector.broadcast %107 : vector<4x1xf32> to vector<4x8xf32>
    %110 = arith.mulf %108, %109 : vector<4x8xf32>
    %111 = arith.addf %91, %110 : vector<4x8xf32>
    %112 = vector.extract_strided_slice %93 {offsets = [1, 0], sizes = [1, 8], strides = [1, 1]} : vector<2x8xf32> to vector<1x8xf32>
    %113 = vector.broadcast %112 : vector<1x8xf32> to vector<4x8xf32>
    %114 = arith.mulf %111, %113 : vector<4x8xf32>
    %cst_63 = arith.constant dense<0.000000e+00> : vector<4xf32>
    %115 = vector.multi_reduction <add>, %114, %cst_63 [1] : vector<4x8xf32> to vector<4xf32>
    %116 = vector.shape_cast %115 : vector<4xf32> to vector<4x1xf32>
    %117 = vector.extract_strided_slice %97 {offsets = [1, 0], sizes = [1, 8], strides = [1, 1]} : vector<2x8xf32> to vector<1x8xf32>
    %118 = vector.extract_strided_slice %95 {offsets = [1, 0], sizes = [1, 1], strides = [1, 1]} : vector<2x1xf32> to vector<1x1xf32>
    %119 = vector.broadcast %118 : vector<1x1xf32> to vector<4x1xf32>
    %120 = arith.addf %116, %119 : vector<4x1xf32>
    %121 = math.tanh %120 : vector<4x1xf32>
    %122 = vector.broadcast %117 : vector<1x8xf32> to vector<4x8xf32>
    %123 = vector.broadcast %121 : vector<4x1xf32> to vector<4x8xf32>
    %124 = arith.mulf %122, %123 : vector<4x8xf32>
    %125 = arith.addf %111, %124 : vector<4x8xf32>
    %126 = vector.shape_cast %125 : vector<4x8xf32> to vector<4x1x8xf32>
    %c0_64 = arith.constant 0 : index
    %c0_65 = arith.constant 0 : index
    %c0_66 = arith.constant 0 : index
    %127 = vector.load %arg22[%c0_64, %c0_65, %c0_66] : memref<4x8x8xf32, #tpu.memory_space<vmem>>, vector<4x1x8xf32>
    tpu.vector_store %arg22[%c0_64, %c0_65, %c0_66], %126 {strides = array<i32>} : memref<4x8x8xf32, #tpu.memory_space<vmem>>, vector<4x1x8xf32>,
    %128 = vector.shape_cast %78 : vector<4x8xf32> to vector<4x1x8xf32>
    %c0_67 = arith.constant 0 : index
    %c0_68 = arith.constant 0 : index
    %c0_69 = arith.constant 0 : index
    %129 = vector.load %arg23[%c0_67, %c0_68, %c0_69] : memref<4x8x8xf32, #tpu.memory_space<vmem>>, vector<4x1x8xf32>
    tpu.vector_store %arg23[%c0_67, %c0_68, %c0_69], %128 {strides = array<i32>} : memref<4x8x8xf32, #tpu.memory_space<vmem>>, vector<4x1x8xf32>,
    %130 = vector.shape_cast %87 : vector<4x8xf32> to vector<4x1x8xf32>
    %c0_70 = arith.constant 0 : index
    %c0_71 = arith.constant 0 : index
    %c0_72 = arith.constant 0 : index
    %131 = vector.load %arg24[%c0_70, %c0_71, %c0_72] : memref<4x8x8xf32, #tpu.memory_space<vmem>>, vector<4x1x8xf32>
    tpu.vector_store %arg24[%c0_70, %c0_71, %c0_72], %130 {strides = array<i32>} : memref<4x8x8xf32, #tpu.memory_space<vmem>>, vector<4x1x8xf32>,
    %132 = vector.extract_strided_slice %0 {offsets = [0, 1, 0], sizes = [4, 1, 16], strides = [1, 1, 1]} : vector<4x8x16xf32> to vector<4x1x16xf32>
    %133 = vector.shape_cast %132 : vector<4x1x16xf32> to vector<4x16xf32>
    %cst_73 = arith.constant dense<0.000000e+00> : vector<4x32xf32>
    %134 = tpu.matmul %133, %2, %cst_73 {dimension_numbers = #tpu.dot_dimension_numbers<[1], [0], [0], [1], [0, 0, 1, 1], [], []>} : vector<4x16xf32>, vector<16x32xf32>, vector<4x32xf32> -> vector<4x32xf32>
    %cst_74 = arith.constant dense<0.000000e+00> : vector<4x32xf32>
    %135 = tpu.matmul %67, %5, %cst_74 {dimension_numbers = #tpu.dot_dimension_numbers<[1], [0], [0], [1], [0, 0, 1, 1], [], []>} : vector<4x32xf32>, vector<32x32xf32>, vector<4x32xf32> -> vector<4x32xf32>
    %136 = arith.addf %134, %135 : vector<4x32xf32>
    %137 = arith.addf %136, %10 : vector<4x32xf32>
    %138 = arith.negf %137 : vector<4x32xf32>
    %139 = math.exp %138 : vector<4x32xf32>
    %cst_75 = arith.constant 1.000000e+00 : f32
    %140 = vector.broadcast %cst_75 : f32 to vector<4x32xf32>
    %141 = arith.addf %140, %139 : vector<4x32xf32>
    %142 = arith.divf %140, %141 : vector<4x32xf32>
    %cst_76 = arith.constant dense<0.000000e+00> : vector<4x32xf32>
    %143 = tpu.matmul %133, %3, %cst_76 {dimension_numbers = #tpu.dot_dimension_numbers<[1], [0], [0], [1], [0, 0, 1, 1], [], []>} : vector<4x16xf32>, vector<16x32xf32>, vector<4x32xf32> -> vector<4x32xf32>
    %cst_77 = arith.constant dense<0.000000e+00> : vector<4x32xf32>
    %144 = tpu.matmul %67, %6, %cst_77 {dimension_numbers = #tpu.dot_dimension_numbers<[1], [0], [0], [1], [0, 0, 1, 1], [], []>} : vector<4x32xf32>, vector<32x32xf32>, vector<4x32xf32> -> vector<4x32xf32>
    %145 = arith.addf %143, %144 : vector<4x32xf32>
    %146 = arith.addf %145, %13 : vector<4x32xf32>
    %147 = arith.negf %146 : vector<4x32xf32>
    %148 = math.exp %147 : vector<4x32xf32>
    %cst_78 = arith.constant 1.000000e+00 : f32
    %149 = vector.broadcast %cst_78 : f32 to vector<4x32xf32>
    %150 = arith.addf %149, %148 : vector<4x32xf32>
    %151 = arith.divf %149, %150 : vector<4x32xf32>
    %cst_79 = arith.constant dense<0.000000e+00> : vector<4x32xf32>
    %152 = tpu.matmul %133, %4, %cst_79 {dimension_numbers = #tpu.dot_dimension_numbers<[1], [0], [0], [1], [0, 0, 1, 1], [], []>} : vector<4x16xf32>, vector<16x32xf32>, vector<4x32xf32> -> vector<4x32xf32>
    %153 = arith.addf %152, %16 : vector<4x32xf32>
    %cst_80 = arith.constant dense<0.000000e+00> : vector<4x32xf32>
    %154 = tpu.matmul %67, %7, %cst_80 {dimension_numbers = #tpu.dot_dimension_numbers<[1], [0], [0], [1], [0, 0, 1, 1], [], []>} : vector<4x32xf32>, vector<32x32xf32>, vector<4x32xf32> -> vector<4x32xf32>
    %155 = arith.addf %154, %19 : vector<4x32xf32>
    %156 = arith.mulf %142, %155 : vector<4x32xf32>
    %157 = arith.addf %153, %156 : vector<4x32xf32>
    %158 = math.tanh %157 : vector<4x32xf32>
    %cst_81 = arith.constant 1.000000e+00 : f32
    %159 = vector.broadcast %cst_81 : f32 to vector<4x32xf32>
    %160 = arith.subf %159, %151 : vector<4x32xf32>
    %161 = arith.mulf %160, %158 : vector<4x32xf32>
    %162 = arith.mulf %151, %67 : vector<4x32xf32>
    %163 = arith.addf %161, %162 : vector<4x32xf32>
    %cst_82 = arith.constant dense<0.000000e+00> : vector<4x32xf32>
    %164 = tpu.matmul %163, %20, %cst_82 {dimension_numbers = #tpu.dot_dimension_numbers<[1], [0], [0], [1], [0, 0, 1, 1], [], []>} : vector<4x32xf32>, vector<32x32xf32>, vector<4x32xf32> -> vector<4x32xf32>
    %165 = arith.addf %164, %23 : vector<4x32xf32>
    %cst_83 = arith.constant 0.000000e+00 : f32
    %166 = vector.broadcast %cst_83 : f32 to vector<4x32xf32>
    %167 = arith.maximumf %165, %166 : vector<4x32xf32>
    %cst_84 = arith.constant dense<0.000000e+00> : vector<4x8xf32>
    %168 = tpu.matmul %167, %24, %cst_84 {dimension_numbers = #tpu.dot_dimension_numbers<[1], [0], [0], [1], [0, 0, 1, 1], [], []>} : vector<4x32xf32>, vector<32x8xf32>, vector<4x8xf32> -> vector<4x8xf32>
    %169 = arith.addf %168, %27 : vector<4x8xf32>
    %170 = arith.negf %169 : vector<4x8xf32>
    %171 = math.exp %170 : vector<4x8xf32>
    %cst_85 = arith.constant 1.000000e+00 : f32
    %172 = vector.broadcast %cst_85 : f32 to vector<4x8xf32>
    %173 = arith.addf %172, %171 : vector<4x8xf32>
    %174 = arith.divf %172, %173 : vector<4x8xf32>
    %cst_86 = arith.constant dense<0.000000e+00> : vector<4x8xf32>
    %175 = tpu.matmul %167, %28, %cst_86 {dimension_numbers = #tpu.dot_dimension_numbers<[1], [0], [0], [1], [0, 0, 1, 1], [], []>} : vector<4x32xf32>, vector<32x8xf32>, vector<4x8xf32> -> vector<4x8xf32>
    %176 = arith.addf %175, %31 : vector<4x8xf32>
    %cst_87 = arith.constant 2.000000e+01 : f32
    %177 = vector.broadcast %cst_87 : f32 to vector<4x8xf32>
    %178 = arith.cmpf ogt, %176, %177 : vector<4x8xf32>
    %cst_88 = arith.constant 2.000000e+01 : f32
    %179 = vector.broadcast %cst_88 : f32 to vector<4x8xf32>
    %180 = arith.minimumf %176, %179 : vector<4x8xf32>
    %181 = math.exp %180 : vector<4x8xf32>
    %182 = math.log1p %181 : vector<4x8xf32>
    %183 = arith.select %178, %176, %182 : vector<4x8xi1>, vector<4x8xf32>
    %184 = vector.extract_strided_slice %1 {offsets = [0, 1, 0], sizes = [4, 1, 8], strides = [1, 1, 1]} : vector<4x8x8xf32> to vector<4x1x8xf32>
    %185 = vector.shape_cast %184 : vector<4x1x8xf32> to vector<4x8xf32>
    %186 = arith.mulf %185, %183 : vector<4x8xf32>
    %187 = arith.addf %186, %174 : vector<4x8xf32>
    %188 = vector.extract_strided_slice %32 {offsets = [1, 0, 0], sizes = [1, 2, 8], strides = [1, 1, 1]} : vector<8x2x8xf32> to vector<1x2x8xf32>
    %189 = vector.shape_cast %188 : vector<1x2x8xf32> to vector<2x8xf32>
    %190 = vector.extract_strided_slice %33 {offsets = [1, 0, 0], sizes = [1, 2, 1], strides = [1, 1, 1]} : vector<8x2x1xf32> to vector<1x2x1xf32>
    %191 = vector.shape_cast %190 : vector<1x2x1xf32> to vector<2x1xf32>
    %192 = vector.extract_strided_slice %34 {offsets = [1, 0, 0], sizes = [1, 2, 8], strides = [1, 1, 1]} : vector<8x2x8xf32> to vector<1x2x8xf32>
    %193 = vector.shape_cast %192 : vector<1x2x8xf32> to vector<2x8xf32>
    %194 = vector.extract_strided_slice %189 {offsets = [0, 0], sizes = [1, 8], strides = [1, 1]} : vector<2x8xf32> to vector<1x8xf32>
    %195 = vector.broadcast %194 : vector<1x8xf32> to vector<4x8xf32>
    %196 = arith.mulf %187, %195 : vector<4x8xf32>
    %cst_89 = arith.constant dense<0.000000e+00> : vector<4xf32>
    %197 = vector.multi_reduction <add>, %196, %cst_89 [1] : vector<4x8xf32> to vector<4xf32>
    %198 = vector.shape_cast %197 : vector<4xf32> to vector<4x1xf32>
    %199 = vector.extract_strided_slice %193 {offsets = [0, 0], sizes = [1, 8], strides = [1, 1]} : vector<2x8xf32> to vector<1x8xf32>
    %200 = vector.extract_strided_slice %191 {offsets = [0, 0], sizes = [1, 1], strides = [1, 1]} : vector<2x1xf32> to vector<1x1xf32>
    %201 = vector.broadcast %200 : vector<1x1xf32> to vector<4x1xf32>
    %202 = arith.addf %198, %201 : vector<4x1xf32>
    %203 = math.tanh %202 : vector<4x1xf32>
    %204 = vector.broadcast %199 : vector<1x8xf32> to vector<4x8xf32>
    %205 = vector.broadcast %203 : vector<4x1xf32> to vector<4x8xf32>
    %206 = arith.mulf %204, %205 : vector<4x8xf32>
    %207 = arith.addf %187, %206 : vector<4x8xf32>
    %208 = vector.extract_strided_slice %189 {offsets = [1, 0], sizes = [1, 8], strides = [1, 1]} : vector<2x8xf32> to vector<1x8xf32>
    %209 = vector.broadcast %208 : vector<1x8xf32> to vector<4x8xf32>
    %210 = arith.mulf %207, %209 : vector<4x8xf32>
    %cst_90 = arith.constant dense<0.000000e+00> : vector<4xf32>
    %211 = vector.multi_reduction <add>, %210, %cst_90 [1] : vector<4x8xf32> to vector<4xf32>
    %212 = vector.shape_cast %211 : vector<4xf32> to vector<4x1xf32>
    %213 = vector.extract_strided_slice %193 {offsets = [1, 0], sizes = [1, 8], strides = [1, 1]} : vector<2x8xf32> to vector<1x8xf32>
    %214 = vector.extract_strided_slice %191 {offsets = [1, 0], sizes = [1, 1], strides = [1, 1]} : vector<2x1xf32> to vector<1x1xf32>
    %215 = vector.broadcast %214 : vector<1x1xf32> to vector<4x1xf32>
    %216 = arith.addf %212, %215 : vector<4x1xf32>
    %217 = math.tanh %216 : vector<4x1xf32>
    %218 = vector.broadcast %213 : vector<1x8xf32> to vector<4x8xf32>
    %219 = vector.broadcast %217 : vector<4x1xf32> to vector<4x8xf32>
    %220 = arith.mulf %218, %219 : vector<4x8xf32>
    %221 = arith.addf %207, %220 : vector<4x8xf32>
    %222 = vector.shape_cast %221 : vector<4x8xf32> to vector<4x1x8xf32>
    %c0_91 = arith.constant 0 : index
    %c1 = arith.constant 1 : index
    %c0_92 = arith.constant 0 : index
    %223 = vector.load %arg22[%c0_91, %c1, %c0_92] : memref<4x8x8xf32, #tpu.memory_space<vmem>>, vector<4x1x8xf32>
    tpu.vector_store %arg22[%c0_91, %c1, %c0_92], %222 {strides = array<i32>} : memref<4x8x8xf32, #tpu.memory_space<vmem>>, vector<4x1x8xf32>,
    %224 = vector.shape_cast %174 : vector<4x8xf32> to vector<4x1x8xf32>
    %c0_93 = arith.constant 0 : index
    %c1_94 = arith.constant 1 : index
    %c0_95 = arith.constant 0 : index
    %225 = vector.load %arg23[%c0_93, %c1_94, %c0_95] : memref<4x8x8xf32, #tpu.memory_space<vmem>>, vector<4x1x8xf32>
    tpu.vector_store %arg23[%c0_93, %c1_94, %c0_95], %224 {strides = array<i32>} : memref<4x8x8xf32, #tpu.memory_space<vmem>>, vector<4x1x8xf32>,
    %226 = vector.shape_cast %183 : vector<4x8xf32> to vector<4x1x8xf32>
    %c0_96 = arith.constant 0 : index
    %c1_97 = arith.constant 1 : index
    %c0_98 = arith.constant 0 : index
    %227 = vector.load %arg24[%c0_96, %c1_97, %c0_98] : memref<4x8x8xf32, #tpu.memory_space<vmem>>, vector<4x1x8xf32>
    tpu.vector_store %arg24[%c0_96, %c1_97, %c0_98], %226 {strides = array<i32>} : memref<4x8x8xf32, #tpu.memory_space<vmem>>, vector<4x1x8xf32>,
    %228 = vector.extract_strided_slice %0 {offsets = [0, 2, 0], sizes = [4, 1, 16], strides = [1, 1, 1]} : vector<4x8x16xf32> to vector<4x1x16xf32>
    %229 = vector.shape_cast %228 : vector<4x1x16xf32> to vector<4x16xf32>
    %cst_99 = arith.constant dense<0.000000e+00> : vector<4x32xf32>
    %230 = tpu.matmul %229, %2, %cst_99 {dimension_numbers = #tpu.dot_dimension_numbers<[1], [0], [0], [1], [0, 0, 1, 1], [], []>} : vector<4x16xf32>, vector<16x32xf32>, vector<4x32xf32> -> vector<4x32xf32>
    %cst_100 = arith.constant dense<0.000000e+00> : vector<4x32xf32>
    %231 = tpu.matmul %163, %5, %cst_100 {dimension_numbers = #tpu.dot_dimension_numbers<[1], [0], [0], [1], [0, 0, 1, 1], [], []>} : vector<4x32xf32>, vector<32x32xf32>, vector<4x32xf32> -> vector<4x32xf32>
    %232 = arith.addf %230, %231 : vector<4x32xf32>
    %233 = arith.addf %232, %10 : vector<4x32xf32>
    %234 = arith.negf %233 : vector<4x32xf32>
    %235 = math.exp %234 : vector<4x32xf32>
    %cst_101 = arith.constant 1.000000e+00 : f32
    %236 = vector.broadcast %cst_101 : f32 to vector<4x32xf32>
    %237 = arith.addf %236, %235 : vector<4x32xf32>
    %238 = arith.divf %236, %237 : vector<4x32xf32>
    %cst_102 = arith.constant dense<0.000000e+00> : vector<4x32xf32>
    %239 = tpu.matmul %229, %3, %cst_102 {dimension_numbers = #tpu.dot_dimension_numbers<[1], [0], [0], [1], [0, 0, 1, 1], [], []>} : vector<4x16xf32>, vector<16x32xf32>, vector<4x32xf32> -> vector<4x32xf32>
    %cst_103 = arith.constant dense<0.000000e+00> : vector<4x32xf32>
    %240 = tpu.matmul %163, %6, %cst_103 {dimension_numbers = #tpu.dot_dimension_numbers<[1], [0], [0], [1], [0, 0, 1, 1], [], []>} : vector<4x32xf32>, vector<32x32xf32>, vector<4x32xf32> -> vector<4x32xf32>
    %241 = arith.addf %239, %240 : vector<4x32xf32>
    %242 = arith.addf %241, %13 : vector<4x32xf32>
    %243 = arith.negf %242 : vector<4x32xf32>
    %244 = math.exp %243 : vector<4x32xf32>
    %cst_104 = arith.constant 1.000000e+00 : f32
    %245 = vector.broadcast %cst_104 : f32 to vector<4x32xf32>
    %246 = arith.addf %245, %244 : vector<4x32xf32>
    %247 = arith.divf %245, %246 : vector<4x32xf32>
    %cst_105 = arith.constant dense<0.000000e+00> : vector<4x32xf32>
    %248 = tpu.matmul %229, %4, %cst_105 {dimension_numbers = #tpu.dot_dimension_numbers<[1], [0], [0], [1], [0, 0, 1, 1], [], []>} : vector<4x16xf32>, vector<16x32xf32>, vector<4x32xf32> -> vector<4x32xf32>
    %249 = arith.addf %248, %16 : vector<4x32xf32>
    %cst_106 = arith.constant dense<0.000000e+00> : vector<4x32xf32>
    %250 = tpu.matmul %163, %7, %cst_106 {dimension_numbers = #tpu.dot_dimension_numbers<[1], [0], [0], [1], [0, 0, 1, 1], [], []>} : vector<4x32xf32>, vector<32x32xf32>, vector<4x32xf32> -> vector<4x32xf32>
    %251 = arith.addf %250, %19 : vector<4x32xf32>
    %252 = arith.mulf %238, %251 : vector<4x32xf32>
    %253 = arith.addf %249, %252 : vector<4x32xf32>
    %254 = math.tanh %253 : vector<4x32xf32>
    %cst_107 = arith.constant 1.000000e+00 : f32
    %255 = vector.broadcast %cst_107 : f32 to vector<4x32xf32>
    %256 = arith.subf %255, %247 : vector<4x32xf32>
    %257 = arith.mulf %256, %254 : vector<4x32xf32>
    %258 = arith.mulf %247, %163 : vector<4x32xf32>
    %259 = arith.addf %257, %258 : vector<4x32xf32>
    %cst_108 = arith.constant dense<0.000000e+00> : vector<4x32xf32>
    %260 = tpu.matmul %259, %20, %cst_108 {dimension_numbers = #tpu.dot_dimension_numbers<[1], [0], [0], [1], [0, 0, 1, 1], [], []>} : vector<4x32xf32>, vector<32x32xf32>, vector<4x32xf32> -> vector<4x32xf32>
    %261 = arith.addf %260, %23 : vector<4x32xf32>
    %cst_109 = arith.constant 0.000000e+00 : f32
    %262 = vector.broadcast %cst_109 : f32 to vector<4x32xf32>
    %263 = arith.maximumf %261, %262 : vector<4x32xf32>
    %cst_110 = arith.constant dense<0.000000e+00> : vector<4x8xf32>
    %264 = tpu.matmul %263, %24, %cst_110 {dimension_numbers = #tpu.dot_dimension_numbers<[1], [0], [0], [1], [0, 0, 1, 1], [], []>} : vector<4x32xf32>, vector<32x8xf32>, vector<4x8xf32> -> vector<4x8xf32>
    %265 = arith.addf %264, %27 : vector<4x8xf32>
    %266 = arith.negf %265 : vector<4x8xf32>
    %267 = math.exp %266 : vector<4x8xf32>
    %cst_111 = arith.constant 1.000000e+00 : f32
    %268 = vector.broadcast %cst_111 : f32 to vector<4x8xf32>
    %269 = arith.addf %268, %267 : vector<4x8xf32>
    %270 = arith.divf %268, %269 : vector<4x8xf32>
    %cst_112 = arith.constant dense<0.000000e+00> : vector<4x8xf32>
    %271 = tpu.matmul %263, %28, %cst_112 {dimension_numbers = #tpu.dot_dimension_numbers<[1], [0], [0], [1], [0, 0, 1, 1], [], []>} : vector<4x32xf32>, vector<32x8xf32>, vector<4x8xf32> -> vector<4x8xf32>
    %272 = arith.addf %271, %31 : vector<4x8xf32>
    %cst_113 = arith.constant 2.000000e+01 : f32
    %273 = vector.broadcast %cst_113 : f32 to vector<4x8xf32>
    %274 = arith.cmpf ogt, %272, %273 : vector<4x8xf32>
    %cst_114 = arith.constant 2.000000e+01 : f32
    %275 = vector.broadcast %cst_114 : f32 to vector<4x8xf32>
    %276 = arith.minimumf %272, %275 : vector<4x8xf32>
    %277 = math.exp %276 : vector<4x8xf32>
    %278 = math.log1p %277 : vector<4x8xf32>
    %279 = arith.select %274, %272, %278 : vector<4x8xi1>, vector<4x8xf32>
    %280 = vector.extract_strided_slice %1 {offsets = [0, 2, 0], sizes = [4, 1, 8], strides = [1, 1, 1]} : vector<4x8x8xf32> to vector<4x1x8xf32>
    %281 = vector.shape_cast %280 : vector<4x1x8xf32> to vector<4x8xf32>
    %282 = arith.mulf %281, %279 : vector<4x8xf32>
    %283 = arith.addf %282, %270 : vector<4x8xf32>
    %284 = vector.extract_strided_slice %32 {offsets = [2, 0, 0], sizes = [1, 2, 8], strides = [1, 1, 1]} : vector<8x2x8xf32> to vector<1x2x8xf32>
    %285 = vector.shape_cast %284 : vector<1x2x8xf32> to vector<2x8xf32>
    %286 = vector.extract_strided_slice %33 {offsets = [2, 0, 0], sizes = [1, 2, 1], strides = [1, 1, 1]} : vector<8x2x1xf32> to vector<1x2x1xf32>
    %287 = vector.shape_cast %286 : vector<1x2x1xf32> to vector<2x1xf32>
    %288 = vector.extract_strided_slice %34 {offsets = [2, 0, 0], sizes = [1, 2, 8], strides = [1, 1, 1]} : vector<8x2x8xf32> to vector<1x2x8xf32>
    %289 = vector.shape_cast %288 : vector<1x2x8xf32> to vector<2x8xf32>
    %290 = vector.extract_strided_slice %285 {offsets = [0, 0], sizes = [1, 8], strides = [1, 1]} : vector<2x8xf32> to vector<1x8xf32>
    %291 = vector.broadcast %290 : vector<1x8xf32> to vector<4x8xf32>
    %292 = arith.mulf %283, %291 : vector<4x8xf32>
    %cst_115 = arith.constant dense<0.000000e+00> : vector<4xf32>
    %293 = vector.multi_reduction <add>, %292, %cst_115 [1] : vector<4x8xf32> to vector<4xf32>
    %294 = vector.shape_cast %293 : vector<4xf32> to vector<4x1xf32>
    %295 = vector.extract_strided_slice %289 {offsets = [0, 0], sizes = [1, 8], strides = [1, 1]} : vector<2x8xf32> to vector<1x8xf32>
    %296 = vector.extract_strided_slice %287 {offsets = [0, 0], sizes = [1, 1], strides = [1, 1]} : vector<2x1xf32> to vector<1x1xf32>
    %297 = vector.broadcast %296 : vector<1x1xf32> to vector<4x1xf32>
    %298 = arith.addf %294, %297 : vector<4x1xf32>
    %299 = math.tanh %298 : vector<4x1xf32>
    %300 = vector.broadcast %295 : vector<1x8xf32> to vector<4x8xf32>
    %301 = vector.broadcast %299 : vector<4x1xf32> to vector<4x8xf32>
    %302 = arith.mulf %300, %301 : vector<4x8xf32>
    %303 = arith.addf %283, %302 : vector<4x8xf32>
    %304 = vector.extract_strided_slice %285 {offsets = [1, 0], sizes = [1, 8], strides = [1, 1]} : vector<2x8xf32> to vector<1x8xf32>
    %305 = vector.broadcast %304 : vector<1x8xf32> to vector<4x8xf32>
    %306 = arith.mulf %303, %305 : vector<4x8xf32>
    %cst_116 = arith.constant dense<0.000000e+00> : vector<4xf32>
    %307 = vector.multi_reduction <add>, %306, %cst_116 [1] : vector<4x8xf32> to vector<4xf32>
    %308 = vector.shape_cast %307 : vector<4xf32> to vector<4x1xf32>
    %309 = vector.extract_strided_slice %289 {offsets = [1, 0], sizes = [1, 8], strides = [1, 1]} : vector<2x8xf32> to vector<1x8xf32>
    %310 = vector.extract_strided_slice %287 {offsets = [1, 0], sizes = [1, 1], strides = [1, 1]} : vector<2x1xf32> to vector<1x1xf32>
    %311 = vector.broadcast %310 : vector<1x1xf32> to vector<4x1xf32>
    %312 = arith.addf %308, %311 : vector<4x1xf32>
    %313 = math.tanh %312 : vector<4x1xf32>
    %314 = vector.broadcast %309 : vector<1x8xf32> to vector<4x8xf32>
    %315 = vector.broadcast %313 : vector<4x1xf32> to vector<4x8xf32>
    %316 = arith.mulf %314, %315 : vector<4x8xf32>
    %317 = arith.addf %303, %316 : vector<4x8xf32>
    %318 = vector.shape_cast %317 : vector<4x8xf32> to vector<4x1x8xf32>
    %c0_117 = arith.constant 0 : index
    %c2 = arith.constant 2 : index
    %c0_118 = arith.constant 0 : index
    %319 = vector.load %arg22[%c0_117, %c2, %c0_118] : memref<4x8x8xf32, #tpu.memory_space<vmem>>, vector<4x1x8xf32>
    tpu.vector_store %arg22[%c0_117, %c2, %c0_118], %318 {strides = array<i32>} : memref<4x8x8xf32, #tpu.memory_space<vmem>>, vector<4x1x8xf32>,
    %320 = vector.shape_cast %270 : vector<4x8xf32> to vector<4x1x8xf32>
    %c0_119 = arith.constant 0 : index
    %c2_120 = arith.constant 2 : index
    %c0_121 = arith.constant 0 : index
    %321 = vector.load %arg23[%c0_119, %c2_120, %c0_121] : memref<4x8x8xf32, #tpu.memory_space<vmem>>, vector<4x1x8xf32>
    tpu.vector_store %arg23[%c0_119, %c2_120, %c0_121], %320 {strides = array<i32>} : memref<4x8x8xf32, #tpu.memory_space<vmem>>, vector<4x1x8xf32>,
    %322 = vector.shape_cast %279 : vector<4x8xf32> to vector<4x1x8xf32>
    %c0_122 = arith.constant 0 : index
    %c2_123 = arith.constant 2 : index
    %c0_124 = arith.constant 0 : index
    %323 = vector.load %arg24[%c0_122, %c2_123, %c0_124] : memref<4x8x8xf32, #tpu.memory_space<vmem>>, vector<4x1x8xf32>
    tpu.vector_store %arg24[%c0_122, %c2_123, %c0_124], %322 {strides = array<i32>} : memref<4x8x8xf32, #tpu.memory_space<vmem>>, vector<4x1x8xf32>,
    %324 = vector.extract_strided_slice %0 {offsets = [0, 3, 0], sizes = [4, 1, 16], strides = [1, 1, 1]} : vector<4x8x16xf32> to vector<4x1x16xf32>
    %325 = vector.shape_cast %324 : vector<4x1x16xf32> to vector<4x16xf32>
    %cst_125 = arith.constant dense<0.000000e+00> : vector<4x32xf32>
    %326 = tpu.matmul %325, %2, %cst_125 {dimension_numbers = #tpu.dot_dimension_numbers<[1], [0], [0], [1], [0, 0, 1, 1], [], []>} : vector<4x16xf32>, vector<16x32xf32>, vector<4x32xf32> -> vector<4x32xf32>
    %cst_126 = arith.constant dense<0.000000e+00> : vector<4x32xf32>
    %327 = tpu.matmul %259, %5, %cst_126 {dimension_numbers = #tpu.dot_dimension_numbers<[1], [0], [0], [1], [0, 0, 1, 1], [], []>} : vector<4x32xf32>, vector<32x32xf32>, vector<4x32xf32> -> vector<4x32xf32>
    %328 = arith.addf %326, %327 : vector<4x32xf32>
    %329 = arith.addf %328, %10 : vector<4x32xf32>
    %330 = arith.negf %329 : vector<4x32xf32>
    %331 = math.exp %330 : vector<4x32xf32>
    %cst_127 = arith.constant 1.000000e+00 : f32
    %332 = vector.broadcast %cst_127 : f32 to vector<4x32xf32>
    %333 = arith.addf %332, %331 : vector<4x32xf32>
    %334 = arith.divf %332, %333 : vector<4x32xf32>
    %cst_128 = arith.constant dense<0.000000e+00> : vector<4x32xf32>
    %335 = tpu.matmul %325, %3, %cst_128 {dimension_numbers = #tpu.dot_dimension_numbers<[1], [0], [0], [1], [0, 0, 1, 1], [], []>} : vector<4x16xf32>, vector<16x32xf32>, vector<4x32xf32> -> vector<4x32xf32>
    %cst_129 = arith.constant dense<0.000000e+00> : vector<4x32xf32>
    %336 = tpu.matmul %259, %6, %cst_129 {dimension_numbers = #tpu.dot_dimension_numbers<[1], [0], [0], [1], [0, 0, 1, 1], [], []>} : vector<4x32xf32>, vector<32x32xf32>, vector<4x32xf32> -> vector<4x32xf32>
    %337 = arith.addf %335, %336 : vector<4x32xf32>
    %338 = arith.addf %337, %13 : vector<4x32xf32>
    %339 = arith.negf %338 : vector<4x32xf32>
    %340 = math.exp %339 : vector<4x32xf32>
    %cst_130 = arith.constant 1.000000e+00 : f32
    %341 = vector.broadcast %cst_130 : f32 to vector<4x32xf32>
    %342 = arith.addf %341, %340 : vector<4x32xf32>
    %343 = arith.divf %341, %342 : vector<4x32xf32>
    %cst_131 = arith.constant dense<0.000000e+00> : vector<4x32xf32>
    %344 = tpu.matmul %325, %4, %cst_131 {dimension_numbers = #tpu.dot_dimension_numbers<[1], [0], [0], [1], [0, 0, 1, 1], [], []>} : vector<4x16xf32>, vector<16x32xf32>, vector<4x32xf32> -> vector<4x32xf32>
    %345 = arith.addf %344, %16 : vector<4x32xf32>
    %cst_132 = arith.constant dense<0.000000e+00> : vector<4x32xf32>
    %346 = tpu.matmul %259, %7, %cst_132 {dimension_numbers = #tpu.dot_dimension_numbers<[1], [0], [0], [1], [0, 0, 1, 1], [], []>} : vector<4x32xf32>, vector<32x32xf32>, vector<4x32xf32> -> vector<4x32xf32>
    %347 = arith.addf %346, %19 : vector<4x32xf32>
    %348 = arith.mulf %334, %347 : vector<4x32xf32>
    %349 = arith.addf %345, %348 : vector<4x32xf32>
    %350 = math.tanh %349 : vector<4x32xf32>
    %cst_133 = arith.constant 1.000000e+00 : f32
    %351 = vector.broadcast %cst_133 : f32 to vector<4x32xf32>
    %352 = arith.subf %351, %343 : vector<4x32xf32>
    %353 = arith.mulf %352, %350 : vector<4x32xf32>
    %354 = arith.mulf %343, %259 : vector<4x32xf32>
    %355 = arith.addf %353, %354 : vector<4x32xf32>
    %cst_134 = arith.constant dense<0.000000e+00> : vector<4x32xf32>
    %356 = tpu.matmul %355, %20, %cst_134 {dimension_numbers = #tpu.dot_dimension_numbers<[1], [0], [0], [1], [0, 0, 1, 1], [], []>} : vector<4x32xf32>, vector<32x32xf32>, vector<4x32xf32> -> vector<4x32xf32>
    %357 = arith.addf %356, %23 : vector<4x32xf32>
    %cst_135 = arith.constant 0.000000e+00 : f32
    %358 = vector.broadcast %cst_135 : f32 to vector<4x32xf32>
    %359 = arith.maximumf %357, %358 : vector<4x32xf32>
    %cst_136 = arith.constant dense<0.000000e+00> : vector<4x8xf32>
    %360 = tpu.matmul %359, %24, %cst_136 {dimension_numbers = #tpu.dot_dimension_numbers<[1], [0], [0], [1], [0, 0, 1, 1], [], []>} : vector<4x32xf32>, vector<32x8xf32>, vector<4x8xf32> -> vector<4x8xf32>
    %361 = arith.addf %360, %27 : vector<4x8xf32>
    %362 = arith.negf %361 : vector<4x8xf32>
    %363 = math.exp %362 : vector<4x8xf32>
    %cst_137 = arith.constant 1.000000e+00 : f32
    %364 = vector.broadcast %cst_137 : f32 to vector<4x8xf32>
    %365 = arith.addf %364, %363 : vector<4x8xf32>
    %366 = arith.divf %364, %365 : vector<4x8xf32>
    %cst_138 = arith.constant dense<0.000000e+00> : vector<4x8xf32>
    %367 = tpu.matmul %359, %28, %cst_138 {dimension_numbers = #tpu.dot_dimension_numbers<[1], [0], [0], [1], [0, 0, 1, 1], [], []>} : vector<4x32xf32>, vector<32x8xf32>, vector<4x8xf32> -> vector<4x8xf32>
    %368 = arith.addf %367, %31 : vector<4x8xf32>
    %cst_139 = arith.constant 2.000000e+01 : f32
    %369 = vector.broadcast %cst_139 : f32 to vector<4x8xf32>
    %370 = arith.cmpf ogt, %368, %369 : vector<4x8xf32>
    %cst_140 = arith.constant 2.000000e+01 : f32
    %371 = vector.broadcast %cst_140 : f32 to vector<4x8xf32>
    %372 = arith.minimumf %368, %371 : vector<4x8xf32>
    %373 = math.exp %372 : vector<4x8xf32>
    %374 = math.log1p %373 : vector<4x8xf32>
    %375 = arith.select %370, %368, %374 : vector<4x8xi1>, vector<4x8xf32>
    %376 = vector.extract_strided_slice %1 {offsets = [0, 3, 0], sizes = [4, 1, 8], strides = [1, 1, 1]} : vector<4x8x8xf32> to vector<4x1x8xf32>
    %377 = vector.shape_cast %376 : vector<4x1x8xf32> to vector<4x8xf32>
    %378 = arith.mulf %377, %375 : vector<4x8xf32>
    %379 = arith.addf %378, %366 : vector<4x8xf32>
    %380 = vector.extract_strided_slice %32 {offsets = [3, 0, 0], sizes = [1, 2, 8], strides = [1, 1, 1]} : vector<8x2x8xf32> to vector<1x2x8xf32>
    %381 = vector.shape_cast %380 : vector<1x2x8xf32> to vector<2x8xf32>
    %382 = vector.extract_strided_slice %33 {offsets = [3, 0, 0], sizes = [1, 2, 1], strides = [1, 1, 1]} : vector<8x2x1xf32> to vector<1x2x1xf32>
    %383 = vector.shape_cast %382 : vector<1x2x1xf32> to vector<2x1xf32>
    %384 = vector.extract_strided_slice %34 {offsets = [3, 0, 0], sizes = [1, 2, 8], strides = [1, 1, 1]} : vector<8x2x8xf32> to vector<1x2x8xf32>
    %385 = vector.shape_cast %384 : vector<1x2x8xf32> to vector<2x8xf32>
    %386 = vector.extract_strided_slice %381 {offsets = [0, 0], sizes = [1, 8], strides = [1, 1]} : vector<2x8xf32> to vector<1x8xf32>
    %387 = vector.broadcast %386 : vector<1x8xf32> to vector<4x8xf32>
    %388 = arith.mulf %379, %387 : vector<4x8xf32>
    %cst_141 = arith.constant dense<0.000000e+00> : vector<4xf32>
    %389 = vector.multi_reduction <add>, %388, %cst_141 [1] : vector<4x8xf32> to vector<4xf32>
    %390 = vector.shape_cast %389 : vector<4xf32> to vector<4x1xf32>
    %391 = vector.extract_strided_slice %385 {offsets = [0, 0], sizes = [1, 8], strides = [1, 1]} : vector<2x8xf32> to vector<1x8xf32>
    %392 = vector.extract_strided_slice %383 {offsets = [0, 0], sizes = [1, 1], strides = [1, 1]} : vector<2x1xf32> to vector<1x1xf32>
    %393 = vector.broadcast %392 : vector<1x1xf32> to vector<4x1xf32>
    %394 = arith.addf %390, %393 : vector<4x1xf32>
    %395 = math.tanh %394 : vector<4x1xf32>
    %396 = vector.broadcast %391 : vector<1x8xf32> to vector<4x8xf32>
    %397 = vector.broadcast %395 : vector<4x1xf32> to vector<4x8xf32>
    %398 = arith.mulf %396, %397 : vector<4x8xf32>
    %399 = arith.addf %379, %398 : vector<4x8xf32>
    %400 = vector.extract_strided_slice %381 {offsets = [1, 0], sizes = [1, 8], strides = [1, 1]} : vector<2x8xf32> to vector<1x8xf32>
    %401 = vector.broadcast %400 : vector<1x8xf32> to vector<4x8xf32>
    %402 = arith.mulf %399, %401 : vector<4x8xf32>
    %cst_142 = arith.constant dense<0.000000e+00> : vector<4xf32>
    %403 = vector.multi_reduction <add>, %402, %cst_142 [1] : vector<4x8xf32> to vector<4xf32>
    %404 = vector.shape_cast %403 : vector<4xf32> to vector<4x1xf32>
    %405 = vector.extract_strided_slice %385 {offsets = [1, 0], sizes = [1, 8], strides = [1, 1]} : vector<2x8xf32> to vector<1x8xf32>
    %406 = vector.extract_strided_slice %383 {offsets = [1, 0], sizes = [1, 1], strides = [1, 1]} : vector<2x1xf32> to vector<1x1xf32>
    %407 = vector.broadcast %406 : vector<1x1xf32> to vector<4x1xf32>
    %408 = arith.addf %404, %407 : vector<4x1xf32>
    %409 = math.tanh %408 : vector<4x1xf32>
    %410 = vector.broadcast %405 : vector<1x8xf32> to vector<4x8xf32>
    %411 = vector.broadcast %409 : vector<4x1xf32> to vector<4x8xf32>
    %412 = arith.mulf %410, %411 : vector<4x8xf32>
    %413 = arith.addf %399, %412 : vector<4x8xf32>
    %414 = vector.shape_cast %413 : vector<4x8xf32> to vector<4x1x8xf32>
    %c0_143 = arith.constant 0 : index
    %c3 = arith.constant 3 : index
    %c0_144 = arith.constant 0 : index
    %415 = vector.load %arg22[%c0_143, %c3, %c0_144] : memref<4x8x8xf32, #tpu.memory_space<vmem>>, vector<4x1x8xf32>
    tpu.vector_store %arg22[%c0_143, %c3, %c0_144], %414 {strides = array<i32>} : memref<4x8x8xf32, #tpu.memory_space<vmem>>, vector<4x1x8xf32>,
    %416 = vector.shape_cast %366 : vector<4x8xf32> to vector<4x1x8xf32>
    %c0_145 = arith.constant 0 : index
    %c3_146 = arith.constant 3 : index
    %c0_147 = arith.constant 0 : index
    %417 = vector.load %arg23[%c0_145, %c3_146, %c0_147] : memref<4x8x8xf32, #tpu.memory_space<vmem>>, vector<4x1x8xf32>
    tpu.vector_store %arg23[%c0_145, %c3_146, %c0_147], %416 {strides = array<i32>} : memref<4x8x8xf32, #tpu.memory_space<vmem>>, vector<4x1x8xf32>,
    %418 = vector.shape_cast %375 : vector<4x8xf32> to vector<4x1x8xf32>
    %c0_148 = arith.constant 0 : index
    %c3_149 = arith.constant 3 : index
    %c0_150 = arith.constant 0 : index
    %419 = vector.load %arg24[%c0_148, %c3_149, %c0_150] : memref<4x8x8xf32, #tpu.memory_space<vmem>>, vector<4x1x8xf32>
    tpu.vector_store %arg24[%c0_148, %c3_149, %c0_150], %418 {strides = array<i32>} : memref<4x8x8xf32, #tpu.memory_space<vmem>>, vector<4x1x8xf32>,
    %420 = vector.extract_strided_slice %0 {offsets = [0, 4, 0], sizes = [4, 1, 16], strides = [1, 1, 1]} : vector<4x8x16xf32> to vector<4x1x16xf32>
    %421 = vector.shape_cast %420 : vector<4x1x16xf32> to vector<4x16xf32>
    %cst_151 = arith.constant dense<0.000000e+00> : vector<4x32xf32>
    %422 = tpu.matmul %421, %2, %cst_151 {dimension_numbers = #tpu.dot_dimension_numbers<[1], [0], [0], [1], [0, 0, 1, 1], [], []>} : vector<4x16xf32>, vector<16x32xf32>, vector<4x32xf32> -> vector<4x32xf32>
    %cst_152 = arith.constant dense<0.000000e+00> : vector<4x32xf32>
    %423 = tpu.matmul %355, %5, %cst_152 {dimension_numbers = #tpu.dot_dimension_numbers<[1], [0], [0], [1], [0, 0, 1, 1], [], []>} : vector<4x32xf32>, vector<32x32xf32>, vector<4x32xf32> -> vector<4x32xf32>
    %424 = arith.addf %422, %423 : vector<4x32xf32>
    %425 = arith.addf %424, %10 : vector<4x32xf32>
    %426 = arith.negf %425 : vector<4x32xf32>
    %427 = math.exp %426 : vector<4x32xf32>
    %cst_153 = arith.constant 1.000000e+00 : f32
    %428 = vector.broadcast %cst_153 : f32 to vector<4x32xf32>
    %429 = arith.addf %428, %427 : vector<4x32xf32>
    %430 = arith.divf %428, %429 : vector<4x32xf32>
    %cst_154 = arith.constant dense<0.000000e+00> : vector<4x32xf32>
    %431 = tpu.matmul %421, %3, %cst_154 {dimension_numbers = #tpu.dot_dimension_numbers<[1], [0], [0], [1], [0, 0, 1, 1], [], []>} : vector<4x16xf32>, vector<16x32xf32>, vector<4x32xf32> -> vector<4x32xf32>
    %cst_155 = arith.constant dense<0.000000e+00> : vector<4x32xf32>
    %432 = tpu.matmul %355, %6, %cst_155 {dimension_numbers = #tpu.dot_dimension_numbers<[1], [0], [0], [1], [0, 0, 1, 1], [], []>} : vector<4x32xf32>, vector<32x32xf32>, vector<4x32xf32> -> vector<4x32xf32>
    %433 = arith.addf %431, %432 : vector<4x32xf32>
    %434 = arith.addf %433, %13 : vector<4x32xf32>
    %435 = arith.negf %434 : vector<4x32xf32>
    %436 = math.exp %435 : vector<4x32xf32>
    %cst_156 = arith.constant 1.000000e+00 : f32
    %437 = vector.broadcast %cst_156 : f32 to vector<4x32xf32>
    %438 = arith.addf %437, %436 : vector<4x32xf32>
    %439 = arith.divf %437, %438 : vector<4x32xf32>
    %cst_157 = arith.constant dense<0.000000e+00> : vector<4x32xf32>
    %440 = tpu.matmul %421, %4, %cst_157 {dimension_numbers = #tpu.dot_dimension_numbers<[1], [0], [0], [1], [0, 0, 1, 1], [], []>} : vector<4x16xf32>, vector<16x32xf32>, vector<4x32xf32> -> vector<4x32xf32>
    %441 = arith.addf %440, %16 : vector<4x32xf32>
    %cst_158 = arith.constant dense<0.000000e+00> : vector<4x32xf32>
    %442 = tpu.matmul %355, %7, %cst_158 {dimension_numbers = #tpu.dot_dimension_numbers<[1], [0], [0], [1], [0, 0, 1, 1], [], []>} : vector<4x32xf32>, vector<32x32xf32>, vector<4x32xf32> -> vector<4x32xf32>
    %443 = arith.addf %442, %19 : vector<4x32xf32>
    %444 = arith.mulf %430, %443 : vector<4x32xf32>
    %445 = arith.addf %441, %444 : vector<4x32xf32>
    %446 = math.tanh %445 : vector<4x32xf32>
    %cst_159 = arith.constant 1.000000e+00 : f32
    %447 = vector.broadcast %cst_159 : f32 to vector<4x32xf32>
    %448 = arith.subf %447, %439 : vector<4x32xf32>
    %449 = arith.mulf %448, %446 : vector<4x32xf32>
    %450 = arith.mulf %439, %355 : vector<4x32xf32>
    %451 = arith.addf %449, %450 : vector<4x32xf32>
    %cst_160 = arith.constant dense<0.000000e+00> : vector<4x32xf32>
    %452 = tpu.matmul %451, %20, %cst_160 {dimension_numbers = #tpu.dot_dimension_numbers<[1], [0], [0], [1], [0, 0, 1, 1], [], []>} : vector<4x32xf32>, vector<32x32xf32>, vector<4x32xf32> -> vector<4x32xf32>
    %453 = arith.addf %452, %23 : vector<4x32xf32>
    %cst_161 = arith.constant 0.000000e+00 : f32
    %454 = vector.broadcast %cst_161 : f32 to vector<4x32xf32>
    %455 = arith.maximumf %453, %454 : vector<4x32xf32>
    %cst_162 = arith.constant dense<0.000000e+00> : vector<4x8xf32>
    %456 = tpu.matmul %455, %24, %cst_162 {dimension_numbers = #tpu.dot_dimension_numbers<[1], [0], [0], [1], [0, 0, 1, 1], [], []>} : vector<4x32xf32>, vector<32x8xf32>, vector<4x8xf32> -> vector<4x8xf32>
    %457 = arith.addf %456, %27 : vector<4x8xf32>
    %458 = arith.negf %457 : vector<4x8xf32>
    %459 = math.exp %458 : vector<4x8xf32>
    %cst_163 = arith.constant 1.000000e+00 : f32
    %460 = vector.broadcast %cst_163 : f32 to vector<4x8xf32>
    %461 = arith.addf %460, %459 : vector<4x8xf32>
    %462 = arith.divf %460, %461 : vector<4x8xf32>
    %cst_164 = arith.constant dense<0.000000e+00> : vector<4x8xf32>
    %463 = tpu.matmul %455, %28, %cst_164 {dimension_numbers = #tpu.dot_dimension_numbers<[1], [0], [0], [1], [0, 0, 1, 1], [], []>} : vector<4x32xf32>, vector<32x8xf32>, vector<4x8xf32> -> vector<4x8xf32>
    %464 = arith.addf %463, %31 : vector<4x8xf32>
    %cst_165 = arith.constant 2.000000e+01 : f32
    %465 = vector.broadcast %cst_165 : f32 to vector<4x8xf32>
    %466 = arith.cmpf ogt, %464, %465 : vector<4x8xf32>
    %cst_166 = arith.constant 2.000000e+01 : f32
    %467 = vector.broadcast %cst_166 : f32 to vector<4x8xf32>
    %468 = arith.minimumf %464, %467 : vector<4x8xf32>
    %469 = math.exp %468 : vector<4x8xf32>
    %470 = math.log1p %469 : vector<4x8xf32>
    %471 = arith.select %466, %464, %470 : vector<4x8xi1>, vector<4x8xf32>
    %472 = vector.extract_strided_slice %1 {offsets = [0, 4, 0], sizes = [4, 1, 8], strides = [1, 1, 1]} : vector<4x8x8xf32> to vector<4x1x8xf32>
    %473 = vector.shape_cast %472 : vector<4x1x8xf32> to vector<4x8xf32>
    %474 = arith.mulf %473, %471 : vector<4x8xf32>
    %475 = arith.addf %474, %462 : vector<4x8xf32>
    %476 = vector.extract_strided_slice %32 {offsets = [4, 0, 0], sizes = [1, 2, 8], strides = [1, 1, 1]} : vector<8x2x8xf32> to vector<1x2x8xf32>
    %477 = vector.shape_cast %476 : vector<1x2x8xf32> to vector<2x8xf32>
    %478 = vector.extract_strided_slice %33 {offsets = [4, 0, 0], sizes = [1, 2, 1], strides = [1, 1, 1]} : vector<8x2x1xf32> to vector<1x2x1xf32>
    %479 = vector.shape_cast %478 : vector<1x2x1xf32> to vector<2x1xf32>
    %480 = vector.extract_strided_slice %34 {offsets = [4, 0, 0], sizes = [1, 2, 8], strides = [1, 1, 1]} : vector<8x2x8xf32> to vector<1x2x8xf32>
    %481 = vector.shape_cast %480 : vector<1x2x8xf32> to vector<2x8xf32>
    %482 = vector.extract_strided_slice %477 {offsets = [0, 0], sizes = [1, 8], strides = [1, 1]} : vector<2x8xf32> to vector<1x8xf32>
    %483 = vector.broadcast %482 : vector<1x8xf32> to vector<4x8xf32>
    %484 = arith.mulf %475, %483 : vector<4x8xf32>
    %cst_167 = arith.constant dense<0.000000e+00> : vector<4xf32>
    %485 = vector.multi_reduction <add>, %484, %cst_167 [1] : vector<4x8xf32> to vector<4xf32>
    %486 = vector.shape_cast %485 : vector<4xf32> to vector<4x1xf32>
    %487 = vector.extract_strided_slice %481 {offsets = [0, 0], sizes = [1, 8], strides = [1, 1]} : vector<2x8xf32> to vector<1x8xf32>
    %488 = vector.extract_strided_slice %479 {offsets = [0, 0], sizes = [1, 1], strides = [1, 1]} : vector<2x1xf32> to vector<1x1xf32>
    %489 = vector.broadcast %488 : vector<1x1xf32> to vector<4x1xf32>
    %490 = arith.addf %486, %489 : vector<4x1xf32>
    %491 = math.tanh %490 : vector<4x1xf32>
    %492 = vector.broadcast %487 : vector<1x8xf32> to vector<4x8xf32>
    %493 = vector.broadcast %491 : vector<4x1xf32> to vector<4x8xf32>
    %494 = arith.mulf %492, %493 : vector<4x8xf32>
    %495 = arith.addf %475, %494 : vector<4x8xf32>
    %496 = vector.extract_strided_slice %477 {offsets = [1, 0], sizes = [1, 8], strides = [1, 1]} : vector<2x8xf32> to vector<1x8xf32>
    %497 = vector.broadcast %496 : vector<1x8xf32> to vector<4x8xf32>
    %498 = arith.mulf %495, %497 : vector<4x8xf32>
    %cst_168 = arith.constant dense<0.000000e+00> : vector<4xf32>
    %499 = vector.multi_reduction <add>, %498, %cst_168 [1] : vector<4x8xf32> to vector<4xf32>
    %500 = vector.shape_cast %499 : vector<4xf32> to vector<4x1xf32>
    %501 = vector.extract_strided_slice %481 {offsets = [1, 0], sizes = [1, 8], strides = [1, 1]} : vector<2x8xf32> to vector<1x8xf32>
    %502 = vector.extract_strided_slice %479 {offsets = [1, 0], sizes = [1, 1], strides = [1, 1]} : vector<2x1xf32> to vector<1x1xf32>
    %503 = vector.broadcast %502 : vector<1x1xf32> to vector<4x1xf32>
    %504 = arith.addf %500, %503 : vector<4x1xf32>
    %505 = math.tanh %504 : vector<4x1xf32>
    %506 = vector.broadcast %501 : vector<1x8xf32> to vector<4x8xf32>
    %507 = vector.broadcast %505 : vector<4x1xf32> to vector<4x8xf32>
    %508 = arith.mulf %506, %507 : vector<4x8xf32>
    %509 = arith.addf %495, %508 : vector<4x8xf32>
    %510 = vector.shape_cast %509 : vector<4x8xf32> to vector<4x1x8xf32>
    %c0_169 = arith.constant 0 : index
    %c4 = arith.constant 4 : index
    %c0_170 = arith.constant 0 : index
    %511 = vector.load %arg22[%c0_169, %c4, %c0_170] : memref<4x8x8xf32, #tpu.memory_space<vmem>>, vector<4x1x8xf32>
    tpu.vector_store %arg22[%c0_169, %c4, %c0_170], %510 {strides = array<i32>} : memref<4x8x8xf32, #tpu.memory_space<vmem>>, vector<4x1x8xf32>,
    %512 = vector.shape_cast %462 : vector<4x8xf32> to vector<4x1x8xf32>
    %c0_171 = arith.constant 0 : index
    %c4_172 = arith.constant 4 : index
    %c0_173 = arith.constant 0 : index
    %513 = vector.load %arg23[%c0_171, %c4_172, %c0_173] : memref<4x8x8xf32, #tpu.memory_space<vmem>>, vector<4x1x8xf32>
    tpu.vector_store %arg23[%c0_171, %c4_172, %c0_173], %512 {strides = array<i32>} : memref<4x8x8xf32, #tpu.memory_space<vmem>>, vector<4x1x8xf32>,
    %514 = vector.shape_cast %471 : vector<4x8xf32> to vector<4x1x8xf32>
    %c0_174 = arith.constant 0 : index
    %c4_175 = arith.constant 4 : index
    %c0_176 = arith.constant 0 : index
    %515 = vector.load %arg24[%c0_174, %c4_175, %c0_176] : memref<4x8x8xf32, #tpu.memory_space<vmem>>, vector<4x1x8xf32>
    tpu.vector_store %arg24[%c0_174, %c4_175, %c0_176], %514 {strides = array<i32>} : memref<4x8x8xf32, #tpu.memory_space<vmem>>, vector<4x1x8xf32>,
    %516 = vector.extract_strided_slice %0 {offsets = [0, 5, 0], sizes = [4, 1, 16], strides = [1, 1, 1]} : vector<4x8x16xf32> to vector<4x1x16xf32>
    %517 = vector.shape_cast %516 : vector<4x1x16xf32> to vector<4x16xf32>
    %cst_177 = arith.constant dense<0.000000e+00> : vector<4x32xf32>
    %518 = tpu.matmul %517, %2, %cst_177 {dimension_numbers = #tpu.dot_dimension_numbers<[1], [0], [0], [1], [0, 0, 1, 1], [], []>} : vector<4x16xf32>, vector<16x32xf32>, vector<4x32xf32> -> vector<4x32xf32>
    %cst_178 = arith.constant dense<0.000000e+00> : vector<4x32xf32>
    %519 = tpu.matmul %451, %5, %cst_178 {dimension_numbers = #tpu.dot_dimension_numbers<[1], [0], [0], [1], [0, 0, 1, 1], [], []>} : vector<4x32xf32>, vector<32x32xf32>, vector<4x32xf32> -> vector<4x32xf32>
    %520 = arith.addf %518, %519 : vector<4x32xf32>
    %521 = arith.addf %520, %10 : vector<4x32xf32>
    %522 = arith.negf %521 : vector<4x32xf32>
    %523 = math.exp %522 : vector<4x32xf32>
    %cst_179 = arith.constant 1.000000e+00 : f32
    %524 = vector.broadcast %cst_179 : f32 to vector<4x32xf32>
    %525 = arith.addf %524, %523 : vector<4x32xf32>
    %526 = arith.divf %524, %525 : vector<4x32xf32>
    %cst_180 = arith.constant dense<0.000000e+00> : vector<4x32xf32>
    %527 = tpu.matmul %517, %3, %cst_180 {dimension_numbers = #tpu.dot_dimension_numbers<[1], [0], [0], [1], [0, 0, 1, 1], [], []>} : vector<4x16xf32>, vector<16x32xf32>, vector<4x32xf32> -> vector<4x32xf32>
    %cst_181 = arith.constant dense<0.000000e+00> : vector<4x32xf32>
    %528 = tpu.matmul %451, %6, %cst_181 {dimension_numbers = #tpu.dot_dimension_numbers<[1], [0], [0], [1], [0, 0, 1, 1], [], []>} : vector<4x32xf32>, vector<32x32xf32>, vector<4x32xf32> -> vector<4x32xf32>
    %529 = arith.addf %527, %528 : vector<4x32xf32>
    %530 = arith.addf %529, %13 : vector<4x32xf32>
    %531 = arith.negf %530 : vector<4x32xf32>
    %532 = math.exp %531 : vector<4x32xf32>
    %cst_182 = arith.constant 1.000000e+00 : f32
    %533 = vector.broadcast %cst_182 : f32 to vector<4x32xf32>
    %534 = arith.addf %533, %532 : vector<4x32xf32>
    %535 = arith.divf %533, %534 : vector<4x32xf32>
    %cst_183 = arith.constant dense<0.000000e+00> : vector<4x32xf32>
    %536 = tpu.matmul %517, %4, %cst_183 {dimension_numbers = #tpu.dot_dimension_numbers<[1], [0], [0], [1], [0, 0, 1, 1], [], []>} : vector<4x16xf32>, vector<16x32xf32>, vector<4x32xf32> -> vector<4x32xf32>
    %537 = arith.addf %536, %16 : vector<4x32xf32>
    %cst_184 = arith.constant dense<0.000000e+00> : vector<4x32xf32>
    %538 = tpu.matmul %451, %7, %cst_184 {dimension_numbers = #tpu.dot_dimension_numbers<[1], [0], [0], [1], [0, 0, 1, 1], [], []>} : vector<4x32xf32>, vector<32x32xf32>, vector<4x32xf32> -> vector<4x32xf32>
    %539 = arith.addf %538, %19 : vector<4x32xf32>
    %540 = arith.mulf %526, %539 : vector<4x32xf32>
    %541 = arith.addf %537, %540 : vector<4x32xf32>
    %542 = math.tanh %541 : vector<4x32xf32>
    %cst_185 = arith.constant 1.000000e+00 : f32
    %543 = vector.broadcast %cst_185 : f32 to vector<4x32xf32>
    %544 = arith.subf %543, %535 : vector<4x32xf32>
    %545 = arith.mulf %544, %542 : vector<4x32xf32>
    %546 = arith.mulf %535, %451 : vector<4x32xf32>
    %547 = arith.addf %545, %546 : vector<4x32xf32>
    %cst_186 = arith.constant dense<0.000000e+00> : vector<4x32xf32>
    %548 = tpu.matmul %547, %20, %cst_186 {dimension_numbers = #tpu.dot_dimension_numbers<[1], [0], [0], [1], [0, 0, 1, 1], [], []>} : vector<4x32xf32>, vector<32x32xf32>, vector<4x32xf32> -> vector<4x32xf32>
    %549 = arith.addf %548, %23 : vector<4x32xf32>
    %cst_187 = arith.constant 0.000000e+00 : f32
    %550 = vector.broadcast %cst_187 : f32 to vector<4x32xf32>
    %551 = arith.maximumf %549, %550 : vector<4x32xf32>
    %cst_188 = arith.constant dense<0.000000e+00> : vector<4x8xf32>
    %552 = tpu.matmul %551, %24, %cst_188 {dimension_numbers = #tpu.dot_dimension_numbers<[1], [0], [0], [1], [0, 0, 1, 1], [], []>} : vector<4x32xf32>, vector<32x8xf32>, vector<4x8xf32> -> vector<4x8xf32>
    %553 = arith.addf %552, %27 : vector<4x8xf32>
    %554 = arith.negf %553 : vector<4x8xf32>
    %555 = math.exp %554 : vector<4x8xf32>
    %cst_189 = arith.constant 1.000000e+00 : f32
    %556 = vector.broadcast %cst_189 : f32 to vector<4x8xf32>
    %557 = arith.addf %556, %555 : vector<4x8xf32>
    %558 = arith.divf %556, %557 : vector<4x8xf32>
    %cst_190 = arith.constant dense<0.000000e+00> : vector<4x8xf32>
    %559 = tpu.matmul %551, %28, %cst_190 {dimension_numbers = #tpu.dot_dimension_numbers<[1], [0], [0], [1], [0, 0, 1, 1], [], []>} : vector<4x32xf32>, vector<32x8xf32>, vector<4x8xf32> -> vector<4x8xf32>
    %560 = arith.addf %559, %31 : vector<4x8xf32>
    %cst_191 = arith.constant 2.000000e+01 : f32
    %561 = vector.broadcast %cst_191 : f32 to vector<4x8xf32>
    %562 = arith.cmpf ogt, %560, %561 : vector<4x8xf32>
    %cst_192 = arith.constant 2.000000e+01 : f32
    %563 = vector.broadcast %cst_192 : f32 to vector<4x8xf32>
    %564 = arith.minimumf %560, %563 : vector<4x8xf32>
    %565 = math.exp %564 : vector<4x8xf32>
    %566 = math.log1p %565 : vector<4x8xf32>
    %567 = arith.select %562, %560, %566 : vector<4x8xi1>, vector<4x8xf32>
    %568 = vector.extract_strided_slice %1 {offsets = [0, 5, 0], sizes = [4, 1, 8], strides = [1, 1, 1]} : vector<4x8x8xf32> to vector<4x1x8xf32>
    %569 = vector.shape_cast %568 : vector<4x1x8xf32> to vector<4x8xf32>
    %570 = arith.mulf %569, %567 : vector<4x8xf32>
    %571 = arith.addf %570, %558 : vector<4x8xf32>
    %572 = vector.extract_strided_slice %32 {offsets = [5, 0, 0], sizes = [1, 2, 8], strides = [1, 1, 1]} : vector<8x2x8xf32> to vector<1x2x8xf32>
    %573 = vector.shape_cast %572 : vector<1x2x8xf32> to vector<2x8xf32>
    %574 = vector.extract_strided_slice %33 {offsets = [5, 0, 0], sizes = [1, 2, 1], strides = [1, 1, 1]} : vector<8x2x1xf32> to vector<1x2x1xf32>
    %575 = vector.shape_cast %574 : vector<1x2x1xf32> to vector<2x1xf32>
    %576 = vector.extract_strided_slice %34 {offsets = [5, 0, 0], sizes = [1, 2, 8], strides = [1, 1, 1]} : vector<8x2x8xf32> to vector<1x2x8xf32>
    %577 = vector.shape_cast %576 : vector<1x2x8xf32> to vector<2x8xf32>
    %578 = vector.extract_strided_slice %573 {offsets = [0, 0], sizes = [1, 8], strides = [1, 1]} : vector<2x8xf32> to vector<1x8xf32>
    %579 = vector.broadcast %578 : vector<1x8xf32> to vector<4x8xf32>
    %580 = arith.mulf %571, %579 : vector<4x8xf32>
    %cst_193 = arith.constant dense<0.000000e+00> : vector<4xf32>
    %581 = vector.multi_reduction <add>, %580, %cst_193 [1] : vector<4x8xf32> to vector<4xf32>
    %582 = vector.shape_cast %581 : vector<4xf32> to vector<4x1xf32>
    %583 = vector.extract_strided_slice %577 {offsets = [0, 0], sizes = [1, 8], strides = [1, 1]} : vector<2x8xf32> to vector<1x8xf32>
    %584 = vector.extract_strided_slice %575 {offsets = [0, 0], sizes = [1, 1], strides = [1, 1]} : vector<2x1xf32> to vector<1x1xf32>
    %585 = vector.broadcast %584 : vector<1x1xf32> to vector<4x1xf32>
    %586 = arith.addf %582, %585 : vector<4x1xf32>
    %587 = math.tanh %586 : vector<4x1xf32>
    %588 = vector.broadcast %583 : vector<1x8xf32> to vector<4x8xf32>
    %589 = vector.broadcast %587 : vector<4x1xf32> to vector<4x8xf32>
    %590 = arith.mulf %588, %589 : vector<4x8xf32>
    %591 = arith.addf %571, %590 : vector<4x8xf32>
    %592 = vector.extract_strided_slice %573 {offsets = [1, 0], sizes = [1, 8], strides = [1, 1]} : vector<2x8xf32> to vector<1x8xf32>
    %593 = vector.broadcast %592 : vector<1x8xf32> to vector<4x8xf32>
    %594 = arith.mulf %591, %593 : vector<4x8xf32>
    %cst_194 = arith.constant dense<0.000000e+00> : vector<4xf32>
    %595 = vector.multi_reduction <add>, %594, %cst_194 [1] : vector<4x8xf32> to vector<4xf32>
    %596 = vector.shape_cast %595 : vector<4xf32> to vector<4x1xf32>
    %597 = vector.extract_strided_slice %577 {offsets = [1, 0], sizes = [1, 8], strides = [1, 1]} : vector<2x8xf32> to vector<1x8xf32>
    %598 = vector.extract_strided_slice %575 {offsets = [1, 0], sizes = [1, 1], strides = [1, 1]} : vector<2x1xf32> to vector<1x1xf32>
    %599 = vector.broadcast %598 : vector<1x1xf32> to vector<4x1xf32>
    %600 = arith.addf %596, %599 : vector<4x1xf32>
    %601 = math.tanh %600 : vector<4x1xf32>
    %602 = vector.broadcast %597 : vector<1x8xf32> to vector<4x8xf32>
    %603 = vector.broadcast %601 : vector<4x1xf32> to vector<4x8xf32>
    %604 = arith.mulf %602, %603 : vector<4x8xf32>
    %605 = arith.addf %591, %604 : vector<4x8xf32>
    %606 = vector.shape_cast %605 : vector<4x8xf32> to vector<4x1x8xf32>
    %c0_195 = arith.constant 0 : index
    %c5 = arith.constant 5 : index
    %c0_196 = arith.constant 0 : index
    %607 = vector.load %arg22[%c0_195, %c5, %c0_196] : memref<4x8x8xf32, #tpu.memory_space<vmem>>, vector<4x1x8xf32>
    tpu.vector_store %arg22[%c0_195, %c5, %c0_196], %606 {strides = array<i32>} : memref<4x8x8xf32, #tpu.memory_space<vmem>>, vector<4x1x8xf32>,
    %608 = vector.shape_cast %558 : vector<4x8xf32> to vector<4x1x8xf32>
    %c0_197 = arith.constant 0 : index
    %c5_198 = arith.constant 5 : index
    %c0_199 = arith.constant 0 : index
    %609 = vector.load %arg23[%c0_197, %c5_198, %c0_199] : memref<4x8x8xf32, #tpu.memory_space<vmem>>, vector<4x1x8xf32>
    tpu.vector_store %arg23[%c0_197, %c5_198, %c0_199], %608 {strides = array<i32>} : memref<4x8x8xf32, #tpu.memory_space<vmem>>, vector<4x1x8xf32>,
    %610 = vector.shape_cast %567 : vector<4x8xf32> to vector<4x1x8xf32>
    %c0_200 = arith.constant 0 : index
    %c5_201 = arith.constant 5 : index
    %c0_202 = arith.constant 0 : index
    %611 = vector.load %arg24[%c0_200, %c5_201, %c0_202] : memref<4x8x8xf32, #tpu.memory_space<vmem>>, vector<4x1x8xf32>
    tpu.vector_store %arg24[%c0_200, %c5_201, %c0_202], %610 {strides = array<i32>} : memref<4x8x8xf32, #tpu.memory_space<vmem>>, vector<4x1x8xf32>,
    %612 = vector.extract_strided_slice %0 {offsets = [0, 6, 0], sizes = [4, 1, 16], strides = [1, 1, 1]} : vector<4x8x16xf32> to vector<4x1x16xf32>
    %613 = vector.shape_cast %612 : vector<4x1x16xf32> to vector<4x16xf32>
    %cst_203 = arith.constant dense<0.000000e+00> : vector<4x32xf32>
    %614 = tpu.matmul %613, %2, %cst_203 {dimension_numbers = #tpu.dot_dimension_numbers<[1], [0], [0], [1], [0, 0, 1, 1], [], []>} : vector<4x16xf32>, vector<16x32xf32>, vector<4x32xf32> -> vector<4x32xf32>
    %cst_204 = arith.constant dense<0.000000e+00> : vector<4x32xf32>
    %615 = tpu.matmul %547, %5, %cst_204 {dimension_numbers = #tpu.dot_dimension_numbers<[1], [0], [0], [1], [0, 0, 1, 1], [], []>} : vector<4x32xf32>, vector<32x32xf32>, vector<4x32xf32> -> vector<4x32xf32>
    %616 = arith.addf %614, %615 : vector<4x32xf32>
    %617 = arith.addf %616, %10 : vector<4x32xf32>
    %618 = arith.negf %617 : vector<4x32xf32>
    %619 = math.exp %618 : vector<4x32xf32>
    %cst_205 = arith.constant 1.000000e+00 : f32
    %620 = vector.broadcast %cst_205 : f32 to vector<4x32xf32>
    %621 = arith.addf %620, %619 : vector<4x32xf32>
    %622 = arith.divf %620, %621 : vector<4x32xf32>
    %cst_206 = arith.constant dense<0.000000e+00> : vector<4x32xf32>
    %623 = tpu.matmul %613, %3, %cst_206 {dimension_numbers = #tpu.dot_dimension_numbers<[1], [0], [0], [1], [0, 0, 1, 1], [], []>} : vector<4x16xf32>, vector<16x32xf32>, vector<4x32xf32> -> vector<4x32xf32>
    %cst_207 = arith.constant dense<0.000000e+00> : vector<4x32xf32>
    %624 = tpu.matmul %547, %6, %cst_207 {dimension_numbers = #tpu.dot_dimension_numbers<[1], [0], [0], [1], [0, 0, 1, 1], [], []>} : vector<4x32xf32>, vector<32x32xf32>, vector<4x32xf32> -> vector<4x32xf32>
    %625 = arith.addf %623, %624 : vector<4x32xf32>
    %626 = arith.addf %625, %13 : vector<4x32xf32>
    %627 = arith.negf %626 : vector<4x32xf32>
    %628 = math.exp %627 : vector<4x32xf32>
    %cst_208 = arith.constant 1.000000e+00 : f32
    %629 = vector.broadcast %cst_208 : f32 to vector<4x32xf32>
    %630 = arith.addf %629, %628 : vector<4x32xf32>
    %631 = arith.divf %629, %630 : vector<4x32xf32>
    %cst_209 = arith.constant dense<0.000000e+00> : vector<4x32xf32>
    %632 = tpu.matmul %613, %4, %cst_209 {dimension_numbers = #tpu.dot_dimension_numbers<[1], [0], [0], [1], [0, 0, 1, 1], [], []>} : vector<4x16xf32>, vector<16x32xf32>, vector<4x32xf32> -> vector<4x32xf32>
    %633 = arith.addf %632, %16 : vector<4x32xf32>
    %cst_210 = arith.constant dense<0.000000e+00> : vector<4x32xf32>
    %634 = tpu.matmul %547, %7, %cst_210 {dimension_numbers = #tpu.dot_dimension_numbers<[1], [0], [0], [1], [0, 0, 1, 1], [], []>} : vector<4x32xf32>, vector<32x32xf32>, vector<4x32xf32> -> vector<4x32xf32>
    %635 = arith.addf %634, %19 : vector<4x32xf32>
    %636 = arith.mulf %622, %635 : vector<4x32xf32>
    %637 = arith.addf %633, %636 : vector<4x32xf32>
    %638 = math.tanh %637 : vector<4x32xf32>
    %cst_211 = arith.constant 1.000000e+00 : f32
    %639 = vector.broadcast %cst_211 : f32 to vector<4x32xf32>
    %640 = arith.subf %639, %631 : vector<4x32xf32>
    %641 = arith.mulf %640, %638 : vector<4x32xf32>
    %642 = arith.mulf %631, %547 : vector<4x32xf32>
    %643 = arith.addf %641, %642 : vector<4x32xf32>
    %cst_212 = arith.constant dense<0.000000e+00> : vector<4x32xf32>
    %644 = tpu.matmul %643, %20, %cst_212 {dimension_numbers = #tpu.dot_dimension_numbers<[1], [0], [0], [1], [0, 0, 1, 1], [], []>} : vector<4x32xf32>, vector<32x32xf32>, vector<4x32xf32> -> vector<4x32xf32>
    %645 = arith.addf %644, %23 : vector<4x32xf32>
    %cst_213 = arith.constant 0.000000e+00 : f32
    %646 = vector.broadcast %cst_213 : f32 to vector<4x32xf32>
    %647 = arith.maximumf %645, %646 : vector<4x32xf32>
    %cst_214 = arith.constant dense<0.000000e+00> : vector<4x8xf32>
    %648 = tpu.matmul %647, %24, %cst_214 {dimension_numbers = #tpu.dot_dimension_numbers<[1], [0], [0], [1], [0, 0, 1, 1], [], []>} : vector<4x32xf32>, vector<32x8xf32>, vector<4x8xf32> -> vector<4x8xf32>
    %649 = arith.addf %648, %27 : vector<4x8xf32>
    %650 = arith.negf %649 : vector<4x8xf32>
    %651 = math.exp %650 : vector<4x8xf32>
    %cst_215 = arith.constant 1.000000e+00 : f32
    %652 = vector.broadcast %cst_215 : f32 to vector<4x8xf32>
    %653 = arith.addf %652, %651 : vector<4x8xf32>
    %654 = arith.divf %652, %653 : vector<4x8xf32>
    %cst_216 = arith.constant dense<0.000000e+00> : vector<4x8xf32>
    %655 = tpu.matmul %647, %28, %cst_216 {dimension_numbers = #tpu.dot_dimension_numbers<[1], [0], [0], [1], [0, 0, 1, 1], [], []>} : vector<4x32xf32>, vector<32x8xf32>, vector<4x8xf32> -> vector<4x8xf32>
    %656 = arith.addf %655, %31 : vector<4x8xf32>
    %cst_217 = arith.constant 2.000000e+01 : f32
    %657 = vector.broadcast %cst_217 : f32 to vector<4x8xf32>
    %658 = arith.cmpf ogt, %656, %657 : vector<4x8xf32>
    %cst_218 = arith.constant 2.000000e+01 : f32
    %659 = vector.broadcast %cst_218 : f32 to vector<4x8xf32>
    %660 = arith.minimumf %656, %659 : vector<4x8xf32>
    %661 = math.exp %660 : vector<4x8xf32>
    %662 = math.log1p %661 : vector<4x8xf32>
    %663 = arith.select %658, %656, %662 : vector<4x8xi1>, vector<4x8xf32>
    %664 = vector.extract_strided_slice %1 {offsets = [0, 6, 0], sizes = [4, 1, 8], strides = [1, 1, 1]} : vector<4x8x8xf32> to vector<4x1x8xf32>
    %665 = vector.shape_cast %664 : vector<4x1x8xf32> to vector<4x8xf32>
    %666 = arith.mulf %665, %663 : vector<4x8xf32>
    %667 = arith.addf %666, %654 : vector<4x8xf32>
    %668 = vector.extract_strided_slice %32 {offsets = [6, 0, 0], sizes = [1, 2, 8], strides = [1, 1, 1]} : vector<8x2x8xf32> to vector<1x2x8xf32>
    %669 = vector.shape_cast %668 : vector<1x2x8xf32> to vector<2x8xf32>
    %670 = vector.extract_strided_slice %33 {offsets = [6, 0, 0], sizes = [1, 2, 1], strides = [1, 1, 1]} : vector<8x2x1xf32> to vector<1x2x1xf32>
    %671 = vector.shape_cast %670 : vector<1x2x1xf32> to vector<2x1xf32>
    %672 = vector.extract_strided_slice %34 {offsets = [6, 0, 0], sizes = [1, 2, 8], strides = [1, 1, 1]} : vector<8x2x8xf32> to vector<1x2x8xf32>
    %673 = vector.shape_cast %672 : vector<1x2x8xf32> to vector<2x8xf32>
    %674 = vector.extract_strided_slice %669 {offsets = [0, 0], sizes = [1, 8], strides = [1, 1]} : vector<2x8xf32> to vector<1x8xf32>
    %675 = vector.broadcast %674 : vector<1x8xf32> to vector<4x8xf32>
    %676 = arith.mulf %667, %675 : vector<4x8xf32>
    %cst_219 = arith.constant dense<0.000000e+00> : vector<4xf32>
    %677 = vector.multi_reduction <add>, %676, %cst_219 [1] : vector<4x8xf32> to vector<4xf32>
    %678 = vector.shape_cast %677 : vector<4xf32> to vector<4x1xf32>
    %679 = vector.extract_strided_slice %673 {offsets = [0, 0], sizes = [1, 8], strides = [1, 1]} : vector<2x8xf32> to vector<1x8xf32>
    %680 = vector.extract_strided_slice %671 {offsets = [0, 0], sizes = [1, 1], strides = [1, 1]} : vector<2x1xf32> to vector<1x1xf32>
    %681 = vector.broadcast %680 : vector<1x1xf32> to vector<4x1xf32>
    %682 = arith.addf %678, %681 : vector<4x1xf32>
    %683 = math.tanh %682 : vector<4x1xf32>
    %684 = vector.broadcast %679 : vector<1x8xf32> to vector<4x8xf32>
    %685 = vector.broadcast %683 : vector<4x1xf32> to vector<4x8xf32>
    %686 = arith.mulf %684, %685 : vector<4x8xf32>
    %687 = arith.addf %667, %686 : vector<4x8xf32>
    %688 = vector.extract_strided_slice %669 {offsets = [1, 0], sizes = [1, 8], strides = [1, 1]} : vector<2x8xf32> to vector<1x8xf32>
    %689 = vector.broadcast %688 : vector<1x8xf32> to vector<4x8xf32>
    %690 = arith.mulf %687, %689 : vector<4x8xf32>
    %cst_220 = arith.constant dense<0.000000e+00> : vector<4xf32>
    %691 = vector.multi_reduction <add>, %690, %cst_220 [1] : vector<4x8xf32> to vector<4xf32>
    %692 = vector.shape_cast %691 : vector<4xf32> to vector<4x1xf32>
    %693 = vector.extract_strided_slice %673 {offsets = [1, 0], sizes = [1, 8], strides = [1, 1]} : vector<2x8xf32> to vector<1x8xf32>
    %694 = vector.extract_strided_slice %671 {offsets = [1, 0], sizes = [1, 1], strides = [1, 1]} : vector<2x1xf32> to vector<1x1xf32>
    %695 = vector.broadcast %694 : vector<1x1xf32> to vector<4x1xf32>
    %696 = arith.addf %692, %695 : vector<4x1xf32>
    %697 = math.tanh %696 : vector<4x1xf32>
    %698 = vector.broadcast %693 : vector<1x8xf32> to vector<4x8xf32>
    %699 = vector.broadcast %697 : vector<4x1xf32> to vector<4x8xf32>
    %700 = arith.mulf %698, %699 : vector<4x8xf32>
    %701 = arith.addf %687, %700 : vector<4x8xf32>
    %702 = vector.shape_cast %701 : vector<4x8xf32> to vector<4x1x8xf32>
    %c0_221 = arith.constant 0 : index
    %c6 = arith.constant 6 : index
    %c0_222 = arith.constant 0 : index
    %703 = vector.load %arg22[%c0_221, %c6, %c0_222] : memref<4x8x8xf32, #tpu.memory_space<vmem>>, vector<4x1x8xf32>
    tpu.vector_store %arg22[%c0_221, %c6, %c0_222], %702 {strides = array<i32>} : memref<4x8x8xf32, #tpu.memory_space<vmem>>, vector<4x1x8xf32>,
    %704 = vector.shape_cast %654 : vector<4x8xf32> to vector<4x1x8xf32>
    %c0_223 = arith.constant 0 : index
    %c6_224 = arith.constant 6 : index
    %c0_225 = arith.constant 0 : index
    %705 = vector.load %arg23[%c0_223, %c6_224, %c0_225] : memref<4x8x8xf32, #tpu.memory_space<vmem>>, vector<4x1x8xf32>
    tpu.vector_store %arg23[%c0_223, %c6_224, %c0_225], %704 {strides = array<i32>} : memref<4x8x8xf32, #tpu.memory_space<vmem>>, vector<4x1x8xf32>,
    %706 = vector.shape_cast %663 : vector<4x8xf32> to vector<4x1x8xf32>
    %c0_226 = arith.constant 0 : index
    %c6_227 = arith.constant 6 : index
    %c0_228 = arith.constant 0 : index
    %707 = vector.load %arg24[%c0_226, %c6_227, %c0_228] : memref<4x8x8xf32, #tpu.memory_space<vmem>>, vector<4x1x8xf32>
    tpu.vector_store %arg24[%c0_226, %c6_227, %c0_228], %706 {strides = array<i32>} : memref<4x8x8xf32, #tpu.memory_space<vmem>>, vector<4x1x8xf32>,
    %708 = vector.extract_strided_slice %0 {offsets = [0, 7, 0], sizes = [4, 1, 16], strides = [1, 1, 1]} : vector<4x8x16xf32> to vector<4x1x16xf32>
    %709 = vector.shape_cast %708 : vector<4x1x16xf32> to vector<4x16xf32>
    %cst_229 = arith.constant dense<0.000000e+00> : vector<4x32xf32>
    %710 = tpu.matmul %709, %2, %cst_229 {dimension_numbers = #tpu.dot_dimension_numbers<[1], [0], [0], [1], [0, 0, 1, 1], [], []>} : vector<4x16xf32>, vector<16x32xf32>, vector<4x32xf32> -> vector<4x32xf32>
    %cst_230 = arith.constant dense<0.000000e+00> : vector<4x32xf32>
    %711 = tpu.matmul %643, %5, %cst_230 {dimension_numbers = #tpu.dot_dimension_numbers<[1], [0], [0], [1], [0, 0, 1, 1], [], []>} : vector<4x32xf32>, vector<32x32xf32>, vector<4x32xf32> -> vector<4x32xf32>
    %712 = arith.addf %710, %711 : vector<4x32xf32>
    %713 = arith.addf %712, %10 : vector<4x32xf32>
    %714 = arith.negf %713 : vector<4x32xf32>
    %715 = math.exp %714 : vector<4x32xf32>
    %cst_231 = arith.constant 1.000000e+00 : f32
    %716 = vector.broadcast %cst_231 : f32 to vector<4x32xf32>
    %717 = arith.addf %716, %715 : vector<4x32xf32>
    %718 = arith.divf %716, %717 : vector<4x32xf32>
    %cst_232 = arith.constant dense<0.000000e+00> : vector<4x32xf32>
    %719 = tpu.matmul %709, %3, %cst_232 {dimension_numbers = #tpu.dot_dimension_numbers<[1], [0], [0], [1], [0, 0, 1, 1], [], []>} : vector<4x16xf32>, vector<16x32xf32>, vector<4x32xf32> -> vector<4x32xf32>
    %cst_233 = arith.constant dense<0.000000e+00> : vector<4x32xf32>
    %720 = tpu.matmul %643, %6, %cst_233 {dimension_numbers = #tpu.dot_dimension_numbers<[1], [0], [0], [1], [0, 0, 1, 1], [], []>} : vector<4x32xf32>, vector<32x32xf32>, vector<4x32xf32> -> vector<4x32xf32>
    %721 = arith.addf %719, %720 : vector<4x32xf32>
    %722 = arith.addf %721, %13 : vector<4x32xf32>
    %723 = arith.negf %722 : vector<4x32xf32>
    %724 = math.exp %723 : vector<4x32xf32>
    %cst_234 = arith.constant 1.000000e+00 : f32
    %725 = vector.broadcast %cst_234 : f32 to vector<4x32xf32>
    %726 = arith.addf %725, %724 : vector<4x32xf32>
    %727 = arith.divf %725, %726 : vector<4x32xf32>
    %cst_235 = arith.constant dense<0.000000e+00> : vector<4x32xf32>
    %728 = tpu.matmul %709, %4, %cst_235 {dimension_numbers = #tpu.dot_dimension_numbers<[1], [0], [0], [1], [0, 0, 1, 1], [], []>} : vector<4x16xf32>, vector<16x32xf32>, vector<4x32xf32> -> vector<4x32xf32>
    %729 = arith.addf %728, %16 : vector<4x32xf32>
    %cst_236 = arith.constant dense<0.000000e+00> : vector<4x32xf32>
    %730 = tpu.matmul %643, %7, %cst_236 {dimension_numbers = #tpu.dot_dimension_numbers<[1], [0], [0], [1], [0, 0, 1, 1], [], []>} : vector<4x32xf32>, vector<32x32xf32>, vector<4x32xf32> -> vector<4x32xf32>
    %731 = arith.addf %730, %19 : vector<4x32xf32>
    %732 = arith.mulf %718, %731 : vector<4x32xf32>
    %733 = arith.addf %729, %732 : vector<4x32xf32>
    %734 = math.tanh %733 : vector<4x32xf32>
    %cst_237 = arith.constant 1.000000e+00 : f32
    %735 = vector.broadcast %cst_237 : f32 to vector<4x32xf32>
    %736 = arith.subf %735, %727 : vector<4x32xf32>
    %737 = arith.mulf %736, %734 : vector<4x32xf32>
    %738 = arith.mulf %727, %643 : vector<4x32xf32>
    %739 = arith.addf %737, %738 : vector<4x32xf32>
    %cst_238 = arith.constant dense<0.000000e+00> : vector<4x32xf32>
    %740 = tpu.matmul %739, %20, %cst_238 {dimension_numbers = #tpu.dot_dimension_numbers<[1], [0], [0], [1], [0, 0, 1, 1], [], []>} : vector<4x32xf32>, vector<32x32xf32>, vector<4x32xf32> -> vector<4x32xf32>
    %741 = arith.addf %740, %23 : vector<4x32xf32>
    %cst_239 = arith.constant 0.000000e+00 : f32
    %742 = vector.broadcast %cst_239 : f32 to vector<4x32xf32>
    %743 = arith.maximumf %741, %742 : vector<4x32xf32>
    %cst_240 = arith.constant dense<0.000000e+00> : vector<4x8xf32>
    %744 = tpu.matmul %743, %24, %cst_240 {dimension_numbers = #tpu.dot_dimension_numbers<[1], [0], [0], [1], [0, 0, 1, 1], [], []>} : vector<4x32xf32>, vector<32x8xf32>, vector<4x8xf32> -> vector<4x8xf32>
    %745 = arith.addf %744, %27 : vector<4x8xf32>
    %746 = arith.negf %745 : vector<4x8xf32>
    %747 = math.exp %746 : vector<4x8xf32>
    %cst_241 = arith.constant 1.000000e+00 : f32
    %748 = vector.broadcast %cst_241 : f32 to vector<4x8xf32>
    %749 = arith.addf %748, %747 : vector<4x8xf32>
    %750 = arith.divf %748, %749 : vector<4x8xf32>
    %cst_242 = arith.constant dense<0.000000e+00> : vector<4x8xf32>
    %751 = tpu.matmul %743, %28, %cst_242 {dimension_numbers = #tpu.dot_dimension_numbers<[1], [0], [0], [1], [0, 0, 1, 1], [], []>} : vector<4x32xf32>, vector<32x8xf32>, vector<4x8xf32> -> vector<4x8xf32>
    %752 = arith.addf %751, %31 : vector<4x8xf32>
    %cst_243 = arith.constant 2.000000e+01 : f32
    %753 = vector.broadcast %cst_243 : f32 to vector<4x8xf32>
    %754 = arith.cmpf ogt, %752, %753 : vector<4x8xf32>
    %cst_244 = arith.constant 2.000000e+01 : f32
    %755 = vector.broadcast %cst_244 : f32 to vector<4x8xf32>
    %756 = arith.minimumf %752, %755 : vector<4x8xf32>
    %757 = math.exp %756 : vector<4x8xf32>
    %758 = math.log1p %757 : vector<4x8xf32>
    %759 = arith.select %754, %752, %758 : vector<4x8xi1>, vector<4x8xf32>
    %760 = vector.extract_strided_slice %1 {offsets = [0, 7, 0], sizes = [4, 1, 8], strides = [1, 1, 1]} : vector<4x8x8xf32> to vector<4x1x8xf32>
    %761 = vector.shape_cast %760 : vector<4x1x8xf32> to vector<4x8xf32>
    %762 = arith.mulf %761, %759 : vector<4x8xf32>
    %763 = arith.addf %762, %750 : vector<4x8xf32>
    %764 = vector.extract_strided_slice %32 {offsets = [7, 0, 0], sizes = [1, 2, 8], strides = [1, 1, 1]} : vector<8x2x8xf32> to vector<1x2x8xf32>
    %765 = vector.shape_cast %764 : vector<1x2x8xf32> to vector<2x8xf32>
    %766 = vector.extract_strided_slice %33 {offsets = [7, 0, 0], sizes = [1, 2, 1], strides = [1, 1, 1]} : vector<8x2x1xf32> to vector<1x2x1xf32>
    %767 = vector.shape_cast %766 : vector<1x2x1xf32> to vector<2x1xf32>
    %768 = vector.extract_strided_slice %34 {offsets = [7, 0, 0], sizes = [1, 2, 8], strides = [1, 1, 1]} : vector<8x2x8xf32> to vector<1x2x8xf32>
    %769 = vector.shape_cast %768 : vector<1x2x8xf32> to vector<2x8xf32>
    %770 = vector.extract_strided_slice %765 {offsets = [0, 0], sizes = [1, 8], strides = [1, 1]} : vector<2x8xf32> to vector<1x8xf32>
    %771 = vector.broadcast %770 : vector<1x8xf32> to vector<4x8xf32>
    %772 = arith.mulf %763, %771 : vector<4x8xf32>
    %cst_245 = arith.constant dense<0.000000e+00> : vector<4xf32>
    %773 = vector.multi_reduction <add>, %772, %cst_245 [1] : vector<4x8xf32> to vector<4xf32>
    %774 = vector.shape_cast %773 : vector<4xf32> to vector<4x1xf32>
    %775 = vector.extract_strided_slice %769 {offsets = [0, 0], sizes = [1, 8], strides = [1, 1]} : vector<2x8xf32> to vector<1x8xf32>
    %776 = vector.extract_strided_slice %767 {offsets = [0, 0], sizes = [1, 1], strides = [1, 1]} : vector<2x1xf32> to vector<1x1xf32>
    %777 = vector.broadcast %776 : vector<1x1xf32> to vector<4x1xf32>
    %778 = arith.addf %774, %777 : vector<4x1xf32>
    %779 = math.tanh %778 : vector<4x1xf32>
    %780 = vector.broadcast %775 : vector<1x8xf32> to vector<4x8xf32>
    %781 = vector.broadcast %779 : vector<4x1xf32> to vector<4x8xf32>
    %782 = arith.mulf %780, %781 : vector<4x8xf32>
    %783 = arith.addf %763, %782 : vector<4x8xf32>
    %784 = vector.extract_strided_slice %765 {offsets = [1, 0], sizes = [1, 8], strides = [1, 1]} : vector<2x8xf32> to vector<1x8xf32>
    %785 = vector.broadcast %784 : vector<1x8xf32> to vector<4x8xf32>
    %786 = arith.mulf %783, %785 : vector<4x8xf32>
    %cst_246 = arith.constant dense<0.000000e+00> : vector<4xf32>
    %787 = vector.multi_reduction <add>, %786, %cst_246 [1] : vector<4x8xf32> to vector<4xf32>
    %788 = vector.shape_cast %787 : vector<4xf32> to vector<4x1xf32>
    %789 = vector.extract_strided_slice %769 {offsets = [1, 0], sizes = [1, 8], strides = [1, 1]} : vector<2x8xf32> to vector<1x8xf32>
    %790 = vector.extract_strided_slice %767 {offsets = [1, 0], sizes = [1, 1], strides = [1, 1]} : vector<2x1xf32> to vector<1x1xf32>
    %791 = vector.broadcast %790 : vector<1x1xf32> to vector<4x1xf32>
    %792 = arith.addf %788, %791 : vector<4x1xf32>
    %793 = math.tanh %792 : vector<4x1xf32>
    %794 = vector.broadcast %789 : vector<1x8xf32> to vector<4x8xf32>
    %795 = vector.broadcast %793 : vector<4x1xf32> to vector<4x8xf32>
    %796 = arith.mulf %794, %795 : vector<4x8xf32>
    %797 = arith.addf %783, %796 : vector<4x8xf32>
    %798 = vector.shape_cast %797 : vector<4x8xf32> to vector<4x1x8xf32>
    %c0_247 = arith.constant 0 : index
    %c7 = arith.constant 7 : index
    %c0_248 = arith.constant 0 : index
    %799 = vector.load %arg22[%c0_247, %c7, %c0_248] : memref<4x8x8xf32, #tpu.memory_space<vmem>>, vector<4x1x8xf32>
    tpu.vector_store %arg22[%c0_247, %c7, %c0_248], %798 {strides = array<i32>} : memref<4x8x8xf32, #tpu.memory_space<vmem>>, vector<4x1x8xf32>,
    %800 = vector.shape_cast %750 : vector<4x8xf32> to vector<4x1x8xf32>
    %c0_249 = arith.constant 0 : index
    %c7_250 = arith.constant 7 : index
    %c0_251 = arith.constant 0 : index
    %801 = vector.load %arg23[%c0_249, %c7_250, %c0_251] : memref<4x8x8xf32, #tpu.memory_space<vmem>>, vector<4x1x8xf32>
    tpu.vector_store %arg23[%c0_249, %c7_250, %c0_251], %800 {strides = array<i32>} : memref<4x8x8xf32, #tpu.memory_space<vmem>>, vector<4x1x8xf32>,
    %802 = vector.shape_cast %759 : vector<4x8xf32> to vector<4x1x8xf32>
    %c0_252 = arith.constant 0 : index
    %c7_253 = arith.constant 7 : index
    %c0_254 = arith.constant 0 : index
    %803 = vector.load %arg24[%c0_252, %c7_253, %c0_254] : memref<4x8x8xf32, #tpu.memory_space<vmem>>, vector<4x1x8xf32>
    tpu.vector_store %arg24[%c0_252, %c7_253, %c0_254], %802 {strides = array<i32>} : memref<4x8x8xf32, #tpu.memory_space<vmem>>, vector<4x1x8xf32>,
    return
  }
  func.func @transform_0(%arg0: i32) -> (i32, i32, i32) {
    %c0_i32 = arith.constant 0 : i32
    %c0_i32_0 = arith.constant 0 : i32
    %c0_i32_1 = arith.constant 0 : i32
    %c0_i32_2 = arith.constant 0 : i32
    return %c0_i32, %c0_i32_0, %c0_i32_1 : i32, i32, i32
  }
  func.func @transform_1(%arg0: i32) -> (i32, i32, i32) {
    %c0_i32 = arith.constant 0 : i32
    %c0_i32_0 = arith.constant 0 : i32
    %c0_i32_1 = arith.constant 0 : i32
    %c0_i32_2 = arith.constant 0 : i32
    return %c0_i32, %c0_i32_0, %c0_i32_1 : i32, i32, i32
  }
  func.func @transform_2(%arg0: i32) -> (i32, i32) {
    %c0_i32 = arith.constant 0 : i32
    %c0_i32_0 = arith.constant 0 : i32
    %c0_i32_1 = arith.constant 0 : i32
    return %c0_i32, %c0_i32_0 : i32, i32
  }
  func.func @transform_3(%arg0: i32) -> (i32, i32) {
    %c0_i32 = arith.constant 0 : i32
    %c0_i32_0 = arith.constant 0 : i32
    %c0_i32_1 = arith.constant 0 : i32
    return %c0_i32, %c0_i32_0 : i32, i32
  }
  func.func @transform_4(%arg0: i32) -> (i32, i32) {
    %c0_i32 = arith.constant 0 : i32
    %c0_i32_0 = arith.constant 0 : i32
    %c0_i32_1 = arith.constant 0 : i32
    return %c0_i32, %c0_i32_0 : i32, i32
  }
  func.func @transform_5(%arg0: i32) -> (i32, i32) {
    %c0_i32 = arith.constant 0 : i32
    %c0_i32_0 = arith.constant 0 : i32
    %c0_i32_1 = arith.constant 0 : i32
    return %c0_i32, %c0_i32_0 : i32, i32
  }
  func.func @transform_6(%arg0: i32) -> (i32, i32) {
    %c0_i32 = arith.constant 0 : i32
    %c0_i32_0 = arith.constant 0 : i32
    %c0_i32_1 = arith.constant 0 : i32
    return %c0_i32, %c0_i32_0 : i32, i32
  }
  func.func @transform_7(%arg0: i32) -> (i32, i32) {
    %c0_i32 = arith.constant 0 : i32
    %c0_i32_0 = arith.constant 0 : i32
    %c0_i32_1 = arith.constant 0 : i32
    return %c0_i32, %c0_i32_0 : i32, i32
  }
  func.func @transform_8(%arg0: i32) -> (i32, i32) {
    %c0_i32 = arith.constant 0 : i32
    %c0_i32_0 = arith.constant 0 : i32
    %c0_i32_1 = arith.constant 0 : i32
    return %c0_i32, %c0_i32_0 : i32, i32
  }
  func.func @transform_9(%arg0: i32) -> (i32, i32) {
    %c0_i32 = arith.constant 0 : i32
    %c0_i32_0 = arith.constant 0 : i32
    %c0_i32_1 = arith.constant 0 : i32
    return %c0_i32, %c0_i32_0 : i32, i32
  }
  func.func @transform_10(%arg0: i32) -> (i32, i32) {
    %c0_i32 = arith.constant 0 : i32
    %c0_i32_0 = arith.constant 0 : i32
    %c0_i32_1 = arith.constant 0 : i32
    return %c0_i32, %c0_i32_0 : i32, i32
  }
  func.func @transform_11(%arg0: i32) -> (i32, i32) {
    %c0_i32 = arith.constant 0 : i32
    %c0_i32_0 = arith.constant 0 : i32
    %c0_i32_1 = arith.constant 0 : i32
    return %c0_i32, %c0_i32_0 : i32, i32
  }
  func.func @transform_12(%arg0: i32) -> (i32, i32) {
    %c0_i32 = arith.constant 0 : i32
    %c0_i32_0 = arith.constant 0 : i32
    %c0_i32_1 = arith.constant 0 : i32
    return %c0_i32, %c0_i32_0 : i32, i32
  }
  func.func @transform_13(%arg0: i32) -> (i32, i32) {
    %c0_i32 = arith.constant 0 : i32
    %c0_i32_0 = arith.constant 0 : i32
    %c0_i32_1 = arith.constant 0 : i32
    return %c0_i32, %c0_i32_0 : i32, i32
  }
  func.func @transform_14(%arg0: i32) -> (i32, i32) {
    %c0_i32 = arith.constant 0 : i32
    %c0_i32_0 = arith.constant 0 : i32
    %c0_i32_1 = arith.constant 0 : i32
    return %c0_i32, %c0_i32_0 : i32, i32
  }
  func.func @transform_15(%arg0: i32) -> (i32, i32) {
    %c0_i32 = arith.constant 0 : i32
    %c0_i32_0 = arith.constant 0 : i32
    %c0_i32_1 = arith.constant 0 : i32
    return %c0_i32, %c0_i32_0 : i32, i32
  }
  func.func @transform_16(%arg0: i32) -> (i32, i32) {
    %c0_i32 = arith.constant 0 : i32
    %c0_i32_0 = arith.constant 0 : i32
    %c0_i32_1 = arith.constant 0 : i32
    return %c0_i32, %c0_i32_0 : i32, i32
  }
  func.func @transform_17(%arg0: i32) -> (i32, i32) {
    %c0_i32 = arith.constant 0 : i32
    %c0_i32_0 = arith.constant 0 : i32
    %c0_i32_1 = arith.constant 0 : i32
    return %c0_i32, %c0_i32_0 : i32, i32
  }
  func.func @transform_18(%arg0: i32) -> (i32, i32, i32) {
    %c0_i32 = arith.constant 0 : i32
    %c0_i32_0 = arith.constant 0 : i32
    %c0_i32_1 = arith.constant 0 : i32
    %c0_i32_2 = arith.constant 0 : i32
    return %c0_i32, %c0_i32_0, %c0_i32_1 : i32, i32, i32
  }
  func.func @transform_19(%arg0: i32) -> (i32, i32, i32) {
    %c0_i32 = arith.constant 0 : i32
    %c0_i32_0 = arith.constant 0 : i32
    %c0_i32_1 = arith.constant 0 : i32
    %c0_i32_2 = arith.constant 0 : i32
    return %c0_i32, %c0_i32_0, %c0_i32_1 : i32, i32, i32
  }
  func.func @transform_20(%arg0: i32) -> (i32, i32, i32) {
    %c0_i32 = arith.constant 0 : i32
    %c0_i32_0 = arith.constant 0 : i32
    %c0_i32_1 = arith.constant 0 : i32
    %c0_i32_2 = arith.constant 0 : i32
    return %c0_i32, %c0_i32_0, %c0_i32_1 : i32, i32, i32
  }
  func.func @transform_21(%arg0: i32) -> (i32, i32, i32) {
    %c0_i32 = arith.constant 0 : i32
    %c0_i32_0 = arith.constant 0 : i32
    %c0_i32_1 = arith.constant 0 : i32
    %c0_i32_2 = arith.constant 0 : i32
    return %c0_i32, %c0_i32_0, %c0_i32_1 : i32, i32, i32
  }
  func.func @transform_22(%arg0: i32) -> (i32, i32, i32) {
    %c0_i32 = arith.constant 0 : i32
    %c0_i32_0 = arith.constant 0 : i32
    %c0_i32_1 = arith.constant 0 : i32
    %c0_i32_2 = arith.constant 0 : i32
    return %c0_i32, %c0_i32_0, %c0_i32_1 : i32, i32, i32
  }
  func.func @transform_23(%arg0: i32) -> (i32, i32, i32) {
    %c0_i32 = arith.constant 0 : i32
    %c0_i32_0 = arith.constant 0 : i32
    %c0_i32_1 = arith.constant 0 : i32
    %c0_i32_2 = arith.constant 0 : i32
    return %c0_i32, %c0_i32_0, %c0_i32_1 : i32, i32, i32
  }
}

</mosaic_0001>

<bundles_post_ra>
// kernel: encoder_forward.1
= control target key start
LH: loop header
LB: loop body
LE: loop exit
PB: predicated region body
PF: predicated region fallthrough
CT: control target
= control target key end

     0   :  { %s11043_s0 = inlined_call_operand.vmem [shape: f32[4,8,16], index: 0, kind: input, shape index: {}]   ;;  %s11044_s1 = inlined_call_operand.vmem [shape: f32[4,8,8], index: 1, kind: input, shape index: {}]   ;;  %s11045_s2 = inlined_call_operand.vmem [shape: f32[16,32], index: 2, kind: input, shape index: {}]   ;;  %s11046_s3 = inlined_call_operand.vmem [shape: f32[16,32], index: 3, kind: input, shape index: {}]   ;;  %s11047_s4 = inlined_call_operand.vmem [shape: f32[16,32], index: 4, kind: input, shape index: {}]   ;;  %s11048_s5 = inlined_call_operand.vmem [shape: f32[32,32], index: 5, kind: input, shape index: {}]   ;;  %s11049_s6 = inlined_call_operand.vmem [shape: f32[32,32], index: 6, kind: input, shape index: {}]   ;;  %s11050_s7 = inlined_call_operand.vmem [shape: f32[32,32], index: 7, kind: input, shape index: {}]   ;;  %s11051_s8 = inlined_call_operand.vmem [shape: f32[1,32], index: 8, kind: input, shape index: {}]   ;;  %s11052_s9 = inlined_call_operand.vmem [shape: f32[1,32], index: 9, kind: input, shape index: {}]   ;;  %s11053_s10 = inlined_call_operand.vmem [shape: f32[1,32], index: 10, kind: input, shape index: {}]   ;;  %s11054_s11 = inlined_call_operand.vmem [shape: f32[1,32], index: 11, kind: input, shape index: {}]   ;;  %s11055_s12 = inlined_call_operand.vmem [shape: f32[32,32], index: 12, kind: input, shape index: {}]   ;;  %s11056_s13 = inlined_call_operand.vmem [shape: f32[1,32], index: 13, kind: input, shape index: {}]   ;;  %s11057_s14 = inlined_call_operand.vmem [shape: f32[32,8], index: 14, kind: input, shape index: {}]   ;;  %s11058_s15 = inlined_call_operand.vmem [shape: f32[1,8], index: 15, kind: input, shape index: {}]   ;;  %s11059_s16 = inlined_call_operand.vmem [shape: f32[32,8], index: 16, kind: input, shape index: {}]   ;;  %s11060_s17 = inlined_call_operand.vmem [shape: f32[1,8], index: 17, kind: input, shape index: {}]   ;;  %s11061_s18 = inlined_call_operand.vmem [shape: f32[8,2,8], index: 18, kind: input, shape index: {}]   ;;  %s11062_s19 = inlined_call_operand.vmem [shape: f32[8,2,1], index: 19, kind: input, shape index: {}]   ;;  %s11063_s20 = inlined_call_operand.vmem [shape: f32[8,2,8], index: 20, kind: input, shape index: {}]   ;;  %s11064_s21 = inlined_call_operand.hbm [shape: f32[4,8,8], index: 21, kind: output, shape index: {0}]   ;;  %s11065_s22 = inlined_call_operand.hbm [shape: f32[4,8,8], index: 22, kind: output, shape index: {1}]   ;;  %s11066_s23 = inlined_call_operand.hbm [shape: f32[4,8,8], index: 23, kind: output, shape index: {2}]  }
   0x1   :  { %11096 = sst [smem:[#allocation27_spill]] %s11043_s0 }
   0x2   :  { %11097 = sst [smem:[#allocation28_spill]] %s11044_s1 }
   0x3   :  { %11098 = sst [smem:[#allocation29_spill]] %s11045_s2 }
   0x4   :  { %11099 = sst [smem:[#allocation30_spill]] %s11046_s3 }
   0x5   :  { %11100 = sst [smem:[#allocation31_spill]] %s11047_s4 }
   0x6   :  { %11101 = sst [smem:[#allocation32_spill]] %s11048_s5 }
   0x7   :  { %11102 = sst [smem:[#allocation33_spill]] %s11049_s6 }
   0x8   :  { %11103 = sst [smem:[#allocation34_spill]] %s11050_s7 }
   0x9   :  { %29 = vsyncpa [#allocation3], 0  ;;  %s11104_s24 = sld [smem:[#allocation32_spill]]  ;;  %s11105_s2 = sld [smem:[#allocation29_spill]]  ;;  %v11075_v3 = vmov 0.0|0.0   ;;  %vm9150_vm0 = vmmov 0  }
   0xa   :  { %8480 = vmatprep.subr.bf16.mxu0 %v11075_v3  ;;  %8486 = vmatprep.subr.bf16.mxu1 %v11075_v3  ;;  %v11077_v9 = vmov 0.0   ;;  %s11106_s30 = sld [smem:[#allocation27_spill]]  ;;  %vm263_vm1 = vcmask 1041409   ;;  %vm266_vm2 = vcmask 1042434   ;;  %s11107_s7 = sld [smem:[#allocation33_spill]]  ;;  %vm269_vm3 = vcmask 1043459  }
   0xb   :  { %7799 = vmatprep.mubr.msk.f32.mxu1 %vm9150_vm0, %v11077_v9  ;;  %7792 = vmatprep.mubr.msk.f32.mxu0 %vm9150_vm0, %v11077_v9  ;;  %s11108_s4 = sld [smem:[#allocation30_spill]]  ;;  %vm271_vm4 = vcmask 130048  }
   0xf   :  { %v87_v0 = vld [vmem:[%s11104_s24] sm:$0xff]  ;;  %v88_v1 = vld [vmem:[%s11104_s24 + $0x8] sm:$0xff]  ;;  %v89_v6 = vld [vmem:[%s11104_s24 + $0x10] sm:$0xff] }
  0x10   :  { %v81_v2 = vld [vmem:[%s11105_s2] sm:$0xff]  ;;  %v9289_v4 = vpack.c.bf16 %v88_v1, %v87_v0  ;;  %v82_v5 = vld [vmem:[%s11105_s2 + $0x8] sm:$0xff]  ;;  %v90_v7 = vld [vmem:[%s11104_s24 + $0x18] sm:$0xff] }
  0x11   :  { %v9301_v8 = vpack.c.bf16 %v82_v5, %v81_v2  ;;  %v9310_v10 = vld [vmem:[%s11106_s30] sm:$0xff]  ;;  %v9315_v11 = vld [vmem:[%s11106_s30 + $0x8] sm:$0xff]  ;;  %v9320_v12 = vld [vmem:[%s11106_s30 + $0x10] sm:$0xff]  ;;  %v9323_v13 = vpack.c.bf16 %v90_v7, %v89_v6 }
  0x12   :  { %8482 = vmatpush3.bf16.msra.mxu0 %v9289_v4  ;;  %v9328_v14 = vld [vmem:[%s11106_s30 + $0x18] sm:$0xff]  ;;  %v262_v15 = vrot.slane %v9315_v11, 7  ;;  %v265_v16 = vrot.slane %v9320_v12, 6  ;;  %v91_v17 = vld [vmem:[%s11107_s7] sm:$0xff]  ;;  %v92_v18 = vld [vmem:[%s11107_s7 + $0x8] sm:$0xff] }
  0x13   :  { %8483 = vmatprep.subr.bf16.mxu0 %v11075_v3  ;;  %8488 = vmatpush3.bf16.msra.mxu1 %v9301_v8  ;;  %v268_v19 = vrot.slane %v9328_v14, 5  ;;  %v83_v20 = vld [vmem:[%s11108_s4] sm:$0xff]  ;;  %v9347_v22 = vpack.c.bf16 %v92_v18, %v91_v17  ;;  %v84_v23 = vld [vmem:[%s11108_s4 + $0x8] sm:$0xff]  ;;  %v93_v25 = vld [vmem:[%s11107_s7 + $0x10] sm:$0xff] }
  0x14   :  { %v264_v21 = vsel %vm263_vm1, %v262_v15, %v9310_v10  ;;  %8489 = vmatprep.subr.bf16.mxu1 %v11075_v3  ;;  %v94_v26 = vld [vmem:[%s11107_s7 + $0x18] sm:$0xff]  ;;  %v9361_v28 = vpack.c.bf16 %v84_v23, %v83_v20 }
  0x15   :  { %v267_v24 = vsel %vm266_vm2, %v265_v16, %v264_v21 }
  0x16   :  { %8485 = vmatpush3.bf16.msra.mxu0 %v9323_v13  ;;  %v270_v27 = vsel %vm269_vm3, %v268_v19, %v267_v24 }
  0x17   :  { %30 = vsyncpa [#allocation5], 0  ;;  %7800 = vmatmul.mubr.msk.f32.vlgmr.msra.gmra.mrb[0].mxu1 %vm271_vm4, %v270_v27  ;;  %8495 = vmatprep.subr.bf16.mxu0 %v11075_v3  ;;  %s11109_s28 = sld [smem:[#allocation31_spill]]  ;;  %v9372_v31 = vpack.c.bf16 %v94_v26, %v93_v25  ;;  %s11110_s4 = sld [smem:[#allocation34_spill]]  ;;  %v127_v39 = vld [vmem:[%s11055_s12] sm:$0xff]  ;;  %v128_v40 = vld [vmem:[%s11055_s12 + $0x8] sm:$0xff] }
  0x18   :  { %8491 = vmatpush3.bf16.msra.mxu1 %v9347_v22  ;;  %7810 = vmatprep.mubr.msk.f32.mxu1 %vm9150_vm0, %v11077_v9  ;;  %v129_v41 = vld [vmem:[%s11055_s12 + $0x10] sm:$0xff]  ;;  %v9429_v42 = vpack.c.bf16 %v128_v40, %v127_v39  ;;  %v130_v43 = vld [vmem:[%s11055_s12 + $0x18] sm:$0xff]  ;;  %v138_v45 = vld [vmem:[%s11057_s14] sm:$0xff]  ;;  %vm184_vm5 = vcmask 261120   ;;  %vm1007_vm6 = vcmask 57344   ;;  %s11111_s24 = sld [smem:[#allocation28_spill]] }
  0x19   :  { %7793 = vmatmul.mubr.f32.vlgmr.msra.gmra.mrb[0].mxu0 %v11077_v9  ;;  %8492 = vmatprep.subr.bf16.mxu1 %v11075_v3  ;;  %v9435_v44 = vpack.c.bf16 %v130_v43, %v129_v41  ;;  %v139_v46 = vld [vmem:[%s11057_s14 + $0x8] sm:$0xff]  ;;  %v9453_v50 = vld [vmem:[%s11051_s8] ss:$0 sm:$0xff]  ;;  %v140_v39 = vld [vmem:[%s11057_s14 + $0x10] sm:$0xff]  ;;  %vm925_vm9 = vcmask 60416   ;;  %vm1803_vm12 = vcmask 1044484  }
  0x1a   :  { %8497 = vmatpush3.bf16.msra.mxu0 %v9361_v28  ;;  %7817 = vmatprep.mubr.msk.f32.mxu0 %vm9150_vm0, %v11077_v9  ;;  %v9446_v47 = vpack.c.bf16 %v139_v46, %v138_v45  ;;  %v9459_v59 = vld [vmem:[%s11052_s9] ss:$0 sm:$0xff]  ;;  %v141_v40 = vld [vmem:[%s11057_s14 + $0x18] sm:$0xff]  ;;  %v151_v41 = vld [vmem:[%s11059_s16 + $0x10] sm:$0xff]  ;;  %vm1806_vm13 = vcmask 61441  }
  0x1b   :  { %8498 = vmatprep.subr.bf16.mxu0 %v11075_v3  ;;  %v9465_v16 = vld [vmem:[%s11054_s11] ss:$0 sm:$0xff]  ;;  %v9499_v43 = vpack.c.bf16 %v141_v40, %v140_v39  ;;  %v152_v45 = vld [vmem:[%s11059_s16 + $0x18] sm:$0xff] }
  0x1c   :  { %8494 = vmatpush3.bf16.msra.mxu1 %v9372_v31  ;;  %v9470_v18 = vld [vmem:[%s11053_s10] ss:$0 sm:$0xff]  ;;  %v9504_v46 = vpack.c.bf16 %v152_v45, %v151_v41 }
  0x1d   :  { %v85_v29 = vld [vmem:[%s11109_s28] sm:$0xff]  ;;  %v86_v30 = vld [vmem:[%s11109_s28 + $0x8] sm:$0xff]  ;;  %7818 = vmatmul.mubr.msk.f32.vlgmr.msra.gmra.mrb[2].mxu0 %vm271_vm4, %v270_v27  ;;  %8501 = vmatprep.subr.bf16.mxu1 %v11075_v3  ;;  %v97_v36 = vld [vmem:[%s11110_s4 + $0x10] sm:$0xff] }
  0x1e   :  { %v95_v32 = vld [vmem:[%s11110_s4] sm:$0xff]  ;;  %v96_v33 = vld [vmem:[%s11110_s4 + $0x8] sm:$0xff]  ;;  %v9387_v34 = vpack.c.bf16 %v86_v30, %v85_v29  ;;  %v98_v37 = vld [vmem:[%s11110_s4 + $0x18] sm:$0xff]  ;;  %7824 = vmatprep.mubr.msk.f32.mxu0 %vm9150_vm0, %v11077_v9 }
  0x1f   :  { %v9391_v35 = vpack.c.bf16 %v96_v33, %v95_v32  ;;  %7811 = vmatmul.mubr.f32.vlgmr.msra.gmra.mrb[2].mxu1 %v11077_v9  ;;  %v9407_v38 = vpack.c.bf16 %v98_v37, %v97_v36  ;;  %v150_v29 = vld [vmem:[%s11059_s16 + $0x8] sm:$0xff] }
  0x20   :  { %8500 = vmatpush3.bf16.msra.mxu0 %v9387_v34  ;;  %7835 = vmatprep.mubr.msk.f32.mxu1 %vm9150_vm0, %v11077_v9 }
  0x21   :  { %8507 = vmatprep.subr.bf16.mxu0 %v11075_v3  ;;  %8503 = vmatpush3.bf16.msra.mxu1 %v9391_v35 }
  0x22   :  { %8504 = vmatprep.subr.bf16.mxu1 %v11075_v3 }
  0x23   :  { %7825 = vmatmul.mubr.msk.f32.vlgmr.msra.gmra.mrb[4].mxu0 %vm271_vm4, %v270_v27  ;;  %v149_v27 = vld [vmem:[%s11059_s16] sm:$0xff] }
  0x24   :  { %7846 = vmatprep.mubr.msk.f32.mxu0 %vm9150_vm0, %v11077_v9  ;;  %8509 = vmatpush3.bf16.msra.mxu0 %v9429_v42  ;;  %v9480_v36 = vpack.c.bf16 %v150_v29, %v149_v27 }
  0x25   :  { %8506 = vmatpush3.bf16.msra.mxu1 %v9407_v38  ;;  %8510 = vmatprep.subr.bf16.mxu0 %v11075_v3 }
  0x26   :  { %8513 = vmatprep.subr.bf16.mxu1 %v11075_v3 }
  0x28   :  { %7836 = vmatmul.mubr.f32.vlgmr.msra.gmra.mrb[4].mxu1 %v11077_v9  ;;  %8512 = vmatpush3.bf16.msra.mxu0 %v9435_v44 }
  0x29   :  { %7857 = vmatprep.mubr.msk.f32.mxu1 %vm9150_vm0, %v11077_v9  ;;  %8519 = vmatprep.subr.bf16.mxu0 %v11075_v3 }
  0x2a   :  { %8515 = vmatpush3.bf16.msra.mxu1 %v9446_v47 }
  0x2b   :  { %8516 = vmatprep.subr.bf16.mxu1 %v11075_v3 }
  0x2e   :  { %8518 = vmatpush3.bf16.msra.mxu1 %v9499_v43 }
  0x2f   :  { %8525 = vmatprep.subr.bf16.mxu1 %v11075_v3 }
  0xea   :  { %v340_v48 = vpop.f32.mrb[0].mxu1 }
  0xeb   :  { %v7801_v49 = vpop.f32.mrb[1].mxu1 }
  0xec   :  { %v254_v51 = vpop.f32.mrb[0].mxu0  ;;  %v9514_v49 = vld [vmem:[%s11056_s13] ss:$0 sm:$0xff] }
  0xed   :  { %v341_v52 = vadd.f32 %v340_v48, %v254_v51  ;;  %v7794_v53 = vpop.f32.mrb[1].mxu0  ;;  %v1146_v48 = vrot.slane %v9310_v10, 1  ;;  %v1148_v51 = vrot.slane %v9320_v12, 7 }
  0xef   :  { %v344_v54 = vadd.f32 %v9453_v50, %v341_v52  ;;  %v1147_v53 = vsel %vm263_vm1, %v9315_v11, %v1146_v48  ;;  %v906_v48 = vlaneseq }
  0xf0   :  { %v487_v55 = vpop.f32.mrb[2].mxu0 }
  0xf1   :  { %v7380_v56 = vmul.f32 -1.442695, %v344_v54  ;;  %v7819_v57 = vpop.f32.mrb[3].mxu0 }
  0xf2   :  { %v417_v58 = vpop.f32.mrb[2].mxu1 }
  0xf3   :  { %8852 = vpow2.f32 %v7380_v56  ;;  %v488_v60 = vadd.f32 %v487_v55, %v417_v58  ;;  %v7812_v61 = vpop.f32.mrb[3].mxu1  ;;  %v1150_v56 = vrot.slane %v9328_v14, 6  ;;  %v1149_v58 = vsel %vm266_vm2, %v1148_v51, %v1147_v53 }
  0xf4   :  { %v9579_v61 = vld [vmem:[%s11058_s15] ss:$0 sm:$0xff]  ;;  %v9152_v51 = vmov 1966171168  }
  0xf5   :  { %v491_v63 = vadd.f32 %v9459_v59, %v488_v60  ;;  %v1151_v60 = vsel %vm269_vm3, %v1150_v56, %v1149_v58  ;;  %v9593_v58 = vshrl.u32 %v906_v48, 7 }
  0xf6   :  { %v564_v62 = vpop.f32.mrb[4].mxu0 }
  0xf7   :  { %v7826_v0 = vpop.f32.mrb[5].mxu0  ;;  %v7382_v1 = vmul.f32 -1.442695, %v491_v63  ;;  %v565_v20 = vadd.f32 %v9470_v18, %v564_v62  ;;  %v9584_v62 = vld [vmem:[%s11060_s17] ss:$0 sm:$0xff] }
  0xf9   :  { %8854 = vpow2.f32 %v7382_v1 }
  0xfb   :  { %v634_v2 = vpop.f32.mrb[4].mxu1 }
  0xfc   :  { %v7837_v5 = vpop.f32.mrb[5].mxu1  ;;  %v635_v19 = vadd.f32 %v9465_v16, %v634_v2 }
  0xfd   :  { %v8853_v6 = vpop.eup %8852 }
  0xfe   :  { %v348_v7 = vadd.f32 1.0, %v8853_v6 }
 0x100   :  { %8856 = vrcp.f32 %v348_v7 }
 0x103   :  { %v8855_v15 = vpop.eup %8854 }
 0x104   :  { %v495_v17 = vadd.f32 1.0, %v8855_v15 }
 0x106   :  { %8858 = vrcp.f32 %v495_v17 }
 0x10a   :  { %v8857_v21 = vpop.eup %8856 }
 0x10b   :  { %v638_v23 = vmul.f32 %v8857_v21, %v635_v19 }
 0x10d   :  { %v639_v24 = vadd.f32 %v638_v23, %v565_v20 }
 0x10f   :  { %8860 = vtanh.f32 %v639_v24 }
 0x110   :  { %v8859_v25 = vpop.eup %8858 }
 0x111   :  { %v641_v26 = vsub.f32 1.0, %v8859_v25  ;;  %v643_v33 = vmul.f32 0.0, %v8859_v25 }
 0x119   :  { %v8861_v30 = vpop.eup %8860 }
 0x11a   :  { %v642_v32 = vmul.f32 %v8861_v30, %v641_v26 }
 0x11c   :  { %v9482_v37 = vadd.f32 %v643_v33, %v642_v32 }
 0x11e   :  { %7847 = vmatmul.mubr.msk.f32.vlgmr.msra.gmra.mrb[6].mxu0 %vm184_vm5, %v9482_v37 }
 0x11f   :  { %8521 = vmatpush3.bf16.msra.mxu0 %v9480_v36  ;;  %7868 = vmatprep.mubr.msk.f32.mxu0 %vm9150_vm0, %v11077_v9 }
 0x120   :  { %8522 = vmatprep.subr.bf16.mxu0 %v11075_v3 }
 0x123   :  { %8524 = vmatpush3.bf16.msra.mxu0 %v9504_v46 }
 0x124   :  { %8531 = vmatprep.subr.bf16.mxu0 %v11075_v3 }
 0x1f1   :  { %v714_v52 = vpop.f32.mrb[6].mxu0 }
 0x1f2   :  { %v715_v54 = vadd.f32 %v9514_v49, %v714_v52  ;;  %v7848_v55 = vpop.f32.mrb[7].mxu0  ;;  %v1013_v52 = vunpack.c.l.s4 %v9152_v51 }
 0x1f4   :  { %v718_v57 = vmax.f32 %v715_v54, 0.0 }
 0x1f6   :  { %7858 = vmatmul.mubr.msk.f32.vlgmr.msra.gmra.mrb[6].mxu1 %vm184_vm5, %v718_v57  ;;  %7869 = vmatmul.mubr.msk.f32.vlgmr.msra.gmra.mrb[8].mxu0 %vm184_vm5, %v718_v57 }
 0x1f7   :  { %8527 = vmatpush3.bf16.msra.mxu1 %v9289_v4  ;;  %8533 = vmatpush3.bf16.msra.mxu0 %v9301_v8 }
 0x1f8   :  { %8528 = vmatprep.subr.bf16.mxu1 %v11075_v3  ;;  %7886 = vmatprep.mubr.msk.f32.mxu0 %vm9150_vm0, %v11077_v9 }
 0x1f9   :  { %8534 = vmatprep.subr.bf16.mxu0 %v11075_v3  ;;  %7879 = vmatprep.mubr.msk.f32.mxu1 %vm9150_vm0, %v11077_v9 }
 0x1fa   :  { %7887 = vmatmul.mubr.msk.f32.vlgmr.msra.gmra.mrb[10].mxu0 %vm271_vm4, %v1151_v60 }
 0x1fb   :  { %8530 = vmatpush3.bf16.msra.mxu1 %v9323_v13  ;;  %8536 = vmatpush3.bf16.msra.mxu0 %v9347_v22 }
 0x1fc   :  { %8537 = vmatprep.subr.bf16.mxu0 %v11075_v3  ;;  %8540 = vmatprep.subr.bf16.mxu1 %v11075_v3 }
 0x1fd   :  { %7897 = vmatprep.mubr.msk.f32.mxu0 %vm9150_vm0, %v11077_v9 }
 0x1fe   :  { %7880 = vmatmul.mubr.msk.f32.vlgmr.msra.gmra.mrb[8].mxu1 %vm184_vm5, %v9482_v37 }
 0x1ff   :  { %8539 = vmatpush3.bf16.msra.mxu0 %v9372_v31  ;;  %8542 = vmatpush3.bf16.msra.mxu1 %v9361_v28 }
 0x200   :  { %7904 = vmatprep.mubr.msk.f32.mxu1 %vm9150_vm0, %v11077_v9  ;;  %8546 = vmatprep.subr.bf16.mxu0 %v11075_v3 }
 0x201   :  { %8543 = vmatprep.subr.bf16.mxu1 %v11075_v3 }
 0x202   :  { %7898 = vmatmul.mubr.msk.f32.vlgmr.msra.gmra.mrb[12].mxu0 %vm184_vm5, %v9482_v37  ;;  %7905 = vmatmul.mubr.msk.f32.vlgmr.msra.gmra.mrb[10].mxu1 %vm271_vm4, %v1151_v60 }
 0x203   :  { %8548 = vmatpush3.bf16.msra.mxu0 %v9391_v35  ;;  %7922 = vmatprep.mubr.msk.f32.mxu0 %vm9150_vm0, %v11077_v9 }
 0x204   :  { %8549 = vmatprep.subr.bf16.mxu0 %v11075_v3  ;;  %8545 = vmatpush3.bf16.msra.mxu1 %v9387_v34 }
 0x205   :  { %7911 = vmatprep.mubr.msk.f32.mxu1 %vm9150_vm0, %v11077_v9  ;;  %8552 = vmatprep.subr.bf16.mxu1 %v11075_v3 }
 0x207   :  { %8551 = vmatpush3.bf16.msra.mxu0 %v9407_v38  ;;  %7912 = vmatmul.mubr.msk.f32.vlgmr.msra.gmra.mrb[12].mxu1 %vm271_vm4, %v1151_v60  ;;  %v1014_v60 = vunpack.c.0.s8 %v1013_v52 }
 0x208   :  { %8554 = vmatpush3.bf16.msra.mxu1 %v9429_v42  ;;  %7933 = vmatprep.mubr.msk.f32.mxu1 %vm9150_vm0, %v11077_v9 }
 0x209   :  { %8555 = vmatprep.subr.bf16.mxu1 %v11075_v3  ;;  %8558 = vmatprep.subr.bf16.mxu0 %v11075_v3 }
 0x20a   :  { %7923 = vmatmul.mubr.msk.f32.vlgmr.msra.gmra.mrb[14].mxu0 %vm184_vm5, %v9482_v37 }
 0x20b   :  { %8560 = vmatpush3.bf16.msra.mxu0 %v9446_v47  ;;  %7944 = vmatprep.mubr.msk.f32.mxu0 %vm9150_vm0, %v11077_v9 }
 0x20c   :  { %8557 = vmatpush3.bf16.msra.mxu1 %v9435_v44  ;;  %8561 = vmatprep.subr.bf16.mxu0 %v11075_v3 }
 0x20d   :  { %8564 = vmatprep.subr.bf16.mxu1 %v11075_v3 }
 0x20f   :  { %8563 = vmatpush3.bf16.msra.mxu0 %v9499_v43 }
 0x210   :  { %8570 = vmatprep.subr.bf16.mxu0 %v11075_v3 }
 0x2c9   :  { %v788_v63 = vpop.f32.mrb[6].mxu1  ;;  %v864_v0 = vpop.f32.mrb[8].mxu0 }
 0x2ca   :  { %v789_v1 = vadd.f32 %v9579_v61, %v788_v63  ;;  %v9588_v2 = vadd.f32 %v9584_v62, %v864_v0  ;;  %v7859_v5 = vpop.f32.mrb[7].mxu1  ;;  %v7870_v6 = vpop.f32.mrb[9].mxu0 }
 0x2cb   :  { %v9596_v5 = vsub.s32 %v1014_v60, %v9593_v58 }
 0x2cc   :  { %v7386_v7 = vmul.f32 -1.442695, %v789_v1  ;;  %v869_v15 = vmin.f32 %v9588_v2, 20.0  ;;  %vm868_vm8 = vcmp.gt.f32.partialorder %v9588_v2, 20.0 }
 0x2cd   :  { %v1220_v17 = vpop.f32.mrb[10].mxu0 }
 0x2ce   :  { %8862 = vpow2.f32 %v7386_v7  ;;  %v870_v19 = vmul.f32 1.442695, %v869_v15  ;;  %v7888_v20 = vpop.f32.mrb[11].mxu0 }
 0x2d0   :  { %8864 = vpow2.f32 %v870_v19  ;;  %v9599_v19 = vsub.s32 0, %v9593_v58 }
 0x2d1   :  { %v1142_v21 = vpop.f32.mrb[8].mxu1 }
 0x2d2   :  { %v1221_v23 = vadd.f32 %v1220_v17, %v1142_v21  ;;  %v7881_v24 = vpop.f32.mrb[9].mxu1  ;;  %v9605_v21 = vld [vmem:[%s11061_s18] sm:$0x3] }
 0x2d4   :  { %v1224_v25 = vadd.f32 %v9453_v50, %v1221_v23 }
 0x2d5   :  { %v1297_v26 = vpop.f32.mrb[12].mxu0  ;;  %v1367_v27 = vpop.f32.mrb[10].mxu1 }
 0x2d6   :  { %v7390_v29 = vmul.f32 -1.442695, %v1224_v25  ;;  %v1368_v30 = vadd.f32 %v1367_v27, %v1297_v26  ;;  %v7899_v32 = vpop.f32.mrb[13].mxu0  ;;  %v7906_v33 = vpop.f32.mrb[11].mxu1 }
 0x2d8   :  { %v8863_v39 = vpop.eup %8862  ;;  %8866 = vpow2.f32 %v7390_v29  ;;  %v1371_v40 = vadd.f32 %v9459_v59, %v1368_v30  ;;  %v909_v30 = vrot.slane %v9605_v21, %v9599_v19 }
 0x2d9   :  { %v795_v41 = vadd.f32 1.0, %v8863_v39  ;;  %v9615_v39 = vld [vmem:[%s11111_s24] sm:$0xff] }
 0x2da   :  { %v8865_v45 = vpop.eup %8864  ;;  %v7393_v53 = vmul.f32 -1.442695, %v1371_v40  ;;  %v1444_v54 = vpop.f32.mrb[12].mxu1 }
 0x2db   :  { %8868 = vrcp.f32 %v795_v41  ;;  %v872_v55 = vadd.f32 1.0, %v8865_v45  ;;  %v7913_v56 = vpop.f32.mrb[13].mxu1  ;;  %v875_v0 = vmul.f32 -0.5, %v8865_v45  ;;  %v878_v17 = vand.u32 2147483647, %v8865_v45  ;;  %v9621_v41 = vld [vmem:[%s11111_s24 + $0x8] sm:$0xff] }
 0x2dc   :  { %v1445_v52 = vadd.f32 %v9470_v18, %v1444_v54 }
 0x2dd   :  { %8870 = vlog2.f32 %v872_v55  ;;  %v1514_v57 = vpop.f32.mrb[14].mxu0  ;;  %v876_v7 = vadd.f32 1.0, %v875_v0  ;;  %vm879_vm7 = vcmp.lt.f32.partialorder %v878_v17, 0.0004427343  ;;  %v9634_v55 = vld [vmem:[%s11111_s24 + $0x18] sm:$0xff] }
 0x2de   :  { %8872 = vpow2.f32 %v7393_v53  ;;  %v7924_v63 = vpop.f32.mrb[15].mxu0  ;;  %v1515_v51 = vadd.f32 %v9465_v16, %v1514_v57  ;;  %v9629_v53 = vld [vmem:[%s11111_s24 + $0x10] sm:$0xff] }
 0x2df   :  { %v877_v29 = vmul.f32 %v8865_v45, %v876_v7 }
 0x2e2   :  { %v8867_v1 = vpop.eup %8866 }
 0x2e3   :  { %v1228_v6 = vadd.f32 1.0, %v8867_v1 }
 0x2e5   :  { %v8869_v15 = vpop.eup %8868  ;;  %8874 = vrcp.f32 %v1228_v6 }
 0x2e6   :  { %v1018_v20 = vrot.slane %v8869_v15, %v9596_v5  ;;  %v895_v0 = vrot.slane %v8869_v15, 1  ;;  %v896_v1 = vrot.slane %v8869_v15, 2 }
 0x2e7   :  { %v8871_v23 = vpop.eup %8870 }
 0x2e8   :  { %v8873_v24 = vpop.eup %8872  ;;  %v1019_v25 = vcombine.high %v1018_v20, %v1018_v20  ;;  %v1026_v26 = vrot.slane %v1018_v20, %v9596_v5  ;;  %v874_v27 = vmul.f32 0.6931472, %v8871_v23  ;;  %v897_v20 = vrot.slane %v8869_v15, 3 }
 0x2e9   :  { %v1375_v48 = vadd.f32 1.0, %v8873_v24 }
 0x2ea   :  { %v1033_v32 = vrot.slane %v1019_v25, %v9596_v5  ;;  %v1034_v33 = vcombine.high %v1026_v26, %v1026_v26  ;;  %1040 = vst.msk [vmem:[#allocation4] sm:$0x1] %vm1007_vm6, %v1026_v26  ;;  %v880_v40 = vsel %vm879_vm7, %v877_v29, %v874_v27  ;;  %vm2684_vm7 = vcmask 1045509  }
 0x2eb   :  { %v881_v45 = vsel %vm868_vm8, %v9588_v2, %v880_v40  ;;  %8876 = vrcp.f32 %v1375_v48  ;;  %vm2687_vm8 = vcmask 62466  }
 0x2ec   :  { %v1035_v56 = vcombine.high %v1033_v32, %v1033_v32  ;;  %1041 = vst.msk [vmem:[#allocation4 + $0x8] sm:$0x1] %vm1007_vm6, %v1033_v32  ;;  %1042 = vst.msk [vmem:[#allocation4 + $0x10] sm:$0x1] %vm1007_vm6, %v1034_v33  ;;  %v883_v2 = vrot.slane %v881_v45, 1  ;;  %v884_v60 = vrot.slane %v881_v45, 2  ;;  %v890_v54 = vmul.f32 %v881_v45, %v9615_v39 }
 0x2ed   :  { %v885_v57 = vrot.slane %v881_v45, 3  ;;  %v1050_v63 = vrot.slane %v881_v45, %v9596_v5 }
 0x2ee   :  { %1043 = vst.msk [vmem:[#allocation4 + $0x18] sm:$0x1] %vm1007_vm6, %v1035_v56  ;;  %v891_v6 = vmul.f32 %v883_v2, %v9621_v41  ;;  %v892_v7 = vmul.f32 %v884_v60, %v9629_v53  ;;  %v9645_v26 = vadd.f32 %v8869_v15, %v890_v54 }
 0x2ef   :  { %v893_v17 = vmul.f32 %v885_v57, %v9634_v55  ;;  %v8875_v23 = vpop.eup %8874  ;;  %v1051_v24 = vcombine.high %v1050_v63, %v1050_v63  ;;  %v1058_v25 = vrot.slane %v1050_v63, %v9596_v5 }
 0x2f0   :  { %v1518_v27 = vmul.f32 %v8875_v23, %v1515_v51  ;;  %v9647_v29 = vadd.f32 %v895_v0, %v891_v6  ;;  %v9649_v32 = vadd.f32 %v896_v1, %v892_v7  ;;  %v910_v51 = vmul.f32 %v909_v30, %v9645_v26 }
 0x2f1   :  { %v9651_v33 = vadd.f32 %v897_v20, %v893_v17  ;;  %v1065_v40 = vrot.slane %v1051_v24, %v9596_v5  ;;  %v1066_v45 = vcombine.high %v1058_v25, %v1058_v25  ;;  %1072 = vst.msk [vmem:[#allocation6] sm:$0x1] %vm1007_vm6, %v1058_v25  ;;  %v9153_v25 = vmov 0  }
 0x2f2   :  { %v1519_v56 = vadd.f32 %v1518_v27, %v1445_v52  ;;  %v911_v2 = vmul.f32 %v909_v30, %v9647_v29  ;;  %v912_v60 = vmul.f32 %v909_v30, %v9649_v32  ;;  %8850 = vset.pattern.permute.xlu0 %v9153_v25  ;;  %8851 = vset.pattern.permute.xlu1 %v9153_v25 }
 0x2f3   :  { %v913_v15 = vmul.f32 %v909_v30, %v9651_v33  ;;  %v1067_v48 = vcombine.high %v1065_v40, %v1065_v40  ;;  %1073 = vst.msk [vmem:[#allocation6 + $0x8] sm:$0x1] %vm1007_vm6, %v1065_v40  ;;  %1074 = vst.msk [vmem:[#allocation6 + $0x10] sm:$0x1] %vm1007_vm6, %v1066_v45 }
 0x2f4   :  { %8878 = vtanh.f32 %v1519_v56  ;;  %v918_v57 = vrot.slane %v911_v2, 7  ;;  %v920_v54 = vrot.slane %v912_v60, 6  ;;  %v2027_v2 = vrot.slane %v9310_v10, 2 }
 0x2f5   :  { %1075 = vst.msk [vmem:[#allocation6 + $0x18] sm:$0x1] %vm1007_vm6, %v1067_v48  ;;  %v922_v63 = vrot.slane %v913_v15, 5  ;;  %v8877_v6 = vpop.eup %8876  ;;  %v2028_v60 = vrot.slane %v9315_v11, 1  ;;  %v176_v11 = vld [vmem:[%s11063_s20] sm:$0x3] }
 0x2f6   :  { %v919_v52 = vsel %vm263_vm1, %v918_v57, %v910_v51  ;;  %v1521_v17 = vsub.f32 1.0, %v8877_v6  ;;  %v1523_v30 = vmul.f32 %v8877_v6, %v9482_v37  ;;  %v168_v37 = vld [vmem:[%s11062_s19] sm:$0x3] }
 0x2f7   :  { %v921_v0 = vsel %vm266_vm2, %v920_v54, %v919_v52  ;;  %v932_v27 = vrot.slane %v168_v37, %v9599_v19  ;;  %v2029_v48 = vsel %vm263_vm1, %v2028_v60, %v2027_v2  ;;  %v2031_v54 = vrot.slane %v9328_v14, 7 }
 0x2f8   :  { %v923_v1 = vsel %vm269_vm3, %v922_v63, %v921_v0  ;;  %v2030_v63 = vsel %vm266_vm2, %v9320_v12, %v2029_v48  ;;  %v938_v12 = vrot.slane %v176_v11, %v9599_v19  ;;  %v9747_v0 = vsub.s32 1, %v9593_v58 }
 0x2f9   :  { %v926_v7 = vsel %vm925_vm9, %v923_v1, 0.0  ;;  %v2032_v10 = vsel %vm269_vm3, %v2031_v54, %v2030_v63 }
 0x2fa   :  { %927 = vadd.xlane.f32.xlu0 %v926_v7 }
 0x2fe   :  { %v8879_v20 = vpop.eup %8878 }
 0x2ff   :  { %v1522_v23 = vmul.f32 %v8879_v20, %v1521_v17  ;;  %v960_v20 = vrot.slane %v9605_v21, %v9747_v0 }
 0x301   :  { %v9667_v24 = vadd.f32 %v1523_v30, %v1522_v23 }
 0x303   :  { %7934 = vmatmul.mubr.msk.f32.vlgmr.msra.gmra.mrb[14].mxu1 %vm184_vm5, %v9667_v24 }
 0x304   :  { %8566 = vmatpush3.bf16.msra.mxu1 %v9480_v36  ;;  %7955 = vmatprep.mubr.msk.f32.mxu1 %vm9150_vm0, %v11077_v9 }
 0x305   :  { %8567 = vmatprep.subr.bf16.mxu1 %v11075_v3 }
 0x308   :  { %8569 = vmatpush3.bf16.msra.mxu1 %v9504_v46 }
 0x309   :  { %8576 = vmatprep.subr.bf16.mxu1 %v11075_v3 }
 0x387   :  { %v928_v40 = vpop.xlane.xlu0 %927 }
 0x388   :  { %v933_v45 = vadd.f32 %v932_v27, %v928_v40 }
 0x38a   :  { %8880 = vtanh.f32 %v933_v45 }
 0x394   :  { %v8881_v56 = vpop.eup %8880 }
 0x395   :  { %941 = vperm.xlu0 %8850, %v8881_v56  }
 0x3d6   :  { %v1594_v15 = vpop.f32.mrb[14].mxu1 }
 0x3d7   :  { %v1595_v51 = vadd.f32 %v9514_v49, %v1594_v15  ;;  %v7935_v57 = vpop.f32.mrb[15].mxu1 }
 0x3d9   :  { %v1598_v52 = vmax.f32 %v1595_v51, 0.0 }
 0x3db   :  { %7945 = vmatmul.mubr.msk.f32.vlgmr.msra.gmra.mrb[16].mxu0 %vm184_vm5, %v1598_v52  ;;  %7956 = vmatmul.mubr.msk.f32.vlgmr.msra.gmra.mrb[16].mxu1 %vm184_vm5, %v1598_v52 }
 0x3dc   :  { %8572 = vmatpush3.bf16.msra.mxu0 %v9289_v4  ;;  %8578 = vmatpush3.bf16.msra.mxu1 %v9301_v8 }
 0x3dd   :  { %8573 = vmatprep.subr.bf16.mxu0 %v11075_v3  ;;  %7973 = vmatprep.mubr.msk.f32.mxu1 %vm9150_vm0, %v11077_v9 }
 0x3de   :  { %8579 = vmatprep.subr.bf16.mxu1 %v11075_v3  ;;  %7966 = vmatprep.mubr.msk.f32.mxu0 %vm9150_vm0, %v11077_v9 }
 0x3df   :  { %7974 = vmatmul.mubr.msk.f32.vlgmr.msra.gmra.mrb[18].mxu1 %vm271_vm4, %v2032_v10 }
 0x3e0   :  { %8575 = vmatpush3.bf16.msra.mxu0 %v9323_v13  ;;  %8581 = vmatpush3.bf16.msra.mxu1 %v9347_v22 }
 0x3e1   :  { %8582 = vmatprep.subr.bf16.mxu1 %v11075_v3  ;;  %8585 = vmatprep.subr.bf16.mxu0 %v11075_v3 }
 0x3e2   :  { %7984 = vmatprep.mubr.msk.f32.mxu1 %vm9150_vm0, %v11077_v9 }
 0x3e3   :  { %7967 = vmatmul.mubr.msk.f32.vlgmr.msra.gmra.mrb[18].mxu0 %vm184_vm5, %v9667_v24 }
 0x3e4   :  { %8584 = vmatpush3.bf16.msra.mxu1 %v9372_v31  ;;  %8587 = vmatpush3.bf16.msra.mxu0 %v9361_v28 }
 0x3e5   :  { %7991 = vmatprep.mubr.msk.f32.mxu0 %vm9150_vm0, %v11077_v9  ;;  %8591 = vmatprep.subr.bf16.mxu1 %v11075_v3 }
 0x3e6   :  { %8588 = vmatprep.subr.bf16.mxu0 %v11075_v3 }
 0x3e7   :  { %7985 = vmatmul.mubr.msk.f32.vlgmr.msra.gmra.mrb[20].mxu1 %vm184_vm5, %v9667_v24  ;;  %7992 = vmatmul.mubr.msk.f32.vlgmr.msra.gmra.mrb[20].mxu0 %vm271_vm4, %v2032_v10 }
 0x3e8   :  { %8593 = vmatpush3.bf16.msra.mxu1 %v9391_v35  ;;  %8009 = vmatprep.mubr.msk.f32.mxu1 %vm9150_vm0, %v11077_v9 }
 0x3e9   :  { %8594 = vmatprep.subr.bf16.mxu1 %v11075_v3  ;;  %8590 = vmatpush3.bf16.msra.mxu0 %v9387_v34 }
 0x3ea   :  { %7998 = vmatprep.mubr.msk.f32.mxu0 %vm9150_vm0, %v11077_v9  ;;  %8597 = vmatprep.subr.bf16.mxu0 %v11075_v3 }
 0x3ec   :  { %8596 = vmatpush3.bf16.msra.mxu1 %v9407_v38  ;;  %7999 = vmatmul.mubr.msk.f32.vlgmr.msra.gmra.mrb[22].mxu0 %vm271_vm4, %v2032_v10 }
 0x3ed   :  { %8599 = vmatpush3.bf16.msra.mxu0 %v9429_v42  ;;  %8020 = vmatprep.mubr.msk.f32.mxu0 %vm9150_vm0, %v11077_v9 }
 0x3ee   :  { %8600 = vmatprep.subr.bf16.mxu0 %v11075_v3  ;;  %8603 = vmatprep.subr.bf16.mxu1 %v11075_v3 }
 0x3ef   :  { %8010 = vmatmul.mubr.msk.f32.vlgmr.msra.gmra.mrb[22].mxu1 %vm184_vm5, %v9667_v24 }
 0x3f0   :  { %8605 = vmatpush3.bf16.msra.mxu1 %v9446_v47  ;;  %8031 = vmatprep.mubr.msk.f32.mxu1 %vm9150_vm0, %v11077_v9 }
 0x3f1   :  { %8602 = vmatpush3.bf16.msra.mxu0 %v9435_v44  ;;  %8606 = vmatprep.subr.bf16.mxu1 %v11075_v3 }
 0x3f2   :  { %8609 = vmatprep.subr.bf16.mxu0 %v11075_v3 }
 0x3f4   :  { %8608 = vmatpush3.bf16.msra.mxu1 %v9499_v43 }
 0x3f5   :  { %8615 = vmatprep.subr.bf16.mxu1 %v11075_v3 }
 0x414   :  { %v942_v14 = vpop.permute.xlu0 %941 }
 0x415   :  { %v944_v1 = vmul.f32 %v942_v14, %v938_v12 }
 0x417   :  { %v946_v6 = vrot.slane %v944_v1, 1  ;;  %v947_v7 = vrot.slane %v944_v1, 2  ;;  %v948_v17 = vrot.slane %v944_v1, 3  ;;  %v9752_v23 = vadd.f32 %v944_v1, %v9645_v26 }
 0x419   :  { %11112 = vst [vmem:[#allocation9_spill] sm:$0xff] %v9752_v23  ;;  %v9755_v30 = vadd.f32 %v946_v6, %v9647_v29  ;;  %v9758_v25 = vadd.f32 %v947_v7, %v9649_v32  ;;  %v9761_v37 = vadd.f32 %v948_v17, %v9651_v33  ;;  %v961_v21 = vmul.f32 %v960_v20, %v9752_v23 }
 0x41b   :  { %11113 = vst [vmem:[#allocation10_spill] sm:$0xff] %v9755_v30  ;;  %11114 = vst [vmem:[#allocation11_spill] sm:$0xff] %v9758_v25  ;;  %v962_v58 = vmul.f32 %v960_v20, %v9755_v30  ;;  %v963_v27 = vmul.f32 %v960_v20, %v9758_v25  ;;  %v964_v40 = vmul.f32 %v960_v20, %v9761_v37 }
 0x41c   :  { %11115 = vst [vmem:[#allocation12_spill] sm:$0xff] %v9761_v37 }
 0x41d   :  { %v969_v45 = vrot.slane %v962_v58, 7  ;;  %v971_v26 = vrot.slane %v963_v27, 6  ;;  %v973_v29 = vrot.slane %v964_v40, 5 }
 0x41f   :  { %v970_v56 = vsel %vm263_vm1, %v969_v45, %v961_v21 }
 0x420   :  { %v972_v2 = vsel %vm266_vm2, %v971_v26, %v970_v56 }
 0x421   :  { %v974_v32 = vsel %vm269_vm3, %v973_v29, %v972_v2 }
 0x422   :  { %v976_v33 = vsel %vm925_vm9, %v974_v32, 0.0 }
 0x423   :  { %977 = vadd.xlane.f32.xlu1 %v976_v33 }
 0x4ae   :  { %v1668_v60 = vpop.f32.mrb[16].mxu0  ;;  %v1744_v15 = vpop.f32.mrb[16].mxu1 }
 0x4af   :  { %v1669_v48 = vadd.f32 %v9579_v61, %v1668_v60  ;;  %v1745_v51 = vadd.f32 %v9584_v62, %v1744_v15  ;;  %v7946_v57 = vpop.f32.mrb[17].mxu0  ;;  %v7957_v54 = vpop.f32.mrb[17].mxu1 }
 0x4b1   :  { %v7398_v52 = vmul.f32 -1.442695, %v1669_v48  ;;  %v1749_v63 = vmin.f32 %v1745_v51, 20.0  ;;  %vm1748_vm11 = vcmp.gt.f32.partialorder %v1745_v51, 20.0 }
 0x4b2   :  { %v2101_v10 = vpop.f32.mrb[18].mxu1 }
 0x4b3   :  { %8882 = vpow2.f32 %v7398_v52  ;;  %v1750_v11 = vmul.f32 1.442695, %v1749_v63  ;;  %v7975_v12 = vpop.f32.mrb[19].mxu1 }
 0x4b5   :  { %8884 = vpow2.f32 %v1750_v11  ;;  %v9779_v11 = vld [vmem:[%s11061_s18 + $0x2] sm:$0x3] }
 0x4b6   :  { %v2023_v14 = vpop.f32.mrb[18].mxu0 }
 0x4b7   :  { %v2102_v1 = vadd.f32 %v2101_v10, %v2023_v14  ;;  %v7968_v6 = vpop.f32.mrb[19].mxu0 }
 0x4b9   :  { %v2105_v7 = vadd.f32 %v9453_v50, %v2102_v1 }
 0x4ba   :  { %v2178_v17 = vpop.f32.mrb[20].mxu1  ;;  %v2248_v20 = vpop.f32.mrb[20].mxu0 }
 0x4bb   :  { %v7402_v58 = vmul.f32 -1.442695, %v2105_v7  ;;  %v2249_v27 = vadd.f32 %v2248_v20, %v2178_v17  ;;  %v7986_v40 = vpop.f32.mrb[21].mxu1  ;;  %v7993_v21 = vpop.f32.mrb[21].mxu0  ;;  %v1789_v20 = vrot.slane %v9779_v11, %v9599_v19 }
 0x4bd   :  { %v8883_v45 = vpop.eup %8882  ;;  %8886 = vpow2.f32 %v7402_v58  ;;  %v2252_v26 = vadd.f32 %v9459_v59, %v2249_v27 }
 0x4be   :  { %v1675_v56 = vadd.f32 1.0, %v8883_v45 }
 0x4bf   :  { %v8885_v29 = vpop.eup %8884  ;;  %v7405_v2 = vmul.f32 -1.442695, %v2252_v26  ;;  %v2325_v32 = vpop.f32.mrb[22].mxu0 }
 0x4c0   :  { %8888 = vrcp.f32 %v1675_v56  ;;  %v1752_v33 = vadd.f32 1.0, %v8885_v29  ;;  %v8000_v60 = vpop.f32.mrb[23].mxu0  ;;  %v1755_v48 = vmul.f32 -0.5, %v8885_v29  ;;  %v1758_v10 = vand.u32 2147483647, %v8885_v29 }
 0x4c1   :  { %v2326_v56 = vadd.f32 %v9470_v18, %v2325_v32 }
 0x4c2   :  { %8890 = vlog2.f32 %v1752_v33  ;;  %v2395_v15 = vpop.f32.mrb[22].mxu1  ;;  %v1756_v52 = vadd.f32 1.0, %v1755_v48  ;;  %vm1759_vm10 = vcmp.lt.f32.partialorder %v1758_v10, 0.0004427343 }
 0x4c3   :  { %8892 = vpow2.f32 %v7405_v2  ;;  %v8011_v50 = vpop.f32.mrb[23].mxu1  ;;  %v2396_v26 = vadd.f32 %v9465_v16, %v2395_v15 }
 0x4c4   :  { %v1757_v17 = vmul.f32 %v8885_v29, %v1756_v52 }
 0x4c7   :  { %v8887_v57 = vpop.eup %8886 }
 0x4c8   :  { %v2109_v54 = vadd.f32 1.0, %v8887_v57 }
 0x4ca   :  { %v8889_v63 = vpop.eup %8888  ;;  %8894 = vrcp.f32 %v2109_v54 }
 0x4cb   :  { %v1899_v59 = vrot.slane %v8889_v63, %v9596_v5  ;;  %v1775_v57 = vrot.slane %v8889_v63, 7  ;;  %v1776_v54 = vrot.slane %v8889_v63, 1  ;;  %v1777_v32 = vrot.slane %v8889_v63, 2 }
 0x4cc   :  { %v8891_v12 = vpop.eup %8890 }
 0x4cd   :  { %v8893_v14 = vpop.eup %8892  ;;  %v1900_v1 = vcombine.high %v1899_v59, %v1899_v59  ;;  %v1907_v6 = vrot.slane %v1899_v59, %v9596_v5  ;;  %v1754_v7 = vmul.f32 0.6931472, %v8891_v12 }
 0x4ce   :  { %v2256_v45 = vadd.f32 1.0, %v8893_v14 }
 0x4cf   :  { %v1914_v58 = vrot.slane %v1900_v1, %v9596_v5  ;;  %v1915_v27 = vcombine.high %v1907_v6, %v1907_v6  ;;  %1921 = vst.msk [vmem:[#allocation4 + $0x1] sm:$0x1] %vm1007_vm6, %v1907_v6  ;;  %v1760_v40 = vsel %vm1759_vm10, %v1757_v17, %v1754_v7 }
 0x4d0   :  { %v1761_v21 = vsel %vm1748_vm11, %v1745_v51, %v1760_v40  ;;  %8896 = vrcp.f32 %v2256_v45  ;;  %vm3565_vm11 = vcmask 1046534  }
 0x4d1   :  { %v1916_v2 = vcombine.high %v1914_v58, %v1914_v58  ;;  %1922 = vst.msk [vmem:[#allocation4 + $0x9] sm:$0x1] %vm1007_vm6, %v1914_v58  ;;  %1923 = vst.msk [vmem:[#allocation4 + $0x11] sm:$0x1] %vm1007_vm6, %v1915_v27  ;;  %v1763_v29 = vrot.slane %v1761_v21, 7  ;;  %v1764_v33 = vrot.slane %v1761_v21, 1  ;;  %v1771_v50 = vmul.f32 %v1761_v21, %v9621_v41 }
 0x4d2   :  { %v1765_v60 = vrot.slane %v1761_v21, 2  ;;  %v1931_v48 = vrot.slane %v1761_v21, %v9596_v5 }
 0x4d3   :  { %1924 = vst.msk [vmem:[#allocation4 + $0x19] sm:$0x1] %vm1007_vm6, %v1916_v2  ;;  %v1770_v16 = vmul.f32 %v1763_v29, %v9615_v39  ;;  %v1772_v18 = vmul.f32 %v1764_v33, %v9629_v53  ;;  %v9797_v59 = vadd.f32 %v8889_v63, %v1771_v50 }
 0x4d4   :  { %v1773_v51 = vmul.f32 %v1765_v60, %v9634_v55  ;;  %v8895_v15 = vpop.eup %8894  ;;  %v1932_v52 = vcombine.high %v1931_v48, %v1931_v48  ;;  %v1939_v10 = vrot.slane %v1931_v48, %v9596_v5 }
 0x4d5   :  { %v2399_v12 = vmul.f32 %v8895_v15, %v2396_v26  ;;  %v9799_v14 = vadd.f32 %v1775_v57, %v1770_v16  ;;  %v9801_v1 = vadd.f32 %v1776_v54, %v1772_v18  ;;  %v1791_v58 = vmul.f32 %v1789_v20, %v9797_v59 }
 0x4d6   :  { %v9803_v6 = vadd.f32 %v1777_v32, %v1773_v51  ;;  %v1946_v7 = vrot.slane %v1932_v52, %v9596_v5  ;;  %v1947_v17 = vcombine.high %v1939_v10, %v1939_v10  ;;  %1953 = vst.msk [vmem:[#allocation6 + $0x1] sm:$0x1] %vm1007_vm6, %v1939_v10  ;;  %v9832_v51 = vpop.xlane.xlu1 %977 }
 0x4d7   :  { %v2400_v27 = vadd.f32 %v2399_v12, %v2326_v56  ;;  %v1790_v40 = vmul.f32 %v1789_v20, %v9799_v14  ;;  %v1792_v63 = vmul.f32 %v1789_v20, %v9801_v1  ;;  %v1798_v26 = vrot.slane %v1791_v58, 7  ;;  %v9838_v12 = vld [vmem:[%s11106_s30] sm:$0xff] }
 0x4d8   :  { %v1793_v21 = vmul.f32 %v1789_v20, %v9803_v6  ;;  %v1948_v45 = vcombine.high %v1946_v7, %v1946_v7  ;;  %1954 = vst.msk [vmem:[#allocation6 + $0x9] sm:$0x1] %vm1007_vm6, %v1946_v7  ;;  %1955 = vst.msk [vmem:[#allocation6 + $0x11] sm:$0x1] %vm1007_vm6, %v1947_v17  ;;  %v2908_v7 = vrot.slane %v9838_v12, 3  ;;  %v9844_v17 = vld [vmem:[%s11106_s30 + $0x8] sm:$0xff] }
 0x4d9   :  { %8898 = vtanh.f32 %v2400_v27  ;;  %v1800_v2 = vrot.slane %v1792_v63, 6  ;;  %v1799_v56 = vsel %vm266_vm2, %v1798_v26, %v1790_v40  ;;  %v2909_v58 = vrot.slane %v9844_v17, 2  ;;  %v9850_v27 = vld [vmem:[%s11106_s30 + $0x10] sm:$0xff] }
 0x4da   :  { %v1802_v29 = vrot.slane %v1793_v21, 5  ;;  %1956 = vst.msk [vmem:[#allocation6 + $0x19] sm:$0x1] %vm1007_vm6, %v1948_v45  ;;  %v8897_v50 = vpop.eup %8896  ;;  %v2911_v40 = vrot.slane %v9850_v27, 1 }
 0x4db   :  { %v1801_v33 = vsel %vm269_vm3, %v1800_v2, %v1799_v56  ;;  %v2402_v48 = vsub.f32 1.0, %v8897_v50  ;;  %v2404_v16 = vmul.f32 %v8897_v50, %v9667_v24  ;;  %v169_v24 = vld [vmem:[%s11062_s19 + $0x2] sm:$0x3]  ;;  %v2910_v21 = vsel %vm263_vm1, %v2909_v58, %v2908_v7  ;;  %v9863_v56 = vld [vmem:[%s11106_s30 + $0x18] sm:$0xff] }
 0x4dc   :  { %v1804_v60 = vsel %vm1803_vm12, %v1802_v29, %v1801_v33  ;;  %v1813_v32 = vrot.slane %v169_v24, %v9599_v19  ;;  %v2912_v29 = vsel %vm266_vm2, %v2911_v40, %v2910_v21  ;;  %v177_v33 = vld [vmem:[%s11063_s20 + $0x2] sm:$0x3] }
 0x4dd   :  { %v1807_v20 = vsel %vm1806_vm13, %v1804_v60, 0.0  ;;  %v1819_v60 = vrot.slane %v177_v33, %v9599_v19 }
 0x4de   :  { %1808 = vadd.xlane.f32.xlu1 %v1807_v20 }
 0x4e3   :  { %v8899_v57 = vpop.eup %8898 }
 0x4e4   :  { %v2403_v54 = vmul.f32 %v8899_v57, %v2402_v48 }
 0x4e6   :  { %v9819_v18 = vadd.f32 %v2404_v16, %v2403_v54  ;;  %v1841_v16 = vrot.slane %v9779_v11, %v9747_v0 }
 0x4e8   :  { %8021 = vmatmul.mubr.msk.f32.vlgmr.msra.gmra.mrb[24].mxu0 %vm184_vm5, %v9819_v18 }
 0x4e9   :  { %8611 = vmatpush3.bf16.msra.mxu0 %v9480_v36  ;;  %8042 = vmatprep.mubr.msk.f32.mxu0 %vm9150_vm0, %v11077_v9 }
 0x4ea   :  { %8612 = vmatprep.subr.bf16.mxu0 %v11075_v3 }
 0x4ed   :  { %8614 = vmatpush3.bf16.msra.mxu0 %v9504_v46 }
 0x4ee   :  { %8621 = vmatprep.subr.bf16.mxu0 %v11075_v3 }
 0x56b   :  { %v1809_v15 = vpop.xlane.xlu1 %1808 }
 0x56c   :  { %v1814_v52 = vadd.f32 %v1813_v32, %v1809_v15 }
 0x56e   :  { %8900 = vtanh.f32 %v1814_v52 }
 0x578   :  { %v8901_v10 = vpop.eup %8900 }
 0x579   :  { %1822 = vperm.xlu0 %8850, %v8901_v10  }
 0x5bb   :  { %v2475_v63 = vpop.f32.mrb[24].mxu0 }
 0x5bc   :  { %v2476_v45 = vadd.f32 %v9514_v49, %v2475_v63  ;;  %v8022_v26 = vpop.f32.mrb[25].mxu0  ;;  %v2913_v49 = vsel %vm269_vm3, %v9863_v56, %v2912_v29 }
 0x5be   :  { %v2479_v2 = vmax.f32 %v2476_v45, 0.0 }
 0x5c0   :  { %8032 = vmatmul.mubr.msk.f32.vlgmr.msra.gmra.mrb[24].mxu1 %vm184_vm5, %v2479_v2  ;;  %8043 = vmatmul.mubr.msk.f32.vlgmr.msra.gmra.mrb[26].mxu0 %vm184_vm5, %v2479_v2 }
 0x5c1   :  { %8617 = vmatpush3.bf16.msra.mxu1 %v9289_v4  ;;  %8623 = vmatpush3.bf16.msra.mxu0 %v9301_v8 }
 0x5c2   :  { %8618 = vmatprep.subr.bf16.mxu1 %v11075_v3  ;;  %8060 = vmatprep.mubr.msk.f32.mxu0 %vm9150_vm0, %v11077_v9 }
 0x5c3   :  { %8624 = vmatprep.subr.bf16.mxu0 %v11075_v3  ;;  %8053 = vmatprep.mubr.msk.f32.mxu1 %vm9150_vm0, %v11077_v9 }
 0x5c4   :  { %8061 = vmatmul.mubr.msk.f32.vlgmr.msra.gmra.mrb[28].mxu0 %vm271_vm4, %v2913_v49 }
 0x5c5   :  { %8620 = vmatpush3.bf16.msra.mxu1 %v9323_v13  ;;  %8626 = vmatpush3.bf16.msra.mxu0 %v9347_v22 }
 0x5c6   :  { %8627 = vmatprep.subr.bf16.mxu0 %v11075_v3  ;;  %8630 = vmatprep.subr.bf16.mxu1 %v11075_v3 }
 0x5c7   :  { %8071 = vmatprep.mubr.msk.f32.mxu0 %vm9150_vm0, %v11077_v9 }
 0x5c8   :  { %8054 = vmatmul.mubr.msk.f32.vlgmr.msra.gmra.mrb[26].mxu1 %vm184_vm5, %v9819_v18 }
 0x5c9   :  { %8629 = vmatpush3.bf16.msra.mxu0 %v9372_v31  ;;  %8632 = vmatpush3.bf16.msra.mxu1 %v9361_v28 }
 0x5ca   :  { %8078 = vmatprep.mubr.msk.f32.mxu1 %vm9150_vm0, %v11077_v9  ;;  %8636 = vmatprep.subr.bf16.mxu0 %v11075_v3 }
 0x5cb   :  { %8633 = vmatprep.subr.bf16.mxu1 %v11075_v3 }
 0x5cc   :  { %8072 = vmatmul.mubr.msk.f32.vlgmr.msra.gmra.mrb[30].mxu0 %vm184_vm5, %v9819_v18  ;;  %8079 = vmatmul.mubr.msk.f32.vlgmr.msra.gmra.mrb[28].mxu1 %vm271_vm4, %v2913_v49 }
 0x5cd   :  { %8638 = vmatpush3.bf16.msra.mxu0 %v9391_v35  ;;  %8096 = vmatprep.mubr.msk.f32.mxu0 %vm9150_vm0, %v11077_v9 }
 0x5ce   :  { %8639 = vmatprep.subr.bf16.mxu0 %v11075_v3  ;;  %8635 = vmatpush3.bf16.msra.mxu1 %v9387_v34 }
 0x5cf   :  { %8085 = vmatprep.mubr.msk.f32.mxu1 %vm9150_vm0, %v11077_v9  ;;  %8642 = vmatprep.subr.bf16.mxu1 %v11075_v3 }
 0x5d1   :  { %8641 = vmatpush3.bf16.msra.mxu0 %v9407_v38  ;;  %8086 = vmatmul.mubr.msk.f32.vlgmr.msra.gmra.mrb[30].mxu1 %vm271_vm4, %v2913_v49 }
 0x5d2   :  { %8644 = vmatpush3.bf16.msra.mxu1 %v9429_v42  ;;  %8107 = vmatprep.mubr.msk.f32.mxu1 %vm9150_vm0, %v11077_v9 }
 0x5d3   :  { %8645 = vmatprep.subr.bf16.mxu1 %v11075_v3  ;;  %8648 = vmatprep.subr.bf16.mxu0 %v11075_v3 }
 0x5d4   :  { %8097 = vmatmul.mubr.msk.f32.vlgmr.msra.gmra.mrb[32].mxu0 %vm184_vm5, %v9819_v18 }
 0x5d5   :  { %8650 = vmatpush3.bf16.msra.mxu0 %v9446_v47  ;;  %8118 = vmatprep.mubr.msk.f32.mxu0 %vm9150_vm0, %v11077_v9 }
 0x5d6   :  { %8647 = vmatpush3.bf16.msra.mxu1 %v9435_v44  ;;  %8651 = vmatprep.subr.bf16.mxu0 %v11075_v3 }
 0x5d7   :  { %8654 = vmatprep.subr.bf16.mxu1 %v11075_v3 }
 0x5d9   :  { %8653 = vmatpush3.bf16.msra.mxu0 %v9499_v43 }
 0x5da   :  { %8660 = vmatprep.subr.bf16.mxu0 %v11075_v3 }
 0x5f8   :  { %v1823_v20 = vpop.permute.xlu0 %1822 }
 0x5f9   :  { %v1825_v50 = vmul.f32 %v1823_v20, %v1819_v60 }
 0x5fb   :  { %v1827_v48 = vrot.slane %v1825_v50, 1  ;;  %v1828_v57 = vrot.slane %v1825_v50, 2  ;;  %v1829_v54 = vrot.slane %v1825_v50, 3  ;;  %v9923_v24 = vadd.f32 %v1825_v50, %v9799_v14 }
 0x5fd   :  { %11116 = vst [vmem:[#allocation13_spill] sm:$0xff] %v9923_v24  ;;  %v9926_v32 = vadd.f32 %v1827_v48, %v9797_v59  ;;  %v9929_v15 = vadd.f32 %v1828_v57, %v9801_v1  ;;  %v9932_v52 = vadd.f32 %v1829_v54, %v9803_v6  ;;  %v1842_v11 = vmul.f32 %v1841_v16, %v9923_v24 }
 0x5ff   :  { %11117 = vst [vmem:[#allocation14_spill] sm:$0xff] %v9926_v32  ;;  %11118 = vst [vmem:[#allocation15_spill] sm:$0xff] %v9929_v15  ;;  %v1843_v10 = vmul.f32 %v1841_v16, %v9926_v32  ;;  %v1844_v7 = vmul.f32 %v1841_v16, %v9929_v15  ;;  %v1845_v58 = vmul.f32 %v1841_v16, %v9932_v52 }
 0x600   :  { %11119 = vst [vmem:[#allocation16_spill] sm:$0xff] %v9932_v52 }
 0x601   :  { %v1850_v40 = vrot.slane %v1843_v10, 7  ;;  %v1852_v14 = vrot.slane %v1844_v7, 6  ;;  %v1854_v59 = vrot.slane %v1845_v58, 5  ;;  %v9947_v7 = vld [vmem:[%s11051_s8] ss:$0 sm:$0xff] }
 0x603   :  { %v1851_v63 = vsel %vm266_vm2, %v1850_v40, %v1842_v11 }
 0x604   :  { %v1853_v21 = vsel %vm269_vm3, %v1852_v14, %v1851_v63 }
 0x605   :  { %v1855_v1 = vsel %vm1803_vm12, %v1854_v59, %v1853_v21  ;;  %v9953_v21 = vld [vmem:[%s11052_s9] ss:$0 sm:$0xff] }
 0x606   :  { %v1857_v6 = vsel %vm1806_vm13, %v1855_v1, 0.0  ;;  %vm3568_vm13 = vcmask 63491  }
 0x607   :  { %1858 = vadd.xlane.f32.xlu0 %v1857_v6 }
 0x693   :  { %v2549_v45 = vpop.f32.mrb[24].mxu1  ;;  %v2625_v26 = vpop.f32.mrb[26].mxu0 }
 0x694   :  { %v2550_v2 = vadd.f32 %v9579_v61, %v2549_v45  ;;  %v2626_v29 = vadd.f32 %v9584_v62, %v2625_v26  ;;  %v8033_v49 = vpop.f32.mrb[25].mxu1  ;;  %v8044_v33 = vpop.f32.mrb[27].mxu0 }
 0x696   :  { %v7410_v60 = vmul.f32 -1.442695, %v2550_v2  ;;  %v2630_v20 = vmin.f32 %v2626_v29, 20.0  ;;  %vm2629_vm15 = vcmp.gt.f32.partialorder %v2626_v29, 20.0 }
 0x697   :  { %v2982_v50 = vpop.f32.mrb[28].mxu0 }
 0x698   :  { %8902 = vpow2.f32 %v7410_v60  ;;  %v2631_v48 = vmul.f32 1.442695, %v2630_v20  ;;  %v8062_v57 = vpop.f32.mrb[29].mxu0 }
 0x69a   :  { %8904 = vpow2.f32 %v2631_v48 }
 0x69b   :  { %v2904_v54 = vpop.f32.mrb[26].mxu1 }
 0x69c   :  { %v2983_v16 = vadd.f32 %v2982_v50, %v2904_v54  ;;  %v8055_v10 = vpop.f32.mrb[27].mxu1 }
 0x69e   :  { %v2986_v61 = vadd.f32 %v9947_v7, %v2983_v16 }
 0x69f   :  { %v3059_v62 = vpop.f32.mrb[30].mxu0  ;;  %v3129_v58 = vpop.f32.mrb[28].mxu1 }
 0x6a0   :  { %v7414_v11 = vmul.f32 -1.442695, %v2986_v61  ;;  %v3130_v40 = vadd.f32 %v3129_v58, %v3059_v62  ;;  %v8073_v14 = vpop.f32.mrb[31].mxu0  ;;  %v8080_v63 = vpop.f32.mrb[29].mxu1  ;;  %v9960_v62 = vld [vmem:[%s11061_s18 + $0x4] sm:$0x3] }
 0x6a2   :  { %v8903_v59 = vpop.eup %8902  ;;  %8906 = vpow2.f32 %v7414_v11  ;;  %v3133_v1 = vadd.f32 %v9953_v21, %v3130_v40 }
 0x6a3   :  { %v2556_v6 = vadd.f32 1.0, %v8903_v59 }
 0x6a4   :  { %v8905_v45 = vpop.eup %8904  ;;  %v7417_v26 = vmul.f32 -1.442695, %v3133_v1  ;;  %v3206_v2 = vpop.f32.mrb[30].mxu1  ;;  %v2670_v1 = vrot.slane %v9960_v62, %v9599_v19 }
 0x6a5   :  { %8908 = vrcp.f32 %v2556_v6  ;;  %v2633_v49 = vadd.f32 1.0, %v8905_v45  ;;  %v8087_v33 = vpop.f32.mrb[31].mxu1  ;;  %v2636_v50 = vmul.f32 -0.5, %v8905_v45  ;;  %v2639_v10 = vand.u32 2147483647, %v8905_v45 }
 0x6a7   :  { %8910 = vlog2.f32 %v2633_v49  ;;  %v3276_v60 = vpop.f32.mrb[32].mxu0  ;;  %v2637_v54 = vadd.f32 1.0, %v2636_v50  ;;  %vm2640_vm14 = vcmp.lt.f32.partialorder %v2639_v10, 0.0004427343  ;;  %v9970_v50 = vld [vmem:[%s11054_s11] ss:$0 sm:$0xff] }
 0x6a8   :  { %8912 = vpow2.f32 %v7417_v26  ;;  %v8098_v20 = vpop.f32.mrb[33].mxu0 }
 0x6a9   :  { %v2638_v59 = vmul.f32 %v8905_v45, %v2637_v54  ;;  %v3277_v45 = vadd.f32 %v9970_v50, %v3276_v60 }
 0x6ac   :  { %v8907_v48 = vpop.eup %8906 }
 0x6ad   :  { %v2990_v57 = vadd.f32 1.0, %v8907_v48  ;;  %v9976_v48 = vld [vmem:[%s11053_s10] ss:$0 sm:$0xff] }
 0x6af   :  { %v8909_v16 = vpop.eup %8908  ;;  %8914 = vrcp.f32 %v2990_v57  ;;  %v3207_v57 = vadd.f32 %v9976_v48, %v3206_v2 }
 0x6b0   :  { %v2780_v61 = vrot.slane %v8909_v16, %v9596_v5  ;;  %v2656_v60 = vrot.slane %v8909_v16, 6 }
 0x6b1   :  { %v8911_v58 = vpop.eup %8910 }
 0x6b2   :  { %v8913_v11 = vpop.eup %8912  ;;  %v2781_v40 = vcombine.high %v2780_v61, %v2780_v61  ;;  %v2788_v14 = vrot.slane %v2780_v61, %v9596_v5  ;;  %v2635_v63 = vmul.f32 0.6931472, %v8911_v58 }
 0x6b3   :  { %v3137_v20 = vadd.f32 1.0, %v8913_v11 }
 0x6b4   :  { %v2795_v6 = vrot.slane %v2781_v40, %v9596_v5  ;;  %v2796_v26 = vcombine.high %v2788_v14, %v2788_v14  ;;  %2802 = vst.msk [vmem:[#allocation4 + $0x2] sm:$0x1] %vm1007_vm6, %v2788_v14  ;;  %v2641_v49 = vsel %vm2640_vm14, %v2638_v59, %v2635_v63  ;;  %v2657_v40 = vrot.slane %v8909_v16, 7 }
 0x6b5   :  { %v2642_v33 = vsel %vm2629_vm15, %v2626_v29, %v2641_v49  ;;  %v2658_v59 = vrot.slane %v8909_v16, 1  ;;  %8916 = vrcp.f32 %v3137_v20  ;;  %vm4449_vm15 = vcmask 1047559  }
 0x6b6   :  { %v2797_v54 = vcombine.high %v2795_v6, %v2795_v6  ;;  %2803 = vst.msk [vmem:[#allocation4 + $0xa] sm:$0x1] %vm1007_vm6, %v2795_v6  ;;  %2804 = vst.msk [vmem:[#allocation4 + $0x12] sm:$0x1] %vm1007_vm6, %v2796_v26  ;;  %v2644_v29 = vrot.slane %v2642_v33, 6  ;;  %v2645_v10 = vrot.slane %v2642_v33, 7  ;;  %v2653_v58 = vmul.f32 %v2642_v33, %v9629_v53 }
 0x6b7   :  { %v2646_v61 = vrot.slane %v2642_v33, 1  ;;  %v2812_v11 = vrot.slane %v2642_v33, %v9596_v5 }
 0x6b8   :  { %2805 = vst.msk [vmem:[#allocation4 + $0x1a] sm:$0x1] %vm1007_vm6, %v2797_v54  ;;  %v2651_v14 = vmul.f32 %v2644_v29, %v9615_v39  ;;  %v2652_v2 = vmul.f32 %v2645_v10, %v9621_v41  ;;  %v9988_v3 = vadd.f32 %v8909_v16, %v2653_v58 }
 0x6b9   :  { %v2654_v63 = vmul.f32 %v2646_v61, %v9634_v55  ;;  %v8915_v6 = vpop.eup %8914  ;;  %v2813_v26 = vcombine.high %v2812_v11, %v2812_v11  ;;  %v2820_v49 = vrot.slane %v2812_v11, %v9596_v5 }
 0x6ba   :  { %v3280_v53 = vmul.f32 %v8915_v6, %v3277_v45  ;;  %v9990_v33 = vadd.f32 %v2656_v60, %v2651_v14  ;;  %v9992_v9 = vadd.f32 %v2657_v40, %v2652_v2  ;;  %v2673_v55 = vmul.f32 %v2670_v1, %v9988_v3 }
 0x6bb   :  { %v9994_v54 = vadd.f32 %v2658_v59, %v2654_v63  ;;  %v2827_v39 = vrot.slane %v2813_v26, %v9596_v5  ;;  %v2828_v41 = vcombine.high %v2820_v49, %v2820_v49  ;;  %2834 = vst.msk [vmem:[#allocation6 + $0x2] sm:$0x1] %vm1007_vm6, %v2820_v49  ;;  %v11120_v49 = vmov 0.0  }
 0x6bc   :  { %v3281_v29 = vadd.f32 %v3280_v53, %v3207_v57  ;;  %v2672_v10 = vmul.f32 %v2670_v1, %v9992_v9  ;;  %v2671_v45 = vmul.f32 %v2670_v1, %v9990_v33  ;;  %v2681_v58 = vrot.slane %v2673_v55, 6 }
 0x6bd   :  { %v2674_v16 = vmul.f32 %v2670_v1, %v9994_v54  ;;  %v2829_v20 = vcombine.high %v2827_v39, %v2827_v39  ;;  %2835 = vst.msk [vmem:[#allocation6 + $0xa] sm:$0x1] %vm1007_vm6, %v2827_v39  ;;  %2836 = vst.msk [vmem:[#allocation6 + $0x12] sm:$0x1] %vm1007_vm6, %v2828_v41  ;;  %v11121_v53 = vmov 0.0|0.0  }
 0x6be   :  { %8918 = vtanh.f32 %v3281_v29  ;;  %v2679_v61 = vrot.slane %v2672_v10, 7  ;;  %v3789_v10 = vrot.slane %v9838_v12, 4 }
 0x6bf   :  { %2837 = vst.msk [vmem:[#allocation6 + $0x1a] sm:$0x1] %vm1007_vm6, %v2829_v20  ;;  %v2683_v57 = vrot.slane %v2674_v16, 5  ;;  %v8917_v14 = vpop.eup %8916  ;;  %v3790_v16 = vrot.slane %v9844_v17, 3  ;;  %v3792_v20 = vrot.slane %v9850_v27, 2 }
 0x6c0   :  { %v2680_v11 = vsel %vm269_vm3, %v2679_v61, %v2671_v45  ;;  %v3283_v63 = vsub.f32 1.0, %v8917_v14  ;;  %v3285_v6 = vmul.f32 %v8917_v14, %v9819_v18  ;;  %v170_v18 = vld [vmem:[%s11062_s19 + $0x4] sm:$0x3] }
 0x6c1   :  { %v2682_v60 = vsel %vm1803_vm12, %v2681_v58, %v2680_v11  ;;  %v2694_v39 = vrot.slane %v170_v18, %v9599_v19  ;;  %v3791_v61 = vsel %vm263_vm1, %v3790_v16, %v3789_v10  ;;  %v10031_v58 = vld [vmem:[%s11056_s13] ss:$0 sm:$0xff] }
 0x6c2   :  { %v2685_v40 = vsel %vm2684_vm7, %v2683_v57, %v2682_v60  ;;  %v3794_v60 = vrot.slane %v9863_v56, 1  ;;  %v3793_v14 = vsel %vm266_vm2, %v3792_v20, %v3791_v61 }
 0x6c3   :  { %v2688_v2 = vsel %vm2687_vm8, %v2685_v40, 0.0 }
 0x6c4   :  { %2689 = vadd.xlane.f32.xlu1 %v2688_v2  ;;  %v3795_v2 = vsel %vm269_vm3, %v3794_v60, %v3793_v14 }
 0x6c8   :  { %v8919_v59 = vpop.eup %8918 }
 0x6c9   :  { %v3284_v1 = vmul.f32 %v8919_v59, %v3283_v63  ;;  %v178_v63 = vld [vmem:[%s11063_s20 + $0x4] sm:$0x3]  ;;  %v10093_v59 = vpop.xlane.xlu0 %1858 }
 0x6cb   :  { %v10010_v26 = vadd.f32 %v3285_v6, %v3284_v1  ;;  %v2700_v1 = vrot.slane %v178_v63, %v9599_v19 }
 0x6cd   :  { %8108 = vmatmul.mubr.msk.f32.vlgmr.msra.gmra.mrb[32].mxu1 %vm184_vm5, %v10010_v26 }
 0x6ce   :  { %8656 = vmatpush3.bf16.msra.mxu1 %v9480_v36  ;;  %8129 = vmatprep.mubr.msk.f32.mxu1 %vm9150_vm0, %v11120_v49 }
 0x6cf   :  { %8657 = vmatprep.subr.bf16.mxu1 %v11121_v53 }
 0x6d2   :  { %8659 = vmatpush3.bf16.msra.mxu1 %v9504_v46 }
 0x6d3   :  { %8666 = vmatprep.subr.bf16.mxu1 %v11121_v53 }
 0x751   :  { %v2690_v41 = vpop.xlane.xlu1 %2689 }
 0x752   :  { %v2695_v55 = vadd.f32 %v2694_v39, %v2690_v41 }
 0x754   :  { %8920 = vtanh.f32 %v2695_v55 }
 0x75e   :  { %v8921_v29 = vpop.eup %8920 }
 0x75f   :  { %2703 = vperm.xlu0 %8850, %v8921_v29   ;;  %v2722_v29 = vrot.slane %v9960_v62, %v9747_v0 }
 0x7a0   :  { %v3356_v45 = vpop.f32.mrb[32].mxu1 }
 0x7a1   :  { %v3357_v11 = vadd.f32 %v10031_v58, %v3356_v45  ;;  %v8109_v57 = vpop.f32.mrb[33].mxu1 }
 0x7a3   :  { %v3360_v40 = vmax.f32 %v3357_v11, 0.0 }
 0x7a5   :  { %8119 = vmatmul.mubr.msk.f32.vlgmr.msra.gmra.mrb[34].mxu0 %vm184_vm5, %v3360_v40  ;;  %8130 = vmatmul.mubr.msk.f32.vlgmr.msra.gmra.mrb[34].mxu1 %vm184_vm5, %v3360_v40 }
 0x7a6   :  { %8662 = vmatpush3.bf16.msra.mxu0 %v9289_v4  ;;  %8668 = vmatpush3.bf16.msra.mxu1 %v9301_v8 }
 0x7a7   :  { %8663 = vmatprep.subr.bf16.mxu0 %v11121_v53  ;;  %8147 = vmatprep.mubr.msk.f32.mxu1 %vm9150_vm0, %v11120_v49 }
 0x7a8   :  { %8669 = vmatprep.subr.bf16.mxu1 %v11121_v53  ;;  %8140 = vmatprep.mubr.msk.f32.mxu0 %vm9150_vm0, %v11120_v49 }
 0x7a9   :  { %8148 = vmatmul.mubr.msk.f32.vlgmr.msra.gmra.mrb[36].mxu1 %vm271_vm4, %v3795_v2 }
 0x7aa   :  { %8665 = vmatpush3.bf16.msra.mxu0 %v9323_v13  ;;  %8671 = vmatpush3.bf16.msra.mxu1 %v9347_v22 }
 0x7ab   :  { %8672 = vmatprep.subr.bf16.mxu1 %v11121_v53  ;;  %8675 = vmatprep.subr.bf16.mxu0 %v11121_v53 }
 0x7ac   :  { %8158 = vmatprep.mubr.msk.f32.mxu1 %vm9150_vm0, %v11120_v49 }
 0x7ad   :  { %8141 = vmatmul.mubr.msk.f32.vlgmr.msra.gmra.mrb[36].mxu0 %vm184_vm5, %v10010_v26 }
 0x7ae   :  { %8674 = vmatpush3.bf16.msra.mxu1 %v9372_v31  ;;  %8677 = vmatpush3.bf16.msra.mxu0 %v9361_v28 }
 0x7af   :  { %8165 = vmatprep.mubr.msk.f32.mxu0 %vm9150_vm0, %v11120_v49  ;;  %8681 = vmatprep.subr.bf16.mxu1 %v11121_v53 }
 0x7b0   :  { %8678 = vmatprep.subr.bf16.mxu0 %v11121_v53 }
 0x7b1   :  { %8159 = vmatmul.mubr.msk.f32.vlgmr.msra.gmra.mrb[38].mxu1 %vm184_vm5, %v10010_v26  ;;  %8166 = vmatmul.mubr.msk.f32.vlgmr.msra.gmra.mrb[38].mxu0 %vm271_vm4, %v3795_v2 }
 0x7b2   :  { %8683 = vmatpush3.bf16.msra.mxu1 %v9391_v35  ;;  %8183 = vmatprep.mubr.msk.f32.mxu1 %vm9150_vm0, %v11120_v49 }
 0x7b3   :  { %8684 = vmatprep.subr.bf16.mxu1 %v11121_v53  ;;  %8680 = vmatpush3.bf16.msra.mxu0 %v9387_v34 }
 0x7b4   :  { %8172 = vmatprep.mubr.msk.f32.mxu0 %vm9150_vm0, %v11120_v49  ;;  %8687 = vmatprep.subr.bf16.mxu0 %v11121_v53 }
 0x7b6   :  { %8686 = vmatpush3.bf16.msra.mxu1 %v9407_v38  ;;  %8173 = vmatmul.mubr.msk.f32.vlgmr.msra.gmra.mrb[40].mxu0 %vm271_vm4, %v3795_v2 }
 0x7b7   :  { %8689 = vmatpush3.bf16.msra.mxu0 %v9429_v42  ;;  %8194 = vmatprep.mubr.msk.f32.mxu0 %vm9150_vm0, %v11120_v49 }
 0x7b8   :  { %8690 = vmatprep.subr.bf16.mxu0 %v11121_v53  ;;  %8693 = vmatprep.subr.bf16.mxu1 %v11121_v53 }
 0x7b9   :  { %8184 = vmatmul.mubr.msk.f32.vlgmr.msra.gmra.mrb[40].mxu1 %vm184_vm5, %v10010_v26 }
 0x7ba   :  { %8695 = vmatpush3.bf16.msra.mxu1 %v9446_v47  ;;  %8205 = vmatprep.mubr.msk.f32.mxu1 %vm9150_vm0, %v11120_v49 }
 0x7bb   :  { %8692 = vmatpush3.bf16.msra.mxu0 %v9435_v44  ;;  %8696 = vmatprep.subr.bf16.mxu1 %v11121_v53 }
 0x7bc   :  { %8699 = vmatprep.subr.bf16.mxu0 %v11121_v53 }
 0x7be   :  { %8698 = vmatpush3.bf16.msra.mxu1 %v9499_v43 }
 0x7bf   :  { %8705 = vmatprep.subr.bf16.mxu1 %v11121_v53 }
 0x7de   :  { %v2704_v6 = vpop.permute.xlu0 %2703 }
 0x7df   :  { %v2706_v18 = vmul.f32 %v2704_v6, %v2700_v1  ;;  %v10121_v1 = vld [vmem:[%s11058_s15] ss:$0 sm:$0xff] }
 0x7e1   :  { %v2708_v39 = vrot.slane %v2706_v18, 1  ;;  %v2709_v41 = vrot.slane %v2706_v18, 2  ;;  %v2710_v55 = vrot.slane %v2706_v18, 3  ;;  %v10099_v10 = vadd.f32 %v2706_v18, %v9990_v33  ;;  %v10127_v18 = vld [vmem:[%s11060_s17] ss:$0 sm:$0xff] }
 0x7e3   :  { %11122 = vst [vmem:[#allocation17_spill] sm:$0xff] %v10099_v10  ;;  %v10102_v16 = vadd.f32 %v2708_v39, %v9992_v9  ;;  %v10105_v20 = vadd.f32 %v2709_v41, %v9988_v3  ;;  %v10108_v45 = vadd.f32 %v2710_v55, %v9994_v54  ;;  %v2723_v62 = vmul.f32 %v2722_v29, %v10099_v10 }
 0x7e5   :  { %11123 = vst [vmem:[#allocation18_spill] sm:$0xff] %v10102_v16  ;;  %11124 = vst [vmem:[#allocation19_spill] sm:$0xff] %v10105_v20  ;;  %v2724_v61 = vmul.f32 %v2722_v29, %v10102_v16  ;;  %v2725_v11 = vmul.f32 %v2722_v29, %v10105_v20  ;;  %v2726_v57 = vmul.f32 %v2722_v29, %v10108_v45 }
 0x7e6   :  { %11125 = vst [vmem:[#allocation20_spill] sm:$0xff] %v10108_v45 }
 0x7e7   :  { %v2731_v60 = vrot.slane %v2724_v61, 7  ;;  %v2733_v33 = vrot.slane %v2725_v11, 6  ;;  %v2735_v9 = vrot.slane %v2726_v57, 5 }
 0x7e9   :  { %v2732_v40 = vsel %vm269_vm3, %v2731_v60, %v2723_v62 }
 0x7ea   :  { %v2734_v14 = vsel %vm1803_vm12, %v2733_v33, %v2732_v40 }
 0x7eb   :  { %v2736_v3 = vsel %vm2684_vm7, %v2735_v9, %v2734_v14 }
 0x7ec   :  { %v2738_v54 = vsel %vm2687_vm8, %v2736_v3, 0.0  ;;  %vm4452_vm8 = vcmask 64516  }
 0x7ed   :  { %2739 = vadd.xlane.f32.xlu0 %v2738_v54 }
 0x878   :  { %v3430_v2 = vpop.f32.mrb[34].mxu0  ;;  %v3506_v63 = vpop.f32.mrb[34].mxu1 }
 0x879   :  { %v3431_v6 = vadd.f32 %v10121_v1, %v3430_v2  ;;  %v3507_v39 = vadd.f32 %v10127_v18, %v3506_v63  ;;  %v8120_v41 = vpop.f32.mrb[35].mxu0  ;;  %v8131_v55 = vpop.f32.mrb[35].mxu1 }
 0x87b   :  { %v7422_v29 = vmul.f32 -1.442695, %v3431_v6  ;;  %v3511_v61 = vmin.f32 %v3507_v39, 20.0  ;;  %vm3510_vm10 = vcmp.gt.f32.partialorder %v3507_v39, 20.0 }
 0x87c   :  { %v3864_v11 = vpop.f32.mrb[36].mxu1 }
 0x87d   :  { %8922 = vpow2.f32 %v7422_v29  ;;  %v3512_v57 = vmul.f32 1.442695, %v3511_v61  ;;  %v8149_v62 = vpop.f32.mrb[37].mxu1 }
 0x87f   :  { %8924 = vpow2.f32 %v3512_v57 }
 0x880   :  { %v3785_v60 = vpop.f32.mrb[36].mxu0 }
 0x881   :  { %v3865_v33 = vadd.f32 %v3864_v11, %v3785_v60  ;;  %v8142_v40 = vpop.f32.mrb[37].mxu0 }
 0x883   :  { %v3868_v9 = vadd.f32 %v9947_v7, %v3865_v33 }
 0x884   :  { %v3941_v14 = vpop.f32.mrb[38].mxu1  ;;  %v4011_v3 = vpop.f32.mrb[38].mxu0 }
 0x885   :  { %v7426_v54 = vmul.f32 -1.442695, %v3868_v9  ;;  %v4012_v2 = vadd.f32 %v4011_v3, %v3941_v14  ;;  %v8160_v45 = vpop.f32.mrb[39].mxu1  ;;  %v8167_v63 = vpop.f32.mrb[39].mxu0 }
 0x887   :  { %v8923_v41 = vpop.eup %8922  ;;  %8926 = vpow2.f32 %v7426_v54  ;;  %v4015_v6 = vadd.f32 %v9953_v21, %v4012_v2  ;;  %v10136_v2 = vld [vmem:[%s11061_s18 + $0x6] sm:$0x3] }
 0x888   :  { %v3437_v55 = vadd.f32 1.0, %v8923_v41 }
 0x889   :  { %v8925_v29 = vpop.eup %8924  ;;  %v7429_v61 = vmul.f32 -1.442695, %v4015_v6  ;;  %v4088_v62 = vpop.f32.mrb[40].mxu0 }
 0x88a   :  { %8928 = vrcp.f32 %v3437_v55  ;;  %v3514_v57 = vadd.f32 1.0, %v8925_v29  ;;  %v8174_v11 = vpop.f32.mrb[41].mxu0  ;;  %v3517_v40 = vmul.f32 -0.5, %v8925_v29  ;;  %v3520_v63 = vand.u32 2147483647, %v8925_v29 }
 0x88b   :  { %v4089_v52 = vadd.f32 %v9976_v48, %v4088_v62  ;;  %v10158_v62 = vld [vmem:[%s11111_s24] sm:$0xff] }
 0x88c   :  { %8930 = vlog2.f32 %v3514_v57  ;;  %v4158_v60 = vpop.f32.mrb[40].mxu1  ;;  %v3518_v45 = vadd.f32 1.0, %v3517_v40  ;;  %vm3521_vm9 = vcmp.lt.f32.partialorder %v3520_v63, 0.0004427343 }
 0x88d   :  { %8932 = vpow2.f32 %v7429_v61  ;;  %v8185_v33 = vpop.f32.mrb[41].mxu1  ;;  %v4159_v10 = vadd.f32 %v9970_v50, %v4158_v60 }
 0x88e   :  { %v3519_v11 = vmul.f32 %v8925_v29, %v3518_v45  ;;  %v3551_v33 = vrot.slane %v10136_v2, %v9599_v19 }
 0x891   :  { %v8927_v9 = vpop.eup %8926 }
 0x892   :  { %v3872_v14 = vadd.f32 1.0, %v8927_v9 }
 0x894   :  { %v8929_v3 = vpop.eup %8928  ;;  %8934 = vrcp.f32 %v3872_v14 }
 0x895   :  { %v3661_v54 = vrot.slane %v8929_v3, %v9596_v5  ;;  %v3537_v60 = vrot.slane %v8929_v3, 5 }
 0x896   :  { %v8931_v41 = vpop.eup %8930 }
 0x897   :  { %v8933_v6 = vpop.eup %8932  ;;  %v3662_v55 = vcombine.high %v3661_v54, %v3661_v54  ;;  %v3669_v61 = vrot.slane %v3661_v54, %v9596_v5  ;;  %v3516_v57 = vmul.f32 0.6931472, %v8931_v41 }
 0x898   :  { %v4019_v16 = vadd.f32 1.0, %v8933_v6  ;;  %v3538_v6 = vrot.slane %v8929_v3, 6 }
 0x899   :  { %v3676_v40 = vrot.slane %v3662_v55, %v9596_v5  ;;  %v3677_v9 = vcombine.high %v3669_v61, %v3669_v61  ;;  %3683 = vst.msk [vmem:[#allocation4 + $0x3] sm:$0x1] %vm1007_vm6, %v3669_v61  ;;  %v3522_v14 = vsel %vm3521_vm9, %v3519_v11, %v3516_v57  ;;  %v10151_v55 = vld [vmem:[%s11111_s24 + $0x18] sm:$0xff]  ;;  %v10164_v57 = vld [vmem:[%s11111_s24 + $0x8] sm:$0xff] }
 0x89a   :  { %v3523_v20 = vsel %vm3510_vm10, %v3507_v39, %v3522_v14  ;;  %8936 = vrcp.f32 %v4019_v16 }
 0x89b   :  { %v3678_v54 = vcombine.high %v3676_v40, %v3676_v40  ;;  %3684 = vst.msk [vmem:[#allocation4 + $0xb] sm:$0x1] %vm1007_vm6, %v3676_v40  ;;  %3685 = vst.msk [vmem:[#allocation4 + $0x13] sm:$0x1] %vm1007_vm6, %v3677_v9  ;;  %v3525_v29 = vrot.slane %v3523_v20, 5  ;;  %v3526_v45 = vrot.slane %v3523_v20, 6  ;;  %v3693_v41 = vrot.slane %v3523_v20, %v9596_v5 }
 0x89c   :  { %v3527_v63 = vrot.slane %v3523_v20, 7  ;;  %v3535_v39 = vmul.f32 %v10151_v55, %v3523_v20  ;;  %v10170_v20 = vld [vmem:[%s11111_s24 + $0x10] sm:$0xff]  ;;  %v3539_v9 = vrot.slane %v8929_v3, 7 }
 0x89d   :  { %3686 = vst.msk [vmem:[#allocation4 + $0x1b] sm:$0x1] %vm1007_vm6, %v3678_v54  ;;  %v3532_v61 = vmul.f32 %v10158_v62, %v3525_v29  ;;  %v3533_v11 = vmul.f32 %v10164_v57, %v3526_v45  ;;  %v3694_v54 = vcombine.high %v3693_v41, %v3693_v41  ;;  %v3701_v15 = vrot.slane %v3693_v41, %v9596_v5 }
 0x89e   :  { %v3534_v40 = vmul.f32 %v10170_v20, %v3527_v63  ;;  %v8935_v14 = vpop.eup %8934  ;;  %v10174_v29 = vadd.f32 %v8929_v3, %v3535_v39 }
 0x89f   :  { %v4162_v32 = vmul.f32 %v8935_v14, %v4159_v10  ;;  %v10176_v24 = vadd.f32 %v3537_v60, %v3532_v61  ;;  %v10178_v37 = vadd.f32 %v3538_v6, %v3533_v11  ;;  %v3708_v25 = vrot.slane %v3694_v54, %v9596_v5  ;;  %3715 = vst.msk [vmem:[#allocation6 + $0x3] sm:$0x1] %vm1007_vm6, %v3701_v15 }
 0x8a0   :  { %v10180_v45 = vadd.f32 %v3539_v9, %v3534_v40  ;;  %v3709_v30 = vcombine.high %v3701_v15, %v3701_v15  ;;  %v3555_v16 = vmul.f32 %v3551_v33, %v10174_v29 }
 0x8a1   :  { %v4163_v63 = vadd.f32 %v4162_v32, %v4089_v52  ;;  %v3553_v23 = vmul.f32 %v3551_v33, %v10178_v37  ;;  %v3710_v3 = vcombine.high %v3708_v25, %v3708_v25  ;;  %3716 = vst.msk [vmem:[#allocation6 + $0xb] sm:$0x1] %vm1007_vm6, %v3708_v25  ;;  %v3552_v10 = vmul.f32 %v3551_v33, %v10176_v24 }
 0x8a2   :  { %v3554_v41 = vmul.f32 %v3551_v33, %v10180_v45  ;;  %3717 = vst.msk [vmem:[#allocation6 + $0x13] sm:$0x1] %vm1007_vm6, %v3709_v30  ;;  %v3564_v15 = vrot.slane %v3555_v16, 5  ;;  %v4674_v16 = vrot.slane %v9844_v17, 4  ;;  %v179_v17 = vld [vmem:[%s11063_s20 + $0x6] sm:$0x3] }
 0x8a3   :  { %8938 = vtanh.f32 %v4163_v63  ;;  %v3560_v39 = vrot.slane %v3553_v23, 7  ;;  %3718 = vst.msk [vmem:[#allocation6 + $0x1b] sm:$0x1] %vm1007_vm6, %v3710_v3  ;;  %v4676_v3 = vrot.slane %v9850_v27, 3  ;;  %v10274_v27 = vpop.xlane.xlu0 %2739 }
 0x8a4   :  { %v3562_v60 = vrot.slane %v3554_v41, 6  ;;  %v8937_v61 = vpop.eup %8936  ;;  %v4673_v41 = vrot.slane %v9838_v12, 5  ;;  %11126 = vst [vmem:[#allocation21_spill] sm:$0xff] %v10274_v27 }
 0x8a5   :  { %v3561_v32 = vsel %vm1803_vm12, %v3560_v39, %v3552_v10  ;;  %v4165_v30 = vsub.f32 1.0, %v8937_v61  ;;  %v4167_v23 = vmul.f32 %v8937_v61, %v10010_v26  ;;  %v171_v26 = vld [vmem:[%s11062_s19 + $0x6] sm:$0x3] }
 0x8a6   :  { %v3563_v52 = vsel %vm2684_vm7, %v3562_v60, %v3561_v32  ;;  %v3575_v9 = vrot.slane %v171_v26, %v9599_v19  ;;  %v4675_v39 = vsel %vm263_vm1, %v4674_v16, %v4673_v41 }
 0x8a7   :  { %v3566_v6 = vsel %vm3565_vm11, %v3564_v15, %v3563_v52  ;;  %v4678_v15 = vrot.slane %v9863_v56, 2  ;;  %v3581_v56 = vrot.slane %v179_v17, %v9599_v19 }
 0x8a8   :  { %v3569_v25 = vsel %vm3568_vm13, %v3566_v6, 0.0  ;;  %v4677_v6 = vsel %vm266_vm2, %v4676_v3, %v4675_v39 }
 0x8a9   :  { %3570 = vadd.xlane.f32.xlu1 %v3569_v25  ;;  %v4679_v12 = vsel %vm269_vm3, %v4678_v15, %v4677_v6 }
 0x8ad   :  { %v8939_v11 = vpop.eup %8938 }
 0x8ae   :  { %v4166_v33 = vmul.f32 %v8939_v11, %v4165_v30 }
 0x8b0   :  { %v10196_v40 = vadd.f32 %v4167_v23, %v4166_v33  ;;  %v3603_v23 = vrot.slane %v10136_v2, %v9747_v0 }
 0x8b2   :  { %8195 = vmatmul.mubr.msk.f32.vlgmr.msra.gmra.mrb[42].mxu0 %vm184_vm5, %v10196_v40 }
 0x8b3   :  { %8701 = vmatpush3.bf16.msra.mxu0 %v9480_v36  ;;  %8216 = vmatprep.mubr.msk.f32.mxu0 %vm9150_vm0, %v11120_v49 }
 0x8b4   :  { %8702 = vmatprep.subr.bf16.mxu0 %v11121_v53 }
 0x8b7   :  { %8704 = vmatpush3.bf16.msra.mxu0 %v9504_v46 }
 0x8b8   :  { %8711 = vmatprep.subr.bf16.mxu0 %v11121_v53 }
 0x936   :  { %v3571_v14 = vpop.xlane.xlu1 %3570 }
 0x937   :  { %v3576_v54 = vadd.f32 %v3575_v9, %v3571_v14 }
 0x939   :  { %8940 = vtanh.f32 %v3576_v54 }
 0x943   :  { %v8941_v63 = vpop.eup %8940 }
 0x944   :  { %3584 = vperm.xlu0 %8850, %v8941_v63  }
 0x985   :  { %v4238_v10 = vpop.f32.mrb[42].mxu0 }
 0x986   :  { %v4239_v60 = vadd.f32 %v10031_v58, %v4238_v10  ;;  %v8196_v32 = vpop.f32.mrb[43].mxu0 }
 0x988   :  { %v4242_v52 = vmax.f32 %v4239_v60, 0.0 }
 0x98a   :  { %8206 = vmatmul.mubr.msk.f32.vlgmr.msra.gmra.mrb[42].mxu1 %vm184_vm5, %v4242_v52  ;;  %8217 = vmatmul.mubr.msk.f32.vlgmr.msra.gmra.mrb[44].mxu0 %vm184_vm5, %v4242_v52 }
 0x98b   :  { %8707 = vmatpush3.bf16.msra.mxu1 %v9289_v4  ;;  %8713 = vmatpush3.bf16.msra.mxu0 %v9301_v8 }
 0x98c   :  { %8708 = vmatprep.subr.bf16.mxu1 %v11121_v53  ;;  %8234 = vmatprep.mubr.msk.f32.mxu0 %vm9150_vm0, %v11120_v49 }
 0x98d   :  { %8714 = vmatprep.subr.bf16.mxu0 %v11121_v53  ;;  %8227 = vmatprep.mubr.msk.f32.mxu1 %vm9150_vm0, %v11120_v49 }
 0x98e   :  { %8235 = vmatmul.mubr.msk.f32.vlgmr.msra.gmra.mrb[46].mxu0 %vm271_vm4, %v4679_v12 }
 0x98f   :  { %8710 = vmatpush3.bf16.msra.mxu1 %v9323_v13  ;;  %8716 = vmatpush3.bf16.msra.mxu0 %v9347_v22 }
 0x990   :  { %8717 = vmatprep.subr.bf16.mxu0 %v11121_v53  ;;  %8720 = vmatprep.subr.bf16.mxu1 %v11121_v53 }
 0x991   :  { %8245 = vmatprep.mubr.msk.f32.mxu0 %vm9150_vm0, %v11120_v49 }
 0x992   :  { %8228 = vmatmul.mubr.msk.f32.vlgmr.msra.gmra.mrb[44].mxu1 %vm184_vm5, %v10196_v40 }
 0x993   :  { %8719 = vmatpush3.bf16.msra.mxu0 %v9372_v31  ;;  %8722 = vmatpush3.bf16.msra.mxu1 %v9361_v28 }
 0x994   :  { %8252 = vmatprep.mubr.msk.f32.mxu1 %vm9150_vm0, %v11120_v49  ;;  %8726 = vmatprep.subr.bf16.mxu0 %v11121_v53 }
 0x995   :  { %8723 = vmatprep.subr.bf16.mxu1 %v11121_v53 }
 0x996   :  { %8246 = vmatmul.mubr.msk.f32.vlgmr.msra.gmra.mrb[48].mxu0 %vm184_vm5, %v10196_v40  ;;  %8253 = vmatmul.mubr.msk.f32.vlgmr.msra.gmra.mrb[46].mxu1 %vm271_vm4, %v4679_v12 }
 0x997   :  { %8728 = vmatpush3.bf16.msra.mxu0 %v9391_v35  ;;  %8270 = vmatprep.mubr.msk.f32.mxu0 %vm9150_vm0, %v11120_v49 }
 0x998   :  { %8729 = vmatprep.subr.bf16.mxu0 %v11121_v53  ;;  %8725 = vmatpush3.bf16.msra.mxu1 %v9387_v34 }
 0x999   :  { %8259 = vmatprep.mubr.msk.f32.mxu1 %vm9150_vm0, %v11120_v49  ;;  %8732 = vmatprep.subr.bf16.mxu1 %v11121_v53 }
 0x99b   :  { %8731 = vmatpush3.bf16.msra.mxu0 %v9407_v38  ;;  %8260 = vmatmul.mubr.msk.f32.vlgmr.msra.gmra.mrb[48].mxu1 %vm271_vm4, %v4679_v12 }
 0x99c   :  { %8734 = vmatpush3.bf16.msra.mxu1 %v9429_v42  ;;  %8281 = vmatprep.mubr.msk.f32.mxu1 %vm9150_vm0, %v11120_v49 }
 0x99d   :  { %8735 = vmatprep.subr.bf16.mxu1 %v11121_v53  ;;  %8738 = vmatprep.subr.bf16.mxu0 %v11121_v53 }
 0x99e   :  { %8271 = vmatmul.mubr.msk.f32.vlgmr.msra.gmra.mrb[50].mxu0 %vm184_vm5, %v10196_v40 }
 0x99f   :  { %8740 = vmatpush3.bf16.msra.mxu0 %v9446_v47  ;;  %8292 = vmatprep.mubr.msk.f32.mxu0 %vm9150_vm0, %v11120_v49 }
 0x9a0   :  { %8737 = vmatpush3.bf16.msra.mxu1 %v9435_v44  ;;  %8741 = vmatprep.subr.bf16.mxu0 %v11121_v53 }
 0x9a1   :  { %8744 = vmatprep.subr.bf16.mxu1 %v11121_v53 }
 0x9a3   :  { %8743 = vmatpush3.bf16.msra.mxu0 %v9499_v43 }
 0x9a4   :  { %8750 = vmatprep.subr.bf16.mxu0 %v11121_v53 }
 0x9c3   :  { %v3585_v61 = vpop.permute.xlu0 %3584 }
 0x9c4   :  { %v3587_v25 = vmul.f32 %v3585_v61, %v3581_v56 }
 0x9c6   :  { %v3589_v30 = vrot.slane %v3587_v25, 1  ;;  %v3590_v11 = vrot.slane %v3587_v25, 2  ;;  %v3591_v33 = vrot.slane %v3587_v25, 3  ;;  %v10280_v26 = vadd.f32 %v3587_v25, %v10176_v24 }
 0x9c8   :  { %11127 = vst [vmem:[#allocation22_spill] sm:$0xff] %v10280_v26  ;;  %v10283_v9 = vadd.f32 %v3589_v30, %v10178_v37  ;;  %v10286_v14 = vadd.f32 %v3590_v11, %v10180_v45  ;;  %v10289_v54 = vadd.f32 %v3591_v33, %v10174_v29  ;;  %v3604_v2 = vmul.f32 %v3603_v23, %v10280_v26 }
 0x9ca   :  { %11128 = vst [vmem:[#allocation23_spill] sm:$0xff] %v10283_v9  ;;  %11129 = vst [vmem:[#allocation24_spill] sm:$0xff] %v10286_v14  ;;  %v3605_v63 = vmul.f32 %v3603_v23, %v10283_v9  ;;  %v3606_v41 = vmul.f32 %v3603_v23, %v10286_v14  ;;  %v3607_v16 = vmul.f32 %v3603_v23, %v10289_v54 }
 0x9cb   :  { %11130 = vst [vmem:[#allocation25_spill] sm:$0xff] %v10289_v54 }
 0x9cc   :  { %v3612_v3 = vrot.slane %v3605_v63, 7  ;;  %v3614_v24 = vrot.slane %v3606_v41, 6  ;;  %v3616_v37 = vrot.slane %v3607_v16, 5 }
 0x9ce   :  { %v3613_v10 = vsel %vm1803_vm12, %v3612_v3, %v3604_v2 }
 0x9cf   :  { %v3615_v39 = vsel %vm2684_vm7, %v3614_v24, %v3613_v10 }
 0x9d0   :  { %v3617_v45 = vsel %vm3565_vm11, %v3616_v37, %v3615_v39 }
 0x9d1   :  { %v3619_v29 = vsel %vm3568_vm13, %v3617_v45, 0.0  ;;  %vm5335_vm13 = vcmask 64517  }
 0x9d2   :  { %3620 = vadd.xlane.f32.xlu0 %v3619_v29 }
 0xa5d   :  { %v4312_v60 = vpop.f32.mrb[42].mxu1  ;;  %v4388_v32 = vpop.f32.mrb[44].mxu0 }
 0xa5e   :  { %v4313_v15 = vadd.f32 %v10121_v1, %v4312_v60  ;;  %v4389_v52 = vadd.f32 %v10127_v18, %v4388_v32  ;;  %v8207_v6 = vpop.f32.mrb[43].mxu1  ;;  %v8218_v12 = vpop.f32.mrb[45].mxu0 }
 0xa60   :  { %v7434_v17 = vmul.f32 -1.442695, %v4313_v15  ;;  %v4393_v56 = vmin.f32 %v4389_v52, 20.0  ;;  %vm4392_vm12 = vcmp.gt.f32.partialorder %v4389_v52, 20.0 }
 0xa61   :  { %v4748_v61 = vpop.f32.mrb[46].mxu0 }
 0xa62   :  { %8942 = vpow2.f32 %v7434_v17  ;;  %v4394_v25 = vmul.f32 1.442695, %v4393_v56  ;;  %v8236_v30 = vpop.f32.mrb[47].mxu0 }
 0xa64   :  { %8944 = vpow2.f32 %v4394_v25 }
 0xa65   :  { %v4669_v11 = vpop.f32.mrb[44].mxu1 }
 0xa66   :  { %v4749_v33 = vadd.f32 %v4748_v61, %v4669_v11  ;;  %v8229_v23 = vpop.f32.mrb[45].mxu1 }
 0xa68   :  { %v4752_v63 = vadd.f32 %v9947_v7, %v4749_v33  ;;  %v164_v33 = vld [vmem:[%s11061_s18 + $0x8] sm:$0x3] }
 0xa69   :  { %v4825_v41 = vpop.f32.mrb[48].mxu0  ;;  %v4895_v16 = vpop.f32.mrb[46].mxu1 }
 0xa6a   :  { %v7438_v2 = vmul.f32 -1.442695, %v4752_v63  ;;  %v4896_v3 = vadd.f32 %v4895_v16, %v4825_v41  ;;  %v8247_v24 = vpop.f32.mrb[49].mxu0  ;;  %v8254_v10 = vpop.f32.mrb[47].mxu1 }
 0xa6b   :  { %v4435_v24 = vrot.slane %v164_v33, %v9599_v19 }
 0xa6c   :  { %v8943_v37 = vpop.eup %8942  ;;  %8946 = vpow2.f32 %v7438_v2  ;;  %v4899_v39 = vadd.f32 %v9953_v21, %v4896_v3 }
 0xa6d   :  { %v4319_v45 = vadd.f32 1.0, %v8943_v37 }
 0xa6e   :  { %v8945_v29 = vpop.eup %8944  ;;  %v7441_v60 = vmul.f32 -1.442695, %v4899_v39  ;;  %v4972_v32 = vpop.f32.mrb[48].mxu1 }
 0xa6f   :  { %8948 = vrcp.f32 %v4319_v45  ;;  %v4396_v15 = vadd.f32 1.0, %v8945_v29  ;;  %v8261_v6 = vpop.f32.mrb[49].mxu1  ;;  %v4399_v17 = vmul.f32 -0.5, %v8945_v29  ;;  %v4402_v11 = vand.u32 2147483647, %v8945_v29 }
 0xa70   :  { %v4973_v45 = vadd.f32 %v9976_v48, %v4972_v32 }
 0xa71   :  { %8950 = vlog2.f32 %v4396_v15  ;;  %v5042_v12 = vpop.f32.mrb[50].mxu0  ;;  %v4400_v25 = vadd.f32 1.0, %v4399_v17  ;;  %vm4403_vm14 = vcmp.lt.f32.partialorder %v4402_v11, 0.0004427343 }
 0xa72   :  { %8952 = vpow2.f32 %v7441_v60  ;;  %v8272_v7 = vpop.f32.mrb[51].mxu0  ;;  %v5043_v6 = vadd.f32 %v9970_v50, %v5042_v12 }
 0xa73   :  { %v4401_v3 = vmul.f32 %v8945_v29, %v4400_v25 }
 0xa76   :  { %v8947_v56 = vpop.eup %8946 }
 0xa77   :  { %v4756_v61 = vadd.f32 1.0, %v8947_v56 }
 0xa79   :  { %v8949_v30 = vpop.eup %8948  ;;  %8954 = vrcp.f32 %v4756_v61 }
 0xa7a   :  { %v4545_v21 = vrot.slane %v8949_v30, %v9596_v5  ;;  %v4420_v7 = vrot.slane %v8949_v30, 4  ;;  %v4422_v33 = vrot.slane %v8949_v30, 6  ;;  %v4423_v32 = vrot.slane %v8949_v30, 7 }
 0xa7b   :  { %v8951_v23 = vpop.eup %8950 }
 0xa7c   :  { %v8953_v63 = vpop.eup %8952  ;;  %v4546_v41 = vcombine.high %v4545_v21, %v4545_v21  ;;  %v4553_v16 = vrot.slane %v4545_v21, %v9596_v5  ;;  %v4398_v2 = vmul.f32 0.6931472, %v8951_v23  ;;  %v4421_v21 = vrot.slane %v8949_v30, 5 }
 0xa7d   :  { %v4903_v15 = vadd.f32 1.0, %v8953_v63 }
 0xa7e   :  { %v4560_v10 = vrot.slane %v4546_v41, %v9596_v5  ;;  %v4561_v37 = vcombine.high %v4553_v16, %v4553_v16  ;;  %4567 = vst.msk [vmem:[#allocation4 + $0x4] sm:$0x1] %vm1007_vm6, %v4553_v16  ;;  %v4404_v39 = vsel %vm4403_vm14, %v4401_v3, %v4398_v2  ;;  %vm6246_vm14 = vcmask 58368  }
 0xa7f   :  { %v4405_v60 = vsel %vm4392_vm12, %v4389_v52, %v4404_v39  ;;  %8956 = vrcp.f32 %v4903_v15  ;;  %vm6242_vm12 = vcmask 64518  }
 0xa80   :  { %v4562_v17 = vcombine.high %v4560_v10, %v4560_v10  ;;  %4568 = vst.msk [vmem:[#allocation4 + $0xc] sm:$0x1] %vm1007_vm6, %v4560_v10  ;;  %4569 = vst.msk [vmem:[#allocation4 + $0x14] sm:$0x1] %vm1007_vm6, %v4561_v37  ;;  %v4407_v29 = vrot.slane %v4405_v60, 4  ;;  %v4408_v56 = vrot.slane %v4405_v60, 5  ;;  %v4577_v11 = vrot.slane %v4405_v60, %v9596_v5 }
 0xa81   :  { %v4409_v61 = vrot.slane %v4405_v60, 6  ;;  %v4410_v25 = vrot.slane %v4405_v60, 7 }
 0xa82   :  { %4570 = vst.msk [vmem:[#allocation4 + $0x1c] sm:$0x1] %vm1007_vm6, %v4562_v17  ;;  %v4415_v48 = vmul.f32 %v10158_v62, %v4407_v29  ;;  %v4416_v50 = vmul.f32 %v10164_v57, %v4408_v56  ;;  %v4578_v23 = vcombine.high %v4577_v11, %v4577_v11  ;;  %v4585_v63 = vrot.slane %v4577_v11, %v9596_v5 }
 0xa83   :  { %v4417_v52 = vmul.f32 %v10170_v20, %v4409_v61  ;;  %v8955_v12 = vpop.eup %8954  ;;  %v4418_v41 = vmul.f32 %v10151_v55, %v4410_v25 }
 0xa84   :  { %v5046_v16 = vmul.f32 %v8955_v12, %v5043_v6  ;;  %v10322_v2 = vadd.f32 %v4420_v7, %v4415_v48  ;;  %v10324_v3 = vadd.f32 %v4421_v21, %v4416_v50  ;;  %v4592_v37 = vrot.slane %v4578_v23, %v9596_v5  ;;  %4599 = vst.msk [vmem:[#allocation6 + $0x4] sm:$0x1] %vm1007_vm6, %v4585_v63 }
 0xa85   :  { %v10326_v10 = vadd.f32 %v4422_v33, %v4417_v52  ;;  %v4593_v39 = vcombine.high %v4585_v63, %v4585_v63  ;;  %v10330_v30 = vadd.f32 %v4423_v32, %v4418_v41  ;;  %v10363_v63 = vld [vmem:[%s11106_s30 + $0x8] sm:$0xff] }
 0xa86   :  { %v5047_v60 = vadd.f32 %v5046_v16, %v4973_v45  ;;  %v4437_v17 = vmul.f32 %v4435_v24, %v10324_v3  ;;  %v4594_v29 = vcombine.high %v4592_v37, %v4592_v37  ;;  %4600 = vst.msk [vmem:[#allocation6 + $0xc] sm:$0x1] %vm1007_vm6, %v4592_v37  ;;  %v4436_v7 = vmul.f32 %v4435_v24, %v10322_v2  ;;  %v10369_v16 = vld [vmem:[%s11106_s30 + $0x10] sm:$0xff] }
 0xa87   :  { %v4438_v15 = vmul.f32 %v4435_v24, %v10326_v10  ;;  %4601 = vst.msk [vmem:[#allocation6 + $0x14] sm:$0x1] %vm1007_vm6, %v4593_v39  ;;  %v4439_v6 = vmul.f32 %v4435_v24, %v10330_v30  ;;  %v5581_v41 = vrot.slane %v10363_v63, 5  ;;  %v5583_v37 = vrot.slane %v10369_v16, 4 }
 0xa88   :  { %8958 = vtanh.f32 %v5047_v60  ;;  %v4444_v56 = vrot.slane %v4437_v17, 7  ;;  %4602 = vst.msk [vmem:[#allocation6 + $0x1c] sm:$0x1] %vm1007_vm6, %v4594_v29  ;;  %v10377_v29 = vld [vmem:[%s11106_s30 + $0x18] sm:$0xff] }
 0xa89   :  { %v4446_v61 = vrot.slane %v4438_v15, 6  ;;  %v4448_v25 = vrot.slane %v4439_v6, 5  ;;  %v8957_v33 = vpop.eup %8956  ;;  %v5585_v6 = vrot.slane %v10377_v29, 3 }
 0xa8a   :  { %v4445_v45 = vsel %vm2684_vm7, %v4444_v56, %v4436_v7  ;;  %v5049_v50 = vsub.f32 1.0, %v8957_v33  ;;  %v5051_v32 = vmul.f32 %v8957_v33, %v10196_v40  ;;  %v10357_v40 = vld [vmem:[%s11106_s30] sm:$0xff] }
 0xa8b   :  { %v4447_v11 = vsel %vm3565_vm11, %v4446_v61, %v4445_v45  ;;  %v5580_v23 = vrot.slane %v10357_v40, 6 }
 0xa8c   :  { %v4450_v21 = vsel %vm4449_vm15, %v4448_v25, %v4447_v11 }
 0xa8d   :  { %v4453_v48 = vsel %vm4452_vm8, %v4450_v21, 0.0  ;;  %v5582_v60 = vsel %vm263_vm1, %v5581_v41, %v5580_v23 }
 0xa8e   :  { %4454 = vadd.xlane.f32.xlu1 %v4453_v48  ;;  %v5584_v56 = vsel %vm266_vm2, %v5583_v37, %v5582_v60 }
 0xa92   :  { %v8959_v52 = vpop.eup %8958 }
 0xa93   :  { %v5050_v24 = vmul.f32 %v8959_v52, %v5049_v50 }
 0xa95   :  { %v10344_v12 = vadd.f32 %v5051_v32, %v5050_v24 }
 0xa97   :  { %8282 = vmatmul.mubr.msk.f32.vlgmr.msra.gmra.mrb[50].mxu1 %vm184_vm5, %v10344_v12 }
 0xa98   :  { %8746 = vmatpush3.bf16.msra.mxu1 %v9480_v36  ;;  %8303 = vmatprep.mubr.msk.f32.mxu1 %vm9150_vm0, %v11120_v49 }
 0xa99   :  { %8747 = vmatprep.subr.bf16.mxu1 %v11121_v53 }
 0xa9c   :  { %8749 = vmatpush3.bf16.msra.mxu1 %v9504_v46 }
 0xa9d   :  { %8756 = vmatprep.subr.bf16.mxu1 %v11121_v53 }
 0xb6a   :  { %v5122_v39 = vpop.f32.mrb[50].mxu1 }
 0xb6b   :  { %v5123_v17 = vadd.f32 %v10031_v58, %v5122_v39  ;;  %v8283_v15 = vpop.f32.mrb[51].mxu1  ;;  %v5586_v58 = vsel %vm269_vm3, %v5585_v6, %v5584_v56  ;;  %v10440_v39 = vld [vmem:[%s11051_s8] ss:$0 sm:$0xff] }
 0xb6d   :  { %v5126_v7 = vmax.f32 %v5123_v17, 0.0 }
 0xb6f   :  { %8293 = vmatmul.mubr.msk.f32.vlgmr.msra.gmra.mrb[52].mxu0 %vm184_vm5, %v5126_v7  ;;  %8304 = vmatmul.mubr.msk.f32.vlgmr.msra.gmra.mrb[52].mxu1 %vm184_vm5, %v5126_v7 }
 0xb70   :  { %8752 = vmatpush3.bf16.msra.mxu0 %v9289_v4  ;;  %8758 = vmatpush3.bf16.msra.mxu1 %v9301_v8 }
 0xb71   :  { %8753 = vmatprep.subr.bf16.mxu0 %v11121_v53  ;;  %8321 = vmatprep.mubr.msk.f32.mxu1 %vm9150_vm0, %v11120_v49 }
 0xb72   :  { %8759 = vmatprep.subr.bf16.mxu1 %v11121_v53  ;;  %8314 = vmatprep.mubr.msk.f32.mxu0 %vm9150_vm0, %v11120_v49 }
 0xb73   :  { %8322 = vmatmul.mubr.msk.f32.vlgmr.msra.gmra.mrb[54].mxu1 %vm271_vm4, %v5586_v58 }
 0xb74   :  { %8755 = vmatpush3.bf16.msra.mxu0 %v9323_v13  ;;  %8761 = vmatpush3.bf16.msra.mxu1 %v9347_v22 }
 0xb75   :  { %8762 = vmatprep.subr.bf16.mxu1 %v11121_v53  ;;  %8765 = vmatprep.subr.bf16.mxu0 %v11121_v53 }
 0xb76   :  { %8332 = vmatprep.mubr.msk.f32.mxu1 %vm9150_vm0, %v11120_v49 }
 0xb77   :  { %8315 = vmatmul.mubr.msk.f32.vlgmr.msra.gmra.mrb[54].mxu0 %vm184_vm5, %v10344_v12 }
 0xb78   :  { %8764 = vmatpush3.bf16.msra.mxu1 %v9372_v31  ;;  %8767 = vmatpush3.bf16.msra.mxu0 %v9361_v28 }
 0xb79   :  { %8339 = vmatprep.mubr.msk.f32.mxu0 %vm9150_vm0, %v11120_v49  ;;  %8771 = vmatprep.subr.bf16.mxu1 %v11121_v53 }
 0xb7a   :  { %8768 = vmatprep.subr.bf16.mxu0 %v11121_v53 }
 0xb7b   :  { %8333 = vmatmul.mubr.msk.f32.vlgmr.msra.gmra.mrb[56].mxu1 %vm184_vm5, %v10344_v12  ;;  %8340 = vmatmul.mubr.msk.f32.vlgmr.msra.gmra.mrb[56].mxu0 %vm271_vm4, %v5586_v58 }
 0xb7c   :  { %8773 = vmatpush3.bf16.msra.mxu1 %v9391_v35  ;;  %8357 = vmatprep.mubr.msk.f32.mxu1 %vm9150_vm0, %v11120_v49 }
 0xb7d   :  { %8774 = vmatprep.subr.bf16.mxu1 %v11121_v53  ;;  %8770 = vmatpush3.bf16.msra.mxu0 %v9387_v34 }
 0xb7e   :  { %8346 = vmatprep.mubr.msk.f32.mxu0 %vm9150_vm0, %v11120_v49  ;;  %8777 = vmatprep.subr.bf16.mxu0 %v11121_v53 }
 0xb80   :  { %8776 = vmatpush3.bf16.msra.mxu1 %v9407_v38  ;;  %8347 = vmatmul.mubr.msk.f32.vlgmr.msra.gmra.mrb[58].mxu0 %vm271_vm4, %v5586_v58  ;;  %v10446_v58 = vld [vmem:[%s11052_s9] ss:$0 sm:$0xff] }
 0xb81   :  { %8779 = vmatpush3.bf16.msra.mxu0 %v9429_v42  ;;  %8368 = vmatprep.mubr.msk.f32.mxu0 %vm9150_vm0, %v11120_v49 }
 0xb82   :  { %8780 = vmatprep.subr.bf16.mxu0 %v11121_v53  ;;  %8783 = vmatprep.subr.bf16.mxu1 %v11121_v53 }
 0xb83   :  { %8358 = vmatmul.mubr.msk.f32.vlgmr.msra.gmra.mrb[58].mxu1 %vm184_vm5, %v10344_v12 }
 0xb84   :  { %8785 = vmatpush3.bf16.msra.mxu1 %v9446_v47  ;;  %8379 = vmatprep.mubr.msk.f32.mxu1 %vm9150_vm0, %v11120_v49 }
 0xb85   :  { %8782 = vmatpush3.bf16.msra.mxu0 %v9435_v44  ;;  %8786 = vmatprep.subr.bf16.mxu1 %v11121_v53 }
 0xb86   :  { %8789 = vmatprep.subr.bf16.mxu0 %v11121_v53 }
 0xb88   :  { %8788 = vmatpush3.bf16.msra.mxu1 %v9499_v43 }
 0xb89   :  { %8795 = vmatprep.subr.bf16.mxu1 %v11121_v53 }
 0xc42   :  { %v5196_v61 = vpop.f32.mrb[52].mxu0  ;;  %v5272_v45 = vpop.f32.mrb[52].mxu1 }
 0xc43   :  { %v5197_v25 = vadd.f32 %v10121_v1, %v5196_v61  ;;  %v5273_v11 = vadd.f32 %v10127_v18, %v5272_v45  ;;  %v8294_v21 = vpop.f32.mrb[53].mxu0  ;;  %v8305_v33 = vpop.f32.mrb[53].mxu1 }
 0xc45   :  { %v7446_v48 = vmul.f32 -1.442695, %v5197_v25  ;;  %v5277_v50 = vmin.f32 %v5273_v11, 20.0  ;;  %vm5276_vm9 = vcmp.gt.f32.partialorder %v5273_v11, 20.0 }
 0xc46   :  { %v5655_v52 = vpop.f32.mrb[54].mxu1 }
 0xc47   :  { %8960 = vpow2.f32 %v7446_v48  ;;  %v5278_v24 = vmul.f32 1.442695, %v5277_v50  ;;  %v8323_v32 = vpop.f32.mrb[55].mxu1 }
 0xc49   :  { %8962 = vpow2.f32 %v5278_v24 }
 0xc4a   :  { %v5576_v23 = vpop.f32.mrb[54].mxu0 }
 0xc4b   :  { %v5656_v41 = vadd.f32 %v5655_v52, %v5576_v23  ;;  %v8316_v37 = vpop.f32.mrb[55].mxu0 }
 0xc4d   :  { %v5659_v1 = vadd.f32 %v10440_v39, %v5656_v41 }
 0xc4e   :  { %v5732_v18 = vpop.f32.mrb[56].mxu1  ;;  %v5802_v60 = vpop.f32.mrb[56].mxu0 }
 0xc4f   :  { %v7450_v17 = vmul.f32 -1.442695, %v5659_v1  ;;  %v5803_v15 = vadd.f32 %v5802_v60, %v5732_v18  ;;  %v8334_v6 = vpop.f32.mrb[57].mxu1  ;;  %v8341_v7 = vpop.f32.mrb[57].mxu0 }
 0xc51   :  { %v8961_v56 = vpop.eup %8960  ;;  %8964 = vpow2.f32 %v7450_v17  ;;  %v5806_v61 = vadd.f32 %v10446_v58, %v5803_v15  ;;  %v10453_v17 = vld [vmem:[%s11061_s18 + $0xa] sm:$0x3] }
 0xc52   :  { %v5203_v45 = vadd.f32 1.0, %v8961_v56  ;;  %11131 = vst [vmem:[#allocation26_spill] sm:$0xff] %v10453_v17 }
 0xc53   :  { %v8963_v25 = vpop.eup %8962  ;;  %v7453_v21 = vmul.f32 -1.442695, %v5806_v61  ;;  %v5879_v33 = vpop.f32.mrb[58].mxu0 }
 0xc54   :  { %8966 = vrcp.f32 %v5203_v45  ;;  %v5280_v48 = vadd.f32 1.0, %v8963_v25  ;;  %v8348_v50 = vpop.f32.mrb[59].mxu0  ;;  %v5283_v32 = vmul.f32 -0.5, %v8963_v25  ;;  %v5286_v18 = vand.u32 2147483647, %v8963_v25 }
 0xc56   :  { %8968 = vlog2.f32 %v5280_v48  ;;  %v5949_v52 = vpop.f32.mrb[58].mxu1  ;;  %v5284_v37 = vadd.f32 1.0, %v5283_v32  ;;  %vm5287_vm10 = vcmp.lt.f32.partialorder %v5286_v18, 0.0004427343  ;;  %v10465_v32 = vld [vmem:[%s11053_s10] ss:$0 sm:$0xff] }
 0xc57   :  { %8970 = vpow2.f32 %v7453_v21  ;;  %v8359_v24 = vpop.f32.mrb[59].mxu1  ;;  %v10458_v21 = vrot.slane %v10453_v17, %v9599_v19 }
 0xc58   :  { %v5285_v45 = vmul.f32 %v8963_v25, %v5284_v37  ;;  %v10471_v37 = vld [vmem:[%s11054_s11] ss:$0 sm:$0xff] }
 0xc59   :  { %v5950_v18 = vadd.f32 %v10471_v37, %v5949_v52 }
 0xc5b   :  { %v8965_v23 = vpop.eup %8964 }
 0xc5c   :  { %v5663_v41 = vadd.f32 1.0, %v8965_v23  ;;  %v5880_v23 = vadd.f32 %v10465_v32, %v5879_v33 }
 0xc5e   :  { %v8967_v1 = vpop.eup %8966  ;;  %8972 = vrcp.f32 %v5663_v41 }
 0xc5f   :  { %v5452_v60 = vrot.slane %v8967_v1, %v9596_v5  ;;  %v5307_v54 = vrot.slane %v8967_v1, 6 }
 0xc60   :  { %v8969_v15 = vpop.eup %8968 }
 0xc61   :  { %v8971_v6 = vpop.eup %8970  ;;  %v5453_v7 = vcombine.high %v5452_v60, %v5452_v60  ;;  %v5460_v56 = vrot.slane %v5452_v60, %v9596_v5  ;;  %v5282_v61 = vmul.f32 0.6931472, %v8969_v15  ;;  %v5304_v60 = vrot.slane %v8967_v1, 3 }
 0xc62   :  { %v5810_v41 = vadd.f32 1.0, %v8971_v6  ;;  %v5306_v6 = vrot.slane %v8967_v1, 5 }
 0xc63   :  { %v5467_v48 = vrot.slane %v5453_v7, %v9596_v5  ;;  %v5468_v50 = vcombine.high %v5460_v56, %v5460_v56  ;;  %5474 = vst.msk [vmem:[#allocation4 + $0x5] sm:$0x1] %vm1007_vm6, %v5460_v56  ;;  %v5288_v24 = vsel %vm5287_vm10, %v5285_v45, %v5282_v61  ;;  %vm7150_vm10 = vcmask 64519  }
 0xc64   :  { %v5289_v25 = vsel %vm5276_vm9, %v5273_v11, %v5288_v24  ;;  %v5305_v11 = vrot.slane %v8967_v1, 4  ;;  %8974 = vrcp.f32 %v5810_v41  ;;  %vm7154_vm9 = vcmask 59392  }
 0xc65   :  { %v5469_v15 = vcombine.high %v5467_v48, %v5467_v48  ;;  %5475 = vst.msk [vmem:[#allocation4 + $0xd] sm:$0x1] %vm1007_vm6, %v5467_v48  ;;  %5476 = vst.msk [vmem:[#allocation4 + $0x15] sm:$0x1] %vm1007_vm6, %v5468_v50  ;;  %v5291_v7 = vrot.slane %v5289_v25, 3  ;;  %v5292_v56 = vrot.slane %v5289_v25, 4  ;;  %v5484_v33 = vrot.slane %v5289_v25, %v9596_v5 }
 0xc66   :  { %v5293_v61 = vrot.slane %v5289_v25, 5  ;;  %v5294_v45 = vrot.slane %v5289_v25, 6 }
 0xc67   :  { %5477 = vst.msk [vmem:[#allocation4 + $0x1d] sm:$0x1] %vm1007_vm6, %v5469_v15  ;;  %v5299_v24 = vmul.f32 %v10158_v62, %v5291_v7  ;;  %v5300_v52 = vmul.f32 %v10164_v57, %v5292_v56  ;;  %v5485_v14 = vcombine.high %v5484_v33, %v5484_v33  ;;  %v5492_v50 = vrot.slane %v5484_v33, %v9596_v5  ;;  %v10508_v7 = vld [vmem:[%s11062_s19 + $0x8] sm:$0x3] }
 0xc68   :  { %v5301_v17 = vmul.f32 %v10170_v20, %v5293_v61  ;;  %v8973_v48 = vpop.eup %8972  ;;  %v5302_v9 = vmul.f32 %v10151_v55, %v5294_v45  ;;  %v4459_v56 = vrot.slane %v10508_v7, %v9599_v19  ;;  %v4455_v61 = vpop.xlane.xlu1 %4454 }
 0xc69   :  { %v5953_v26 = vmul.f32 %v8973_v48, %v5950_v18  ;;  %v10483_v27 = vadd.f32 %v5304_v60, %v5299_v24  ;;  %v10485_v25 = vadd.f32 %v5305_v11, %v5300_v52  ;;  %v5499_v62 = vrot.slane %v5485_v14, %v9596_v5  ;;  %5506 = vst.msk [vmem:[#allocation6 + $0x5] sm:$0x1] %vm1007_vm6, %v5492_v50 }
 0xc6a   :  { %v10487_v15 = vadd.f32 %v5306_v6, %v5301_v17  ;;  %v5500_v57 = vcombine.high %v5492_v50, %v5492_v50  ;;  %v10491_v20 = vadd.f32 %v5307_v54, %v5302_v9  ;;  %v4460_v24 = vadd.f32 %v4459_v56, %v4455_v61  ;;  %v10528_v50 = vpop.xlane.xlu0 %3620 }
 0xc6b   :  { %v5954_v1 = vadd.f32 %v5953_v26, %v5880_v23  ;;  %v5321_v41 = vmul.f32 %v10458_v21, %v10485_v25  ;;  %v5501_v18 = vcombine.high %v5499_v62, %v5499_v62  ;;  %5507 = vst.msk [vmem:[#allocation6 + $0xd] sm:$0x1] %vm1007_vm6, %v5499_v62  ;;  %v5320_v14 = vmul.f32 %v10458_v21, %v10483_v27 }
 0xc6c   :  { %v5322_v55 = vmul.f32 %v10458_v21, %v10487_v15  ;;  %5508 = vst.msk [vmem:[#allocation6 + $0x15] sm:$0x1] %vm1007_vm6, %v5500_v57 }
 0xc6d   :  { %8976 = vtanh.f32 %v5954_v1  ;;  %v5328_v17 = vrot.slane %v5321_v41, 7  ;;  %5509 = vst.msk [vmem:[#allocation6 + $0x1d] sm:$0x1] %vm1007_vm6, %v5501_v18  ;;  %v6489_v18 = vrot.slane %v10363_v63, 6 }
 0xc6e   :  { %v5330_v60 = vrot.slane %v5322_v55, 6  ;;  %v8975_v23 = vpop.eup %8974  ;;  %8978 = vtanh.f32 %v4460_v24  ;;  %v6488_v55 = vrot.slane %v10357_v40, 7 }
 0xc6f   :  { %v5329_v26 = vsel %vm3565_vm11, %v5328_v17, %v5320_v14  ;;  %v5956_v33 = vsub.f32 1.0, %v8975_v23  ;;  %v5958_v45 = vmul.f32 %v8975_v23, %v10344_v12  ;;  %v10526_v12 = vld [vmem:[%s11062_s19 + $0xa] sm:$0x3]  ;;  %v6491_v14 = vrot.slane %v10369_v16, 5 }
 0xc70   :  { %v5331_v9 = vsel %vm4449_vm15, %v5330_v60, %v5329_v26  ;;  %v10532_v62 = vrot.slane %v10526_v12, %v9599_v19  ;;  %v6490_v60 = vsel %vm263_vm1, %v6489_v18, %v6488_v55  ;;  %v10542_v26 = vld [vmem:[%s11056_s13] ss:$0 sm:$0xff]  ;;  %v6493_v23 = vrot.slane %v10377_v29, 4 }
 0xc71   :  { %v5336_v54 = vsel %vm5335_vm13, %v5331_v9, 0.0  ;;  %v6492_v40 = vsel %vm266_vm2, %v6491_v14, %v6490_v60 }
 0xc72   :  { %5337 = vadd.xlane.f32.xlu0 %v5336_v54  ;;  %v6494_v63 = vsel %vm269_vm3, %v6493_v23, %v6492_v40 }
 0xc77   :  { %v8977_v11 = vpop.eup %8976 }
 0xc78   :  { %v5957_v6 = vmul.f32 %v8977_v11, %v5956_v33  ;;  %v8979_v48 = vpop.eup %8978 }
 0xc7a   :  { %v10513_v52 = vadd.f32 %v5958_v45, %v5957_v6 }
 0xc7c   :  { %8369 = vmatmul.mubr.msk.f32.vlgmr.msra.gmra.mrb[60].mxu0 %vm184_vm5, %v10513_v52 }
 0xc7d   :  { %8791 = vmatpush3.bf16.msra.mxu0 %v9480_v36  ;;  %8390 = vmatprep.mubr.msk.f32.mxu0 %vm9150_vm0, %v11120_v49 }
 0xc7e   :  { %8792 = vmatprep.subr.bf16.mxu0 %v11121_v53 }
 0xc81   :  { %8794 = vmatpush3.bf16.msra.mxu0 %v9504_v46 }
 0xc82   :  { %8801 = vmatprep.subr.bf16.mxu0 %v11121_v53 }
 0xc88   :  { %4468 = vperm.xlu0 %8850, %v8979_v48  }
 0xcff   :  { %v5338_v57 = vpop.xlane.xlu0 %5337 }
 0xd00   :  { %v5346_v1 = vadd.f32 %v10532_v62, %v5338_v57 }
 0xd02   :  { %8980 = vtanh.f32 %v5346_v1 }
 0xd0c   :  { %v8981_v41 = vpop.eup %8980 }
 0xd0d   :  { %5356 = vperm.xlu0 %8850, %v8981_v41  }
 0xd4f   :  { %v6029_v17 = vpop.f32.mrb[60].mxu0 }
 0xd50   :  { %v6030_v9 = vadd.f32 %v10542_v26, %v6029_v17  ;;  %v8370_v54 = vpop.f32.mrb[61].mxu0 }
 0xd52   :  { %v6033_v56 = vmax.f32 %v6030_v9, 0.0 }
 0xd54   :  { %8380 = vmatmul.mubr.msk.f32.vlgmr.msra.gmra.mrb[60].mxu1 %vm184_vm5, %v6033_v56  ;;  %8391 = vmatmul.mubr.msk.f32.vlgmr.msra.gmra.mrb[62].mxu0 %vm184_vm5, %v6033_v56 }
 0xd55   :  { %8797 = vmatpush3.bf16.msra.mxu1 %v9289_v4  ;;  %8803 = vmatpush3.bf16.msra.mxu0 %v9301_v8 }
 0xd56   :  { %8798 = vmatprep.subr.bf16.mxu1 %v11121_v53  ;;  %8408 = vmatprep.mubr.msk.f32.mxu0 %vm9150_vm0, %v11120_v49 }
 0xd57   :  { %8804 = vmatprep.subr.bf16.mxu0 %v11121_v53  ;;  %8401 = vmatprep.mubr.msk.f32.mxu1 %vm9150_vm0, %v11120_v49 }
 0xd58   :  { %8409 = vmatmul.mubr.msk.f32.vlgmr.msra.gmra.mrb[64].mxu0 %vm271_vm4, %v6494_v63 }
 0xd59   :  { %8800 = vmatpush3.bf16.msra.mxu1 %v9323_v13  ;;  %8806 = vmatpush3.bf16.msra.mxu0 %v9347_v22  ;;  %v10603_v13 = vld [vmem:[%s11058_s15] ss:$0 sm:$0xff] }
 0xd5a   :  { %8807 = vmatprep.subr.bf16.mxu0 %v11121_v53  ;;  %8810 = vmatprep.subr.bf16.mxu1 %v11121_v53 }
 0xd5b   :  { %8419 = vmatprep.mubr.msk.f32.mxu0 %vm9150_vm0, %v11120_v49 }
 0xd5c   :  { %8402 = vmatmul.mubr.msk.f32.vlgmr.msra.gmra.mrb[62].mxu1 %vm184_vm5, %v10513_v52 }
 0xd5d   :  { %8809 = vmatpush3.bf16.msra.mxu0 %v9372_v31  ;;  %8812 = vmatpush3.bf16.msra.mxu1 %v9361_v28  ;;  %v10609_v28 = vld [vmem:[%s11060_s17] ss:$0 sm:$0xff] }
 0xd5e   :  { %8426 = vmatprep.mubr.msk.f32.mxu1 %vm9150_vm0, %v11120_v49  ;;  %8816 = vmatprep.subr.bf16.mxu0 %v11121_v53 }
 0xd5f   :  { %8813 = vmatprep.subr.bf16.mxu1 %v11121_v53 }
 0xd60   :  { %8420 = vmatmul.mubr.msk.f32.vlgmr.msra.gmra.mrb[66].mxu0 %vm184_vm5, %v10513_v52  ;;  %8427 = vmatmul.mubr.msk.f32.vlgmr.msra.gmra.mrb[64].mxu1 %vm271_vm4, %v6494_v63 }
 0xd61   :  { %8818 = vmatpush3.bf16.msra.mxu0 %v9391_v35  ;;  %8444 = vmatprep.mubr.msk.f32.mxu0 %vm9150_vm0, %v11120_v49 }
 0xd62   :  { %8819 = vmatprep.subr.bf16.mxu0 %v11121_v53  ;;  %8815 = vmatpush3.bf16.msra.mxu1 %v9387_v34 }
 0xd63   :  { %8433 = vmatprep.mubr.msk.f32.mxu1 %vm9150_vm0, %v11120_v49  ;;  %8822 = vmatprep.subr.bf16.mxu1 %v11121_v53 }
 0xd65   :  { %8821 = vmatpush3.bf16.msra.mxu0 %v9407_v38  ;;  %8434 = vmatmul.mubr.msk.f32.vlgmr.msra.gmra.mrb[66].mxu1 %vm271_vm4, %v6494_v63 }
 0xd66   :  { %8824 = vmatpush3.bf16.msra.mxu1 %v9429_v42  ;;  %8455 = vmatprep.mubr.msk.f32.mxu1 %vm9150_vm0, %v11120_v49 }
 0xd67   :  { %8825 = vmatprep.subr.bf16.mxu1 %v11121_v53  ;;  %8828 = vmatprep.subr.bf16.mxu0 %v11121_v53 }
 0xd68   :  { %8445 = vmatmul.mubr.msk.f32.vlgmr.msra.gmra.mrb[68].mxu0 %vm184_vm5, %v10513_v52 }
 0xd69   :  { %8830 = vmatpush3.bf16.msra.mxu0 %v9446_v47  ;;  %8466 = vmatprep.mubr.msk.f32.mxu0 %vm9150_vm0, %v11120_v49 }
 0xd6a   :  { %8827 = vmatpush3.bf16.msra.mxu1 %v9435_v44  ;;  %8831 = vmatprep.subr.bf16.mxu0 %v11121_v53 }
 0xd6b   :  { %8834 = vmatprep.subr.bf16.mxu1 %v11121_v53 }
 0xd6d   :  { %8833 = vmatpush3.bf16.msra.mxu0 %v9499_v43 }
 0xe27   :  { %v6103_v4 = vpop.f32.mrb[60].mxu1  ;;  %v6179_v8 = vpop.f32.mrb[62].mxu0 }
 0xe28   :  { %v6104_v22 = vadd.f32 %v10603_v13, %v6103_v4  ;;  %v6180_v31 = vadd.f32 %v10609_v28, %v6179_v8  ;;  %v8381_v34 = vpop.f32.mrb[61].mxu1  ;;  %v8392_v35 = vpop.f32.mrb[63].mxu0 }
 0xe2a   :  { %v7458_v38 = vmul.f32 -1.442695, %v6104_v22  ;;  %v6184_v42 = vmin.f32 %v6180_v31, 20.0  ;;  %v10618_v22 = vld [vmem:[%s11061_s18 + $0xc] sm:$0x3]  ;;  %vm6183_vm3 = vcmp.gt.f32.partialorder %v6180_v31, 20.0 }
 0xe2b   :  { %v6563_v44 = vpop.f32.mrb[64].mxu0 }
 0xe2c   :  { %8982 = vpow2.f32 %v7458_v38  ;;  %v6185_v47 = vmul.f32 1.442695, %v6184_v42  ;;  %v8410_v43 = vpop.f32.mrb[65].mxu0 }
 0xe2d   :  { %v6226_v43 = vrot.slane %v10618_v22, %v9599_v19 }
 0xe2e   :  { %8984 = vpow2.f32 %v6185_v47 }
 0xe2f   :  { %v6484_v16 = vpop.f32.mrb[62].mxu1 }
 0xe30   :  { %v6564_v29 = vadd.f32 %v6563_v44, %v6484_v16  ;;  %v8403_v61 = vpop.f32.mrb[63].mxu1 }
 0xe32   :  { %v6567_v33 = vadd.f32 %v10440_v39, %v6564_v29 }
 0xe33   :  { %v6640_v11 = vpop.f32.mrb[66].mxu0  ;;  %v6710_v6 = vpop.f32.mrb[64].mxu1 }
 0xe34   :  { %v7462_v45 = vmul.f32 -1.442695, %v6567_v33  ;;  %v6711_v24 = vadd.f32 %v6710_v6, %v6640_v11  ;;  %v8421_v48 = vpop.f32.mrb[67].mxu0  ;;  %v8428_v57 = vpop.f32.mrb[65].mxu1 }
 0xe36   :  { %v8983_v1 = vpop.eup %8982  ;;  %8986 = vpow2.f32 %v7462_v45  ;;  %v6714_v41 = vadd.f32 %v10446_v58, %v6711_v24 }
 0xe37   :  { %v6110_v55 = vadd.f32 1.0, %v8983_v1 }
 0xe38   :  { %v8985_v18 = vpop.eup %8984  ;;  %v7465_v14 = vmul.f32 -1.442695, %v6714_v41  ;;  %v6787_v17 = vpop.f32.mrb[66].mxu1 }
 0xe39   :  { %8988 = vrcp.f32 %v6110_v55  ;;  %v6187_v60 = vadd.f32 1.0, %v8985_v18  ;;  %v8435_v9 = vpop.f32.mrb[67].mxu1  ;;  %v6190_v23 = vmul.f32 -0.5, %v8985_v18  ;;  %v6193_v8 = vand.u32 2147483647, %v8985_v18 }
 0xe3a   :  { %v6788_v33 = vadd.f32 %v10465_v32, %v6787_v17  ;;  %v10634_v32 = vld [vmem:[%s11111_s24] sm:$0xff]  ;;  %v10646_v9 = vld [vmem:[%s11111_s24 + $0x10] sm:$0xff] }
 0xe3b   :  { %8990 = vlog2.f32 %v6187_v60  ;;  %v6857_v54 = vpop.f32.mrb[68].mxu0  ;;  %v6191_v63 = vadd.f32 1.0, %v6190_v23  ;;  %vm6194_vm4 = vcmp.lt.f32.partialorder %v6193_v8, 0.0004427343 }
 0xe3c   :  { %8992 = vpow2.f32 %v7465_v14  ;;  %v8446_v39 = vpop.f32.mrb[69].mxu0  ;;  %v6858_v45 = vadd.f32 %v10471_v37, %v6857_v54 }
 0xe3d   :  { %v6192_v47 = vmul.f32 %v8985_v18, %v6191_v63  ;;  %v10653_v63 = vld [vmem:[%s11111_s24 + $0x18] sm:$0xff] }
 0xe40   :  { %v8987_v56 = vpop.eup %8986 }
 0xe41   :  { %v6571_v40 = vadd.f32 1.0, %v8987_v56 }
 0xe43   :  { %v8989_v4 = vpop.eup %8988  ;;  %8994 = vrcp.f32 %v6571_v40 }
 0xe44   :  { %v6360_v58 = vrot.slane %v8989_v4, %v9596_v5  ;;  %v6211_v24 = vrot.slane %v8989_v4, 2  ;;  %v6212_v14 = vrot.slane %v8989_v4, 3  ;;  %v6213_v60 = vrot.slane %v8989_v4, 4 }
 0xe45   :  { %v8991_v34 = vpop.eup %8990  ;;  %v6214_v39 = vrot.slane %v8989_v4, 5 }
 0xe46   :  { %v8993_v35 = vpop.eup %8992  ;;  %v6361_v38 = vcombine.high %v6360_v58, %v6360_v58  ;;  %v6368_v42 = vrot.slane %v6360_v58, %v9596_v5  ;;  %v6189_v44 = vmul.f32 0.6931472, %v8991_v34 }
 0xe47   :  { %v6718_v6 = vadd.f32 1.0, %v8993_v35 }
 0xe48   :  { %v6375_v16 = vrot.slane %v6361_v38, %v9596_v5  ;;  %v6376_v29 = vcombine.high %v6368_v42, %v6368_v42  ;;  %6382 = vst.msk [vmem:[#allocation4 + $0x6] sm:$0x1] %vm1007_vm6, %v6368_v42  ;;  %v6195_v61 = vsel %vm6194_vm4, %v6192_v47, %v6189_v44 }
 0xe49   :  { %v6196_v11 = vsel %vm6183_vm3, %v6180_v31, %v6195_v61  ;;  %v10640_v31 = vld [vmem:[%s11111_s24 + $0x8] sm:$0xff]  ;;  %8996 = vrcp.f32 %v6718_v6  ;;  %vm3650_vm3 = vcmask 60419  }
 0xe4a   :  { %v6377_v48 = vcombine.high %v6375_v16, %v6375_v16  ;;  %6383 = vst.msk [vmem:[#allocation4 + $0xe] sm:$0x1] %vm1007_vm6, %v6375_v16  ;;  %6384 = vst.msk [vmem:[#allocation4 + $0x16] sm:$0x1] %vm1007_vm6, %v6376_v29  ;;  %v6198_v57 = vrot.slane %v6196_v11, 2  ;;  %v6199_v1 = vrot.slane %v6196_v11, 3  ;;  %v6392_v18 = vrot.slane %v6196_v11, %v9596_v5 }
 0xe4b   :  { %v6200_v41 = vrot.slane %v6196_v11, 4  ;;  %v6201_v55 = vrot.slane %v6196_v11, 5 }
 0xe4c   :  { %6385 = vst.msk [vmem:[#allocation4 + $0x1e] sm:$0x1] %vm1007_vm6, %v6377_v48  ;;  %v6206_v37 = vmul.f32 %v10634_v32, %v6198_v57  ;;  %v6207_v17 = vmul.f32 %v10640_v31, %v6199_v1  ;;  %v6393_v56 = vcombine.high %v6392_v18, %v6392_v18  ;;  %v6400_v40 = vrot.slane %v6392_v18, %v9596_v5 }
 0xe4d   :  { %v6208_v54 = vmul.f32 %v10646_v9, %v6200_v41  ;;  %v8995_v23 = vpop.eup %8994  ;;  %v6209_v8 = vmul.f32 %v10653_v63, %v6201_v55 }
 0xe4e   :  { %v6861_v58 = vmul.f32 %v8995_v23, %v6858_v45  ;;  %v10656_v34 = vadd.f32 %v6211_v24, %v6206_v37  ;;  %v10658_v35 = vadd.f32 %v6212_v14, %v6207_v17  ;;  %v6407_v4 = vrot.slane %v6393_v56, %v9596_v5  ;;  %6414 = vst.msk [vmem:[#allocation6 + $0x6] sm:$0x1] %vm1007_vm6, %v6400_v40  ;;  %v10687_v17 = vld [vmem:[%s11062_s19 + $0xc] sm:$0x3] }
 0xe4f   :  { %v10660_v38 = vadd.f32 %v6213_v60, %v6208_v54  ;;  %v6408_v42 = vcombine.high %v6400_v40, %v6400_v40  ;;  %v10664_v44 = vadd.f32 %v6214_v39, %v6209_v8 }
 0xe50   :  { %v6862_v47 = vadd.f32 %v6861_v58, %v6788_v33  ;;  %v6228_v16 = vmul.f32 %v6226_v43, %v10658_v35  ;;  %v6409_v61 = vcombine.high %v6407_v4, %v6407_v4  ;;  %6415 = vst.msk [vmem:[#allocation6 + $0xe] sm:$0x1] %vm1007_vm6, %v6407_v4  ;;  %v6227_v6 = vmul.f32 %v6226_v43, %v10656_v34 }
 0xe51   :  { %v6229_v29 = vmul.f32 %v6226_v43, %v10660_v38  ;;  %6416 = vst.msk [vmem:[#allocation6 + $0x16] sm:$0x1] %vm1007_vm6, %v6408_v42  ;;  %v6230_v11 = vmul.f32 %v6226_v43, %v10664_v44 }
 0xe52   :  { %8998 = vtanh.f32 %v6862_v47  ;;  %v6235_v45 = vrot.slane %v6228_v16, 7  ;;  %6417 = vst.msk [vmem:[#allocation6 + $0x1e] sm:$0x1] %vm1007_vm6, %v6409_v61 }
 0xe53   :  { %v6237_v24 = vrot.slane %v6229_v29, 6  ;;  %v6238_v33 = vrot.slane %v6230_v11, 5  ;;  %v8997_v41 = vpop.eup %8996 }
 0xe54   :  { %v6236_v48 = vsel %vm4449_vm15, %v6235_v45, %v6227_v6  ;;  %v6864_v18 = vsub.f32 1.0, %v8997_v41  ;;  %v6866_v60 = vmul.f32 %v8997_v41, %v10513_v52  ;;  %v10691_v52 = vrot.slane %v10687_v17, %v9599_v19  ;;  %v10702_v45 = vld [vmem:[%s11063_s20 + $0x8] sm:$0x3] }
 0xe55   :  { %v6243_v57 = vsel %vm6242_vm12, %v6236_v48, 0.0  ;;  %v6239_v1 = vsel %vm263_vm1, %v6238_v33, %v6237_v24 }
 0xe56   :  { %6244 = vadd.xlane.f32.xlu1 %v6243_v57  ;;  %v6247_v55 = vsel %vm6246_vm14, %v6239_v1, 0.0 }
 0xe5a   :  { %6248 = vadd.xlane.f32.xlu1 %v6247_v55 }
 0xe5c   :  { %v8999_v14 = vpop.eup %8998 }
 0xe5d   :  { %v6865_v43 = vmul.f32 %v8999_v14, %v6864_v18 }
 0xe5f   :  { %v6867_v37 = vadd.f32 %v6866_v60, %v6865_v43 }
 0xe61   :  { %8456 = vmatmul.mubr.msk.f32.vlgmr.msra.gmra.mrb[68].mxu1 %vm184_vm5, %v6867_v37 }
 0xe62   :  { %8836 = vmatpush3.bf16.msra.mxu1 %v9480_v36  ;;  %8477 = vmatprep.mubr.msk.f32.mxu1 %vm9150_vm0, %v11120_v49 }
 0xe63   :  { %8837 = vmatprep.subr.bf16.mxu1 %v11121_v53 }
 0xe66   :  { %8839 = vmatpush3.bf16.msra.mxu1 %v9504_v46 }
 0xee3   :  { %v6245_v54 = vpop.xlane.xlu1 %6244 }
 0xee4   :  { %v6254_v39 = vadd.f32 %v10691_v52, %v6245_v54  ;;  %v10714_v54 = vld [vmem:[%s11061_s18 + $0xe] sm:$0x3] }
 0xee6   :  { %9000 = vtanh.f32 %v6254_v39 }
 0xef0   :  { %v9001_v36 = vpop.eup %9000 }
 0xef1   :  { %6264 = vperm.xlu0 %8850, %v9001_v36  }
 0xf34   :  { %v6937_v49 = vpop.f32.mrb[68].mxu1 }
 0xf35   :  { %v6938_v53 = vadd.f32 %v10542_v26, %v6937_v49  ;;  %v8457_v23 = vpop.f32.mrb[69].mxu1 }
 0xf37   :  { %v6941_v46 = vmax.f32 %v6938_v53, 0.0 }
 0xf39   :  { %8467 = vmatmul.mubr.msk.f32.vlgmr.msra.gmra.mrb[70].mxu0 %vm184_vm5, %v6941_v46  ;;  %8478 = vmatmul.mubr.msk.f32.vlgmr.msra.gmra.mrb[70].mxu1 %vm184_vm5, %v6941_v46 }
0x100c   :  { %v7011_v56 = vpop.f32.mrb[70].mxu0  ;;  %v7087_v40 = vpop.f32.mrb[70].mxu1 }
0x100d   :  { %v7012_v8 = vadd.f32 %v10603_v13, %v7011_v56  ;;  %v7088_v58 = vadd.f32 %v10609_v28, %v7087_v40  ;;  %v8468_v4 = vpop.f32.mrb[71].mxu0  ;;  %v8479_v42 = vpop.f32.mrb[71].mxu1  ;;  %v4465_v13 = vrot.slane %v10702_v45, %v9599_v19  ;;  %v7134_v56 = vrot.slane %v10714_v54, %v9599_v19 }
0x100e   :  { %v4469_v28 = vpop.permute.xlu0 %4468 }
0x100f   :  { %v7470_v47 = vmul.f32 -1.442695, %v7012_v8  ;;  %v7092_v16 = vmin.f32 %v7088_v58, 20.0  ;;  %v10706_v33 = vmul.f32 %v4469_v28, %v4465_v13  ;;  %vm7091_vm5 = vcmp.gt.f32.partialorder %v7088_v58, 20.0 }
0x1011   :  { %9002 = vpow2.f32 %v7470_v47  ;;  %v7093_v29 = vmul.f32 1.442695, %v7092_v16  ;;  %v4473_v18 = vrot.slane %v10706_v33, 1  ;;  %v4474_v53 = vrot.slane %v10706_v33, 2 }
0x1013   :  { %9004 = vpow2.f32 %v7093_v29  ;;  %v10720_v23 = vadd.f32 %v4473_v18, %v10324_v3 }
0x101b   :  { %v9003_v26 = vpop.eup %9002 }
0x101c   :  { %v7018_v61 = vadd.f32 1.0, %v9003_v26 }
0x101d   :  { %v9005_v11 = vpop.eup %9004 }
0x101e   :  { %9006 = vrcp.f32 %v7018_v61  ;;  %v7095_v6 = vadd.f32 1.0, %v9005_v11  ;;  %v7098_v24 = vmul.f32 -0.5, %v9005_v11  ;;  %v7101_v1 = vand.u32 2147483647, %v9005_v11 }
0x1020   :  { %9008 = vlog2.f32 %v7095_v6  ;;  %v7099_v48 = vadd.f32 1.0, %v7098_v24  ;;  %vm7102_vm0 = vcmp.lt.f32.partialorder %v7101_v1, 0.0004427343 }
0x1022   :  { %v7100_v37 = vmul.f32 %v9005_v11, %v7099_v48 }
0x1028   :  { %v9007_v57 = vpop.eup %9006 }
0x1029   :  { %v7267_v41 = vrot.slane %v9007_v57, %v9596_v5  ;;  %v7120_v16 = vrot.slane %v9007_v57, 2  ;;  %v7121_v29 = vrot.slane %v9007_v57, 3  ;;  %v7122_v11 = vrot.slane %v9007_v57, 4 }
0x102a   :  { %v9009_v55 = vpop.eup %9008  ;;  %v7119_v24 = vrot.slane %v9007_v57, 1  ;;  %v10748_v57 = vadd.f32 %v4474_v53, %v10326_v10  ;;  %v5323_v10 = vmul.f32 %v10458_v21, %v10491_v20  ;;  %v10761_v53 = vadd.f32 %v10706_v33, %v10322_v2 }
0x102b   :  { %v7268_v14 = vcombine.high %v7267_v41, %v7267_v41  ;;  %v7275_v43 = vrot.slane %v7267_v41, %v9596_v5  ;;  %v7097_v60 = vmul.f32 0.6931472, %v9009_v55 }
0x102c   :  { %v5332_v21 = vrot.slane %v5323_v10, 5 }
0x102d   :  { %v7282_v39 = vrot.slane %v7268_v14, %v9596_v5  ;;  %v7283_v36 = vcombine.high %v7275_v43, %v7275_v43  ;;  %7289 = vst.msk [vmem:[#allocation4 + $0x7] sm:$0x1] %vm1007_vm6, %v7275_v43  ;;  %v7103_v49 = vsel %vm7102_vm0, %v7100_v37, %v7097_v60  ;;  %v4475_v43 = vrot.slane %v10706_v33, 3 }
0x102e   :  { %v7104_v46 = vsel %vm7091_vm5, %v7088_v58, %v7103_v49 }
0x102f   :  { %v7284_v40 = vcombine.high %v7282_v39, %v7282_v39  ;;  %7290 = vst.msk [vmem:[#allocation4 + $0xf] sm:$0x1] %vm1007_vm6, %v7282_v39  ;;  %7291 = vst.msk [vmem:[#allocation4 + $0x17] sm:$0x1] %vm1007_vm6, %v7283_v36  ;;  %v7107_v8 = vrot.slane %v7104_v46, 2  ;;  %v7108_v4 = vrot.slane %v7104_v46, 3  ;;  %v7299_v47 = vrot.slane %v7104_v46, %v9596_v5 }
0x1030   :  { %v7109_v42 = vrot.slane %v7104_v46, 4  ;;  %v7106_v26 = vrot.slane %v7104_v46, 1 }
0x1031   :  { %7292 = vst.msk [vmem:[#allocation4 + $0x1f] sm:$0x1] %vm1007_vm6, %v7284_v40  ;;  %v7115_v3 = vmul.f32 %v10640_v31, %v7107_v8  ;;  %v7116_v58 = vmul.f32 %v10646_v9, %v7108_v4  ;;  %v7300_v6 = vcombine.high %v7299_v47, %v7299_v47  ;;  %v7307_v13 = vrot.slane %v7299_v47, %v9596_v5 }
0x1032   :  { %v7117_v61 = vmul.f32 %v10653_v63, %v7109_v42  ;;  %v7114_v28 = vmul.f32 %v10634_v32, %v7106_v26  ;;  %v9070_v63 = vld [vmem:[%s11061_s18 + $0x8] sm:$0x3]  ;;  %v10768_v4 = vadd.f32 %v4475_v43, %v10330_v30  ;;  %v5339_v26 = vsel %vm1007_vm6, %v5332_v21, 0.0 }
0x1033   :  { %v10733_v48 = vadd.f32 %v7120_v16, %v7115_v3  ;;  %v10735_v1 = vadd.f32 %v7121_v29, %v7116_v58  ;;  %v7314_v55 = vrot.slane %v7300_v6, %v9596_v5  ;;  %v7315_v31 = vcombine.high %v7307_v13, %v7307_v13  ;;  %7321 = vst.msk [vmem:[#allocation6 + $0x7] sm:$0x1] %vm1007_vm6, %v7307_v13  ;;  %v9071_v6 = vld [vmem:[%s11062_s19] sm:$0x3] }
0x1034   :  { %v10737_v41 = vadd.f32 %v7122_v11, %v7117_v61  ;;  %v10741_v9 = vadd.f32 %v7119_v24, %v7114_v28  ;;  %v4487_v32 = vrot.slane %v9070_v63, %v9747_v0  ;;  %v982_v13 = vrot.slane %v9071_v6, %v9747_v0  ;;  %v9072_v24 = vld [vmem:[%s11062_s19 + $0x2] sm:$0x3]  ;;  %v9073_v63 = vld [vmem:[%s11062_s19 + $0x4] sm:$0x3] }
0x1035   :  { %v7136_v18 = vmul.f32 %v7134_v56, %v10733_v48  ;;  %v7137_v14 = vmul.f32 %v7134_v56, %v10735_v1  ;;  %v7316_v60 = vcombine.high %v7314_v55, %v7314_v55  ;;  %7322 = vst.msk [vmem:[#allocation6 + $0xf] sm:$0x1] %vm1007_vm6, %v7314_v55  ;;  %7323 = vst.msk [vmem:[#allocation6 + $0x17] sm:$0x1] %vm1007_vm6, %v7315_v31 }
0x1036   :  { %v7138_v5 = vmul.f32 %v7134_v56, %v10737_v41  ;;  %v4489_v37 = vmul.f32 %v4487_v32, %v10720_v23  ;;  %v4490_v40 = vmul.f32 %v4487_v32, %v10748_v57  ;;  %v4488_v2 = vmul.f32 %v4487_v32, %v10761_v53 }
0x1037   :  { %v7143_v39 = vrot.slane %v7136_v18, 7  ;;  %v7144_v36 = vrot.slane %v7137_v14, 6  ;;  %7324 = vst.msk [vmem:[#allocation6 + $0x1f] sm:$0x1] %vm1007_vm6, %v7316_v60  ;;  %v4491_v16 = vmul.f32 %v4487_v32, %v10768_v4  ;;  %v7135_v3 = vmul.f32 %v7134_v56, %v10741_v9  ;;  %v11132_v18 = vld [vmem:[#allocation21_spill] sm:$0xff] }
0x1038   :  { %v7146_v49 = vrot.slane %v7138_v5, 5  ;;  %v4496_v42 = vrot.slane %v4489_v37, 7  ;;  %v4498_v33 = vrot.slane %v4490_v40, 6  ;;  %v983_v56 = vadd.f32 %v982_v13, %v9832_v51  ;;  %v9074_v51 = vld [vmem:[%s11062_s19 + $0x6] sm:$0x3] }
0x1039   :  { %v7145_v46 = vsel %vm263_vm1, %v7144_v36, %v7143_v39  ;;  %v4500_v58 = vrot.slane %v4491_v16, 5  ;;  %v7151_v61 = vsel %vm7150_vm10, %v7135_v3, 0.0  ;;  %v1863_v55 = vrot.slane %v9072_v24, %v9747_v0  ;;  %v10803_v36 = vld [vmem:[%s11062_s19 + $0xe] sm:$0x3] }
0x103a   :  { %v7147_v8 = vsel %vm266_vm2, %v7146_v49, %v7145_v46  ;;  %v4497_v29 = vsel %vm2684_vm7, %v4496_v42, %v4488_v2  ;;  %9010 = vtanh.f32 %v983_v56  ;;  %v2744_v32 = vrot.slane %v9073_v63, %v9747_v0  ;;  %v6249_v49 = vpop.xlane.xlu1 %6248  ;;  %v11134_v63 = vld [vmem:[#allocation10_spill] sm:$0xff] }
0x103b   :  { %v7155_v47 = vsel %vm7154_vm9, %v7147_v8, 0.0  ;;  %v4499_v30 = vsel %vm3565_vm11, %v4498_v33, %v4497_v29  ;;  %v1864_v31 = vadd.f32 %v1863_v55, %v10093_v59  ;;  %v3625_v5 = vrot.slane %v9074_v51, %v9747_v0  ;;  %v9075_v29 = vld [vmem:[%s11063_s20] sm:$0x3]  ;;  %v11136_v51 = vld [vmem:[#allocation12_spill] sm:$0xff] }
0x103c   :  { %7156 = vadd.xlane.f32.xlu1 %v7155_v47  ;;  %v4501_v11 = vsel %vm4449_vm15, %v4500_v58, %v4499_v30  ;;  %v2745_v14 = vadd.f32 %v2744_v32, %v11132_v18  ;;  %v7161_v10 = vrot.slane %v10803_v36, %v9599_v19  ;;  %v6255_v40 = vadd.f32 %v10691_v52, %v6249_v49  ;;  %v11135_v18 = vld [vmem:[#allocation11_spill] sm:$0xff] }
0x103d   :  { %v4503_v28 = vsel %vm4452_vm8, %v4501_v11, 0.0  ;;  %9012 = vtanh.f32 %v1864_v31  ;;  %v3626_v43 = vadd.f32 %v3625_v5, %v10528_v50  ;;  %v4509_v21 = vrot.slane %v10508_v7, %v9747_v0  ;;  %v9076_v7 = vld [vmem:[%s11063_s20 + $0x2] sm:$0x3] }
0x103e   :  { %9014 = vtanh.f32 %v2745_v14  ;;  %vm1888_vm7 = vcmask 58369   ;;  %vm2769_vm8 = vcmask 59394  }
0x103f   :  { %9016 = vtanh.f32 %v3626_v43 }
0x1040   :  { %5340 = vadd.xlane.f32.xlu1 %v5339_v26  ;;  %v988_v26 = vrot.slane %v9075_v29, %v9747_v0 }
0x1044   :  { %7152 = vadd.xlane.f32.xlu1 %v7151_v61  ;;  %v9011_v60 = vpop.eup %9010  ;;  %v1869_v61 = vrot.slane %v9076_v7, %v9747_v0 }
0x1047   :  { %v9013_v59 = vpop.eup %9012 }
0x1048   :  { %4504 = vadd.xlane.f32.xlu1 %v4503_v28  ;;  %v9015_v37 = vpop.eup %9014  ;;  %v11133_v28 = vld [vmem:[#allocation9_spill] sm:$0xff] }
0x1049   :  { %v9017_v39 = vpop.eup %9016 }
0x1059   :  { %991 = vperm.xlu1 %8851, %v9011_v60  }
0x105d   :  { %1872 = vperm.xlu1 %8851, %v9013_v59  }
0x1061   :  { %2753 = vperm.xlu1 %8851, %v9015_v37  }
0x1065   :  { %3634 = vperm.xlu1 %8851, %v9017_v39   ;;  %v11137_v39 = vld [vmem:[#allocation13_spill] sm:$0xff] }
0x10c9   :  { %v7157_v46 = vpop.xlane.xlu1 %7156 }
0x10ca   :  { %v7163_v50 = vadd.f32 %v7161_v10, %v7157_v46  ;;  %v9078_v46 = vld [vmem:[%s11063_s20 + $0x6] sm:$0x3] }
0x10cc   :  { %9018 = vtanh.f32 %v7163_v50  ;;  %v3631_v50 = vrot.slane %v9078_v46, %v9747_v0 }
0x10cd   :  { %v5341_v8 = vpop.xlane.xlu1 %5340  ;;  %9020 = vtanh.f32 %v6255_v40 }
0x10ce   :  { %v5347_v52 = vadd.f32 %v10532_v62, %v5341_v8  ;;  %v9077_v62 = vld [vmem:[%s11063_s20 + $0x4] sm:$0x3]  ;;  %v11138_v8 = vld [vmem:[#allocation14_spill] sm:$0xff] }
0x10cf   :  { %v2750_v55 = vrot.slane %v9077_v62, %v9747_v0 }
0x10d1   :  { %v7153_v42 = vpop.xlane.xlu1 %7152 }
0x10d2   :  { %v7162_v47 = vadd.f32 %v7161_v10, %v7153_v42 }
0x10d4   :  { %9022 = vtanh.f32 %v7162_v47  ;;  %v11139_v47 = vld [vmem:[#allocation15_spill] sm:$0xff] }
0x10d5   :  { %v4505_v2 = vpop.xlane.xlu1 %4504 }
0x10d6   :  { %v9019_v33 = vpop.eup %9018  ;;  %v4510_v16 = vadd.f32 %v4509_v21, %v4505_v2  ;;  %v11140_v2 = vld [vmem:[#allocation16_spill] sm:$0xff] }
0x10d7   :  { %7177 = vperm.xlu0 %8850, %v9019_v33   ;;  %v9021_v30 = vpop.eup %9020 }
0x10d8   :  { %9024 = vtanh.f32 %v4510_v16 }
0x10d9   :  { %v992_v3 = vpop.permute.xlu1 %991  ;;  %9026 = vtanh.f32 %v5347_v52 }
0x10da   :  { %v994_v58 = vmul.f32 %v992_v3, %v988_v26  ;;  %v11141_v3 = vld [vmem:[#allocation17_spill] sm:$0xff] }
0x10db   :  { %6269 = vperm.xlu0 %8850, %v9021_v30  }
0x10dc   :  { %v996_v11 = vrot.slane %v994_v58, 1  ;;  %v997_v6 = vrot.slane %v994_v58, 2  ;;  %v998_v13 = vrot.slane %v994_v58, 3  ;;  %v1003_v56 = vadd.f32 %v994_v58, %v11133_v28  ;;  %v11144_v28 = vld [vmem:[#allocation20_spill] sm:$0xff] }
0x10dd   :  { %v1873_v24 = vpop.permute.xlu1 %1872 }
0x10de   :  { %v9023_v31 = vpop.eup %9022  ;;  %v1004_v32 = vadd.f32 %v996_v11, %v11134_v63  ;;  %v1005_v14 = vadd.f32 %v997_v6, %v11135_v18  ;;  %v1006_v5 = vadd.f32 %v998_v13, %v11136_v51  ;;  %1008 = vst.msk [vmem:[#allocation2] sm:$0x1] %vm1007_vm6, %v1003_v56  ;;  %v1875_v43 = vmul.f32 %v1873_v24, %v1869_v61  ;;  %v11142_v61 = vld [vmem:[#allocation18_spill] sm:$0xff]  ;;  %v11143_v6 = vld [vmem:[#allocation19_spill] sm:$0xff] }
0x10df   :  { %7172 = vperm.xlu0 %8850, %v9023_v31   ;;  %v11145_v63 = vld [vmem:[#allocation22_spill] sm:$0xff] }
0x10e0   :  { %1009 = vst.msk [vmem:[#allocation2 + $0x8] sm:$0x1] %vm1007_vm6, %v1004_v32  ;;  %1010 = vst.msk [vmem:[#allocation2 + $0x10] sm:$0x1] %vm1007_vm6, %v1005_v14  ;;  %v1877_v60 = vrot.slane %v1875_v43, 1  ;;  %v1878_v59 = vrot.slane %v1875_v43, 2  ;;  %v1884_v49 = vadd.f32 %v1875_v43, %v11137_v39  ;;  %v5357_v39 = vpop.permute.xlu0 %5356 }
0x10e1   :  { %1011 = vst.msk [vmem:[#allocation2 + $0x18] sm:$0x1] %vm1007_vm6, %v1006_v5  ;;  %v1879_v37 = vrot.slane %v1875_v43, 3  ;;  %v2754_v10 = vpop.permute.xlu1 %2753  ;;  %v10855_v18 = vld [vmem:[%s11063_s20 + $0xa] sm:$0x3]  ;;  %v11146_v14 = vld [vmem:[#allocation23_spill] sm:$0xff] }
0x10e2   :  { %v9025_v40 = vpop.eup %9024  ;;  %v1885_v42 = vadd.f32 %v1877_v60, %v11138_v8  ;;  %v1886_v21 = vadd.f32 %v1878_v59, %v11139_v47  ;;  %1889 = vst.msk [vmem:[#allocation2] sm:$0x2] %vm1888_vm7, %v1884_v49  ;;  %v2756_v16 = vmul.f32 %v2754_v10, %v2750_v55  ;;  %v11147_v5 = vld [vmem:[#allocation24_spill] sm:$0xff]  ;;  %v11148_v60 = vld [vmem:[#allocation25_spill] sm:$0xff] }
0x10e3   :  { %v1887_v33 = vadd.f32 %v1879_v37, %v11140_v2  ;;  %4518 = vperm.xlu1 %8851, %v9025_v40   ;;  %v9027_v58 = vpop.eup %9026  ;;  %v5353_v37 = vrot.slane %v10855_v18, %v9599_v19  ;;  %v11149_v40 = vld [vmem:[#allocation26_spill] sm:$0xff] }
0x10e4   :  { %1890 = vst.msk [vmem:[#allocation2 + $0x8] sm:$0x2] %vm1888_vm7, %v1885_v42  ;;  %1891 = vst.msk [vmem:[#allocation2 + $0x10] sm:$0x2] %vm1888_vm7, %v1886_v21  ;;  %v2758_v29 = vrot.slane %v2756_v16, 1  ;;  %v2759_v26 = vrot.slane %v2756_v16, 2  ;;  %v2765_v30 = vadd.f32 %v2756_v16, %v11141_v3  ;;  %v10871_v8 = vrot.slane %v11149_v40, %v9747_v0 }
0x10e5   :  { %1892 = vst.msk [vmem:[#allocation2 + $0x18] sm:$0x2] %vm1888_vm7, %v1887_v33  ;;  %v2760_v52 = vrot.slane %v2756_v16, 3  ;;  %v3635_v7 = vpop.permute.xlu1 %3634  ;;  %v5364_v49 = vmul.f32 %v5357_v39, %v5353_v37 }
0x10e6   :  { %v2766_v11 = vadd.f32 %v2758_v29, %v11142_v61  ;;  %v2767_v13 = vadd.f32 %v2759_v26, %v11143_v6  ;;  %2770 = vst.msk [vmem:[#allocation2] sm:$0x4] %vm2769_vm8, %v2765_v30  ;;  %v3637_v24 = vmul.f32 %v3635_v7, %v3631_v50  ;;  %v10896_v30 = vld [vmem:[%s11063_s20 + $0xe] sm:$0x3] }
0x10e7   :  { %v2768_v56 = vadd.f32 %v2760_v52, %v11144_v28  ;;  %5361 = vperm.xlu1 %8851, %v9027_v58   ;;  %v5368_v10 = vrot.slane %v5364_v49, 1  ;;  %v5369_v46 = vrot.slane %v5364_v49, 2  ;;  %v10879_v21 = vadd.f32 %v5364_v49, %v10483_v27  ;;  %v6265_v52 = vpop.permute.xlu0 %6264  ;;  %v10891_v27 = vld [vmem:[%s11063_s20 + $0xc] sm:$0x3]  ;;  %s9154_s20 = smov [#allocation4]  }
0x10e8   :  { %2771 = vst.msk [vmem:[#allocation2 + $0x8] sm:$0x4] %vm2769_vm8, %v2766_v11  ;;  %2772 = vst.msk [vmem:[#allocation2 + $0x10] sm:$0x4] %vm2769_vm8, %v2767_v13  ;;  %v3639_v62 = vrot.slane %v3637_v24, 1  ;;  %v3640_v55 = vrot.slane %v3637_v24, 2  ;;  %v3646_v32 = vadd.f32 %v3637_v24, %v11145_v63  ;;  %v6261_v58 = vrot.slane %v10891_v27, %v9599_v19 }
0x10e9   :  { %2773 = vst.msk [vmem:[#allocation2 + $0x18] sm:$0x4] %vm2769_vm8, %v2768_v56  ;;  %v3641_v31 = vrot.slane %v3637_v24, 3  ;;  %v10867_v50 = vadd.f32 %v5368_v10, %v10485_v25  ;;  %v10874_v42 = vadd.f32 %v5369_v46, %v10487_v15  ;;  %v5383_v25 = vmul.f32 %v10871_v8, %v10879_v21  ;;  %s7342_s10 = sshll.u32 %s9154_s20, 4  ;;  %s7343_s10 = int_to_ptr.vmem [resolvable:$true] %s7342_s10 }
0x10ea   :  { %v3647_v51 = vadd.f32 %v3639_v62, %v11146_v14  ;;  %v3648_v43 = vadd.f32 %v3640_v55, %v11147_v5  ;;  %3651 = vst.msk [vmem:[#allocation2] sm:$0x8] %vm3650_vm3, %v3646_v32  ;;  %v7169_v7 = vrot.slane %v10896_v30, %v9599_v19  ;;  %v6272_v6 = vmul.f32 %v6265_v52, %v6261_v58  ;;  %s9079_s11 = scalar_lea.vmem %s7343_s10, 512  ;;  %p9084_p1 = scmp.lt.s32.totalorder %s7343_s10, %s7343_s10 }
0x10eb   :  { %v3649_v59 = vadd.f32 %v3641_v31, %v11148_v60  ;;  %v5384_v47 = vmul.f32 %v10871_v8, %v10867_v50  ;;  %v5385_v2 = vmul.f32 %v10871_v8, %v10874_v42  ;;  %v6290_v24 = vrot.slane %v10618_v22, %v9747_v0  ;;  %p9080_p0 = scmp.ne.s32.totalorder %s7343_s10, %s9079_s11  ;;  %p9085_p2 = scmp.lt.s32.totalorder %s9079_s11, %s9079_s11 }
0x10ec   :  { %3652 = vst.msk [vmem:[#allocation2 + $0x8] sm:$0x8] %vm3650_vm3, %v3647_v51  ;;  %3653 = vst.msk [vmem:[#allocation2 + $0x10] sm:$0x8] %vm3650_vm3, %v3648_v43  ;;  %v4515_v31 = vrot.slane %v10702_v45, %v9747_v0  ;;  %v6276_v63 = vrot.slane %v6272_v6, 1 }
0x10ed   :  { %3654 = vst.msk [vmem:[#allocation2 + $0x18] sm:$0x8] %vm3650_vm3, %v3649_v59  ;;  %v5391_v33 = vrot.slane %v5384_v47, 7  ;;  %v5393_v16 = vrot.slane %v5385_v2, 6  ;;  %p9086_p3 = por %p9085_p2, %p9084_p1 }
0x10ef   :  { %v5392_v29 = vsel %vm3565_vm11, %v5391_v33, %v5383_v25  ;;  %vm4534_vm11 = vcmask 61444   ;;  %p9087_p4 = pnand %p9086_p3, %p9080_p0 }
0x10f0   :  { %v5394_v26 = vsel %vm4449_vm15, %v5393_v16, %v5392_v29  ;;  %v10945_v16 = vadd.f32 %v6272_v6, %v10656_v34 }
0x10f1   :  { %v5398_v15 = vsel %vm5335_vm13, %v5394_v26, 0.0 }
0x110b   :  { %5399 = vadd.xlane.f32.xlu1 %v5398_v15 }
0x1156   :  { %v7178_v3 = vpop.permute.xlu0 %7177 }
0x1157   :  { %v7181_v56 = vmul.f32 %v7178_v3, %v7169_v7 }
0x1159   :  { %v7184_v14 = vrot.slane %v7181_v56, 1  ;;  %v7185_v51 = vrot.slane %v7181_v56, 2  ;;  %v7186_v10 = vrot.slane %v7181_v56, 3 }
0x115a   :  { %v6270_v61 = vpop.permute.xlu0 %6269 }
0x115b   :  { %v6273_v11 = vmul.f32 %v6270_v61, %v6261_v58  ;;  %v10921_v46 = vadd.f32 %v7184_v14, %v10733_v48  ;;  %v10924_v40 = vadd.f32 %v7185_v51, %v10735_v1  ;;  %v10936_v1 = vadd.f32 %v7186_v10, %v10737_v41 }
0x115d   :  { %v6277_v13 = vrot.slane %v6273_v11, 2  ;;  %v6278_v28 = vrot.slane %v6273_v11, 3 }
0x115e   :  { %v7173_v26 = vpop.permute.xlu0 %7172 }
0x115f   :  { %v10905_v62 = vadd.f32 %v6277_v13, %v10660_v38  ;;  %v10908_v55 = vadd.f32 %v6278_v28, %v10664_v44  ;;  %v10915_v38 = vadd.f32 %v6276_v63, %v10658_v35  ;;  %v7198_v44 = vrot.slane %v10714_v54, %v9747_v0 }
0x1160   :  { %v7180_v61 = vmul.f32 %v7173_v26, %v7169_v7  ;;  %v5407_v63 = vrot.slane %v10526_v12, %v9747_v0 }
0x1161   :  { %v6293_v19 = vmul.f32 %v6290_v24, %v10905_v62  ;;  %v6294_v32 = vmul.f32 %v6290_v24, %v10908_v55  ;;  %v7202_v41 = vmul.f32 %v7198_v44, %v10936_v1 }
0x1162   :  { %v4519_v5 = vpop.permute.xlu1 %4518 }
0x1163   :  { %v4521_v43 = vmul.f32 %v4519_v5, %v4515_v31  ;;  %v6301_v60 = vrot.slane %v6293_v19, 6  ;;  %v6302_v22 = vrot.slane %v6294_v32, 5  ;;  %v7210_v34 = vrot.slane %v7202_v41, 5 }
0x1164   :  { %v6315_v5 = vrot.slane %v10687_v17, %v9747_v0 }
0x1165   :  { %v4523_v59 = vrot.slane %v4521_v43, 1  ;;  %v4524_v45 = vrot.slane %v4521_v43, 2  ;;  %v4525_v39 = vrot.slane %v4521_v43, 3  ;;  %v4530_v49 = vadd.f32 %v4521_v43, %v10761_v53 }
0x1166   :  { %v5362_v47 = vpop.permute.xlu1 %5361  ;;  %v6303_v35 = vsel %vm263_vm1, %v6302_v22, %v6301_v60 }
0x1167   :  { %v4531_v2 = vadd.f32 %v4523_v59, %v10720_v23  ;;  %v4532_v33 = vadd.f32 %v4524_v45, %v10748_v57  ;;  %v4533_v54 = vadd.f32 %v4525_v39, %v10768_v4  ;;  %4535 = vst.msk [vmem:[#allocation2] sm:$0x10] %vm4534_vm11, %v4530_v49  ;;  %v5365_v25 = vmul.f32 %v5362_v47, %v5353_v37 }
0x1168   :  { %v6309_v53 = vsel %vm6246_vm14, %v6303_v35, 0.0  ;;  %v6292_v23 = vmul.f32 %v6290_v24, %v10915_v38  ;;  %v7200_v4 = vmul.f32 %v7198_v44, %v10921_v46  ;;  %v7201_v37 = vmul.f32 %v7198_v44, %v10924_v40 }
0x1169   :  { %4536 = vst.msk [vmem:[#allocation2 + $0x8] sm:$0x10] %vm4534_vm11, %v4531_v2  ;;  %4537 = vst.msk [vmem:[#allocation2 + $0x10] sm:$0x10] %vm4534_vm11, %v4532_v33  ;;  %v5370_v48 = vrot.slane %v5365_v25, 3  ;;  %6310 = vadd.xlane.f32.xlu1 %v6309_v53 }
0x116a   :  { %4538 = vst.msk [vmem:[#allocation2 + $0x18] sm:$0x10] %vm4534_vm11, %v4533_v54  ;;  %v6299_v15 = vrot.slane %v6292_v23, 7  ;;  %v7207_v3 = vrot.slane %v7200_v4, 7  ;;  %v7208_v58 = vrot.slane %v7201_v37, 6 }
0x116b   :  { %v10940_v57 = vadd.f32 %v5370_v48, %v10491_v20  ;;  %v6291_v20 = vmul.f32 %v6290_v24, %v10945_v16 }
0x116c   :  { %v7209_v6 = vsel %vm263_vm1, %v7208_v58, %v7207_v3 }
0x116d   :  { %v5386_v29 = vmul.f32 %v10871_v8, %v10940_v57  ;;  %v6300_v13 = vsel %vm4449_vm15, %v6299_v15, %v6291_v20  ;;  %v10955_v8 = vadd.f32 %v7180_v61, %v10741_v9  ;;  %v7211_v56 = vsel %vm266_vm2, %v7210_v34, %v7209_v6 }
0x116e   :  { %v6306_v28 = vsel %vm6242_vm12, %v6300_v13, 0.0  ;;  %v7217_v31 = vsel %vm7154_vm9, %v7211_v56, 0.0 }
0x116f   :  { %v5395_v52 = vrot.slane %v5386_v29, 5  ;;  %v7199_v7 = vmul.f32 %v7198_v44, %v10955_v8  ;;  %v7223_v44 = vrot.slane %v10803_v36, %v9747_v0  ;;  %v5415_v36 = vrot.slane %v10855_v18, %v9747_v0 }
0x1171   :  { %v5401_v11 = vsel %vm1007_vm6, %v5395_v52, 0.0  ;;  %v7214_v24 = vsel %vm7150_vm10, %v7199_v7, 0.0 }
0x1172   :  { %5402 = vadd.xlane.f32.xlu0 %v5401_v11 }
0x1176   :  { %6307 = vadd.xlane.f32.xlu0 %v6306_v28 }
0x117a   :  { %7218 = vadd.xlane.f32.xlu0 %v7217_v31 }
0x117e   :  { %7215 = vadd.xlane.f32.xlu0 %v7214_v24 }
0x1198   :  { %v5400_v19 = vpop.xlane.xlu1 %5399 }
0x1199   :  { %v5408_v32 = vadd.f32 %v5407_v63, %v5400_v19 }
0x119b   :  { %9028 = vtanh.f32 %v5408_v32 }
0x11a5   :  { %v9029_v9 = vpop.eup %9028 }
0x11a6   :  { %5418 = vperm.xlu1 %8851, %v9029_v9  }
0x11f6   :  { %v6311_v43 = vpop.xlane.xlu1 %6310 }
0x11f7   :  { %v6317_v59 = vadd.f32 %v6315_v5, %v6311_v43 }
0x11ff   :  { %v5403_v14 = vpop.xlane.xlu0 %5402 }
0x1200   :  { %v5409_v51 = vadd.f32 %v5407_v63, %v5403_v14 }
0x1202   :  { %9030 = vtanh.f32 %v5409_v51 }
0x1203   :  { %v6308_v60 = vpop.xlane.xlu0 %6307 }
0x1204   :  { %v6316_v22 = vadd.f32 %v6315_v5, %v6308_v60 }
0x1206   :  { %9032 = vtanh.f32 %v6316_v22 }
0x1207   :  { %v7219_v12 = vpop.xlane.xlu0 %7218  ;;  %9034 = vtanh.f32 %v6317_v59 }
0x1208   :  { %v7225_v45 = vadd.f32 %v7223_v44, %v7219_v12 }
0x120a   :  { %9036 = vtanh.f32 %v7225_v45 }
0x120b   :  { %v7216_v39 = vpop.xlane.xlu0 %7215 }
0x120c   :  { %v9031_v49 = vpop.eup %9030  ;;  %v7224_v10 = vadd.f32 %v7223_v44, %v7216_v39 }
0x120d   :  { %5423 = vperm.xlu0 %8850, %v9031_v49  }
0x120e   :  { %9038 = vtanh.f32 %v7224_v10 }
0x1210   :  { %v9033_v47 = vpop.eup %9032 }
0x1211   :  { %6326 = vperm.xlu0 %8850, %v9033_v47   ;;  %v9035_v17 = vpop.eup %9034 }
0x1214   :  { %v9037_v35 = vpop.eup %9036 }
0x1215   :  { %6331 = vperm.xlu0 %8850, %v9035_v17  }
0x1218   :  { %v9039_v2 = vpop.eup %9038 }
0x1219   :  { %7234 = vperm.xlu1 %8851, %v9039_v2   ;;  %7239 = vperm.xlu0 %8850, %v9037_v35  }
0x121a   :  { %9090 = shalt.err (!%p9087_p4)
}
0x121b   :  { %s9091_s0 = scalar_lea.hbm %s11065_s22, 512 }
0x121c   :  { %p9092_p5 = scmp.ne.s32.totalorder %s11065_s22, %s9091_s0  ;;  %p9095_p6 = scmp.lt.u32.totalorder %s9091_s0, %s11065_s22 }
0x121e   :  { %p9097_p7 = pnand %p9095_p6, %p9092_p5 }
0x1220   :  { %9100 = shalt.err (!%p9097_p7)
}
0x1221   :  { %s9155_s1 = smov 128   ;;  %s9156_s12 = smov 8  }
0x1222   :  { %7348 = dma.vmem_to_hbm [thread:$0]  %s7343_s10, 512, %s11065_s22, [#allocation5], %s9155_s1, %s9155_s1, %s9156_s12  }
0x1223   :  { %s9157_s19 = smov [#allocation6]  }
0x1224   :  { %s7354_s26 = sshll.u32 %s9157_s19, 4  ;;  %s7355_s26 = int_to_ptr.vmem [resolvable:$true] %s7354_s26 }
0x1225   :  { %v5419_v18 = vpop.permute.xlu1 %5418  ;;  %s9101_s2 = scalar_lea.vmem %s7355_s26, 512  ;;  %p9106_p9 = scmp.lt.s32.totalorder %s7355_s26, %s7355_s26 }
0x1226   :  { %v5426_v33 = vmul.f32 %v5419_v18, %v5415_v36  ;;  %p9102_p8 = scmp.ne.s32.totalorder %s7355_s26, %s9101_s2  ;;  %p9107_p10 = scmp.lt.s32.totalorder %s9101_s2, %s9101_s2 }
0x1228   :  { %p9108_p11 = por %p9107_p10, %p9106_p9 }
0x122a   :  { %p9109_p12 = pnand %p9108_p11, %p9102_p8 }
0x122c   :  { %9112 = shalt.err (!%p9109_p12)
}
0x122d   :  { %s9113_s27 = scalar_lea.hbm %s11066_s23, 512 }
0x122e   :  { %p9114_p13 = scmp.ne.s32.totalorder %s11066_s23, %s9113_s27  ;;  %p9117_p0 = scmp.lt.u32.totalorder %s9113_s27, %s11066_s23 }
0x1230   :  { %p9119_p1 = pnand %p9117_p0, %p9114_p13 }
0x1232   :  { %9122 = shalt.err (!%p9119_p1)
}
0x1233   :  { %7360 = dma.vmem_to_hbm [thread:$0]  %s7355_s26, 512, %s11066_s23, [#allocation5], %s9155_s1, %s9155_s1, %s9156_s12   ;;  %vm5441_vm1 = vcmask 62469   ;;  %v5430_v54 = vrot.slane %v5426_v33, 1  ;;  %v5431_v25 = vrot.slane %v5426_v33, 2  ;;  %v5437_v53 = vadd.f32 %v5426_v33, %v10879_v21 }
0x1234   :  { %v6323_v29 = vrot.slane %v10891_v27, %v9747_v0  ;;  %vm6349_vm2 = vcmask 63494   ;;  %v7231_v27 = vrot.slane %v10896_v30, %v9747_v0  ;;  %s9158_s23 = smov [#allocation2]  }
0x1235   :  { %v5438_v48 = vadd.f32 %v5430_v54, %v10867_v50  ;;  %v5439_v23 = vadd.f32 %v5431_v25, %v10874_v42  ;;  %5442 = vst.msk [vmem:[#allocation2] sm:$0x20] %vm5441_vm1, %v5437_v53  ;;  %s7330_s16 = sshll.u32 %s9158_s23, 4  ;;  %s7331_s16 = int_to_ptr.vmem [resolvable:$true] %s7330_s16 }
0x1236   :  { %s9123_s29 = scalar_lea.vmem %s7331_s16, 512  ;;  %p9128_p3 = scmp.lt.s32.totalorder %s7331_s16, %s7331_s16 }
0x1237   :  { %5443 = vst.msk [vmem:[#allocation2 + $0x8] sm:$0x20] %vm5441_vm1, %v5438_v48  ;;  %5444 = vst.msk [vmem:[#allocation2 + $0x10] sm:$0x20] %vm5441_vm1, %v5439_v23  ;;  %p9124_p2 = scmp.ne.s32.totalorder %s7331_s16, %s9123_s29  ;;  %p9129_p4 = scmp.lt.s32.totalorder %s9123_s29, %s9123_s29 }
0x1239   :  { %p9130_p5 = por %p9129_p4, %p9128_p3 }
0x123b   :  { %p9131_p6 = pnand %p9130_p5, %p9124_p2 }
0x128c   :  { %v5424_v4 = vpop.permute.xlu0 %5423 }
0x128d   :  { %v5427_v37 = vmul.f32 %v5424_v4, %v5415_v36 }
0x128f   :  { %v5432_v26 = vrot.slane %v5427_v37, 3 }
0x1290   :  { %v6327_v15 = vpop.permute.xlu0 %6326 }
0x1291   :  { %v5440_v41 = vadd.f32 %v5432_v26, %v10940_v57  ;;  %v6334_v21 = vmul.f32 %v6327_v15, %v6323_v29 }
0x1293   :  { %5445 = vst.msk [vmem:[#allocation2 + $0x18] sm:$0x20] %vm5441_vm1, %v5440_v41  ;;  %v6338_v50 = vrot.slane %v6334_v21, 1  ;;  %v6345_v42 = vadd.f32 %v6334_v21, %v10945_v16 }
0x1294   :  { %v6332_v52 = vpop.permute.xlu0 %6331 }
0x1295   :  { %v6346_v3 = vadd.f32 %v6338_v50, %v10915_v38  ;;  %6350 = vst.msk [vmem:[#allocation2] sm:$0x40] %vm6349_vm2, %v6345_v42  ;;  %v6335_v58 = vmul.f32 %v6332_v52, %v6323_v29 }
0x1297   :  { %6351 = vst.msk [vmem:[#allocation2 + $0x8] sm:$0x40] %vm6349_vm2, %v6346_v3  ;;  %v6339_v20 = vrot.slane %v6335_v58, 2  ;;  %v6340_v57 = vrot.slane %v6335_v58, 3 }
0x1298   :  { %v7240_v61 = vpop.permute.xlu0 %7239  ;;  %v7235_v11 = vpop.permute.xlu1 %7234 }
0x1299   :  { %v6347_v13 = vadd.f32 %v6339_v20, %v10905_v62  ;;  %v6348_v34 = vadd.f32 %v6340_v57, %v10908_v55  ;;  %v7243_v16 = vmul.f32 %v7240_v61, %v7231_v27  ;;  %v7242_v6 = vmul.f32 %v7235_v11, %v7231_v27 }
0x129b   :  { %6352 = vst.msk [vmem:[#allocation2 + $0x10] sm:$0x40] %vm6349_vm2, %v6347_v13  ;;  %6353 = vst.msk [vmem:[#allocation2 + $0x18] sm:$0x40] %vm6349_vm2, %v6348_v34  ;;  %v7246_v38 = vrot.slane %v7243_v16, 1  ;;  %v7247_v0 = vrot.slane %v7243_v16, 2  ;;  %v7253_v28 = vadd.f32 %v7242_v6, %v10955_v8 }
0x129c   :  { %v7248_v30 = vrot.slane %v7243_v16, 3 }
0x129d   :  { %v7254_v56 = vadd.f32 %v7246_v38, %v10921_v46  ;;  %v7255_v31 = vadd.f32 %v7247_v0, %v10924_v40  ;;  %7257 = vst.msk [vmem:[#allocation2] sm:$0x80] %vm7150_vm10, %v7253_v28 }
0x129e   :  { %v7256_v62 = vadd.f32 %v7248_v30, %v10936_v1 }
0x129f   :  { %7258 = vst.msk [vmem:[#allocation2 + $0x8] sm:$0x80] %vm7150_vm10, %v7254_v56  ;;  %7259 = vst.msk [vmem:[#allocation2 + $0x10] sm:$0x80] %vm7150_vm10, %v7255_v31 }
0x12a0   :  { %7260 = vst.msk [vmem:[#allocation2 + $0x18] sm:$0x80] %vm7150_vm10, %v7256_v62 }
0x12a1   :  { %9134 = shalt.err (!%p9131_p6)
}
0x12a2   :  { %s9135_s10 = scalar_lea.hbm %s11064_s21, 512 }
0x12a3   :  { %p9136_p7 = scmp.ne.s32.totalorder %s11064_s21, %s9135_s10  ;;  %p9139_p8 = scmp.lt.u32.totalorder %s9135_s10, %s11064_s21 }
0x12a5   :  { %p9141_p9 = pnand %p9139_p8, %p9136_p7 }
0x12a7   :  { %9144 = shalt.err (!%p9141_p9)
}
0x12a8   :  { %7336 = dma.vmem_to_hbm [thread:$0]  %s7331_s16, 512, %s11064_s21, [#allocation3], %s9155_s1, %s9155_s1, %s9156_s12  }
0x12a9   :  { %9145 = dma.done.wait [#allocation3], 512  }
0x12aa   :  { %9146 = vsyncadd [#allocation3], 4294966784 }
0x12ab   :  { %9147 = dma.done.wait [#allocation5], 1024  }
0x12ac   :  { %9148 = vsyncadd [#allocation5], 4294966272 }
0x12ad   :  { %7370 = vsyncpa [#allocation3], 1 }
0x12ae   :  { %7371 = vsyncpa [#allocation5], 1 }

</bundles_post_ra>
